<compile_context>
chip_gen: v7x
topology: tpu7x:2x2x1
jax: 0.10.0
libtpu: 0.0.40
codegen_flags: <defaults>
</compile_context>

<pallas_src>
import math

import numpy as np
import jax
import jax.numpy as jnp
from jax import lax
from jax.experimental import pallas as pl
from jax.experimental.pallas import tpu as pltpu

# ----------------------------- model config ---------------------------------
# DenseNet kwargs: dims=(4,16,16), growthRate=8, depth=16, reduction=0.5,
# bottleneck=True  ->  nDenseBlocks = ((16-4)//3)//2 = 2 per dense block.
C_IN, H_IN, W_IN = 4, 16, 16
GROWTH = 8
DEPTH = 16
REDUCTION = 0.5
H_DIM = 32        # args['h_dim']
N_U = 8           # args['nU']
N_Y = 10          # args['nY']
U_ARCH = "film"   # args['u_arch']
HEAD_LANES = 128  # lane-dense head width (everything <=128 padded up)

W_DTYPE = jnp.bfloat16   # matmul operands (MXU-native)
A_DTYPE = jnp.float32    # affine params / biases (VPU epilogues stay f32)


# ----------------------------- torch-layout parameters -----------------------
def init_params(key):
    n_blocks = ((DEPTH - 4) // 3) // 2  # bottleneck=True -> 2
    keys = iter(jax.random.split(key, 256))

    def nk():
        return next(keys)

    def conv_w(cout, cin, k):
        std = math.sqrt(2.0 / (cin * k * k))  # kaiming_normal_ (fan_in)
        return std * jax.random.normal(nk(), (cout, cin, k, k), jnp.float32)

    def bn_affine(c):
        # eval-mode BN folded into per-channel (scale, bias)
        gamma = 1.0 + 0.1 * jax.random.normal(nk(), (c,), jnp.float32)
        beta = 0.1 * jax.random.normal(nk(), (c,), jnp.float32)
        mean = 0.1 * jax.random.normal(nk(), (c,), jnp.float32)
        var = jax.random.uniform(nk(), (c,), jnp.float32, 0.5, 1.5)
        scale = gamma * jax.lax.rsqrt(var + 1e-5)
        return scale, beta - mean * scale

    def lin(fin, fout):
        w = math.sqrt(1.0 / fin) * jax.random.normal(nk(), (fout, fin), jnp.float32)
        return w, jnp.zeros((fout,), jnp.float32)  # constant_(bias, 0)

    params = {}
    nCh = 2 * GROWTH
    params["conv1"] = conv_w(nCh, C_IN, 3)

    def make_dense(nCh):
        layers = []
        for _ in range(n_blocks):
            inter = 4 * GROWTH
            layers.append(dict(bn1=bn_affine(nCh), conv1=conv_w(inter, nCh, 1),
                               bn2=bn_affine(inter), conv2=conv_w(GROWTH, inter, 3)))
            nCh += GROWTH
        return layers, nCh

    params["dense1"], nCh = make_dense(nCh)
    nOut = int(math.floor(nCh * REDUCTION))
    params["trans1"] = dict(bn=bn_affine(nCh), conv=conv_w(nOut, nCh, 1))
    nCh = nOut
    params["dense2"], nCh = make_dense(nCh)
    nOut = int(math.floor(nCh * REDUCTION))
    params["trans2"] = dict(bn=bn_affine(nCh), conv=conv_w(nOut, nCh, 1))
    nCh = nOut
    params["dense3"], nCh = make_dense(nCh)
    params["bn_final"] = bn_affine(nCh)
    params["fc"] = lin(nCh, H_DIM)
    params["pre_film1"] = lin(N_U, 128)
    params["pre_film2"] = lin(128, 2 * H_DIM)
    params["film1"] = lin(H_DIM, 128)
    params["film2"] = lin(128, N_Y)
    params["cat1"] = lin(3 * H_DIM, 128)
    params["cat2"] = lin(128, N_Y)
    return params


# ----------------------------- slab packers ----------------------------------
class _WeightPacker:
    """Packs bf16 matmul weights into one contiguous slab per lane width so the
    kernel receives a handful of refs / DMAs instead of ~100 tiny ones."""

    def __init__(self, dtype):
        self.dtype = dtype
        self.pieces = {}
        self.nrows = {}

    def add(self, mat):
        mat = np.asarray(mat, np.float32)
        k, n = mat.shape
        pad = (-k) % 8                       # keep every row offset 8-aligned
        if pad:
            mat = np.pad(mat, ((0, pad), (0, 0)))
        handle = (n, self.nrows.get(n, 0), k)   # (slab key, row offset, rows)
        self.pieces.setdefault(n, []).append(mat)
        self.nrows[n] = self.nrows.get(n, 0) + mat.shape[0]
        return handle

    def finalize(self):
        return {n: jnp.asarray(np.concatenate(p, axis=0), self.dtype)
                for n, p in self.pieces.items()}


class _AffinePacker:
    """Packs folded-BN (scale, bias) rows and linear biases into one f32 slab."""

    def __init__(self, width):
        self.width = width
        self.rows = []

    def _push(self, row):
        row = np.asarray(row, np.float32).reshape(-1)
        self.rows.append(np.pad(row, (0, self.width - row.shape[0]))[None, :])

    def add_affine(self, scale, bias):       # scale at row off, bias at off+1
        handle = (len(self.rows), int(np.asarray(scale).shape[0]))
        self._push(scale)
        self._push(bias)
        return handle

    def add_bias(self, bias):
        handle = (len(self.rows), int(np.asarray(bias).shape[0]))
        self._push(bias)
        return handle

    def finalize(self):
        slab = np.concatenate(self.rows, axis=0)
        pad = (-slab.shape[0]) % 8
        if pad:
            slab = np.pad(slab, ((0, pad), (0, 0)))
        return jnp.asarray(slab, A_DTYPE)


# ----------------------------- one-time weight preparation -------------------
def _slot(n):
    # every DenseNet "segment" occupies a 128-aligned lane slot -> all in-kernel
    # lane concats / slices stay vreg-aligned (no masked partial stores).
    return max(128, -(-n // 128) * 128)


def _pool_half(n):
    p = np.zeros((n // 2, n), np.float32)
    for i in range(n // 2):
        p[i, 2 * i] = 0.5
        p[i, 2 * i + 1] = 0.5
    return p


def _seg_affine_rows(scale, bias, w, seg_cs):
    # per-channel BN (scale, bias) tiled over the W lane positions, laid out
    # segment-major with each segment padded to its 128-aligned slot.
    scale = np.asarray(scale, np.float32)
    bias = np.asarray(bias, np.float32)
    srow, brow, off = [], [], 0
    for c in seg_cs:
        real, slot = w * c, _slot(w * c)
        srow.append(np.pad(np.tile(scale[off:off + c], w), (0, slot - real)))
        brow.append(np.pad(np.tile(bias[off:off + c], w), (0, slot - real)))
        off += c
    return np.concatenate(srow), np.concatenate(brow)


def _expand_1x1_seg(w2d, w, seg_cs):
    # (c_out, c_total) 1x1 conv -> (sum slot(w*c_seg), w*c_out) block-diagonal
    # matmul weight, rows vstacked in the segment-major (padded) lane order.
    w2d = np.asarray(w2d, np.float32)
    eye_w = np.eye(w, dtype=np.float32)
    blocks, off = [], 0
    for c in seg_cs:
        blk = np.kron(eye_w, w2d[:, off:off + c].T)
        real, slot = w * c, _slot(w * c)
        blocks.append(np.pad(blk, ((0, slot - real), (0, 0))))
        off += c
    return np.concatenate(blocks, axis=0)


def _expand_3x3_stack(k4, w, n_slot=None, k_slot=None):
    # (c_out,c_in,3,3) padding=1 conv -> ONE matmul weight for the lane-stacked
    # input [x[i-1] | x[i] | x[i+1]]: one row block per vertical tap, the
    # horizontal taps live in the banded kron structure of each block.
    k4 = np.asarray(k4, np.float32)
    c_out, c_in = k4.shape[0], k4.shape[1]
    k_real, n_real = w * c_in, w * c_out
    k_slot = k_slot or k_real
    n_slot = n_slot or n_real
    blocks = []
    for dh in range(3):
        m = np.zeros((k_real, n_real), np.float32)
        for dw in range(3):
            band = np.eye(w, k=-(dw - 1), dtype=np.float32)
            m += np.kron(band, k4[:, :, dh, dw].T)
        blocks.append(np.pad(m, ((0, k_slot - k_real), (0, n_slot - n_real))))
    return np.concatenate(blocks, axis=0)


def _prep_dense_block(layers, w, seg_cs, wp, ap):
    out = []
    for lp in layers:
        s1, b1 = lp["bn1"]
        s2, b2 = lp["bn2"]
        out.append(dict(
            bn1=ap.add_affine(*_seg_affine_rows(s1, b1, w, seg_cs)),
            e1=wp.add(_expand_1x1_seg(lp["conv1"][:, :, 0, 0], w, seg_cs)),
            bn2=ap.add_affine(np.tile(np.asarray(s2, np.float32), w),
                              np.tile(np.asarray(b2, np.float32), w)),
            e3=wp.add(_expand_3x3_stack(lp["conv2"], w, n_slot=_slot(w * GROWTH))),
        ))
        seg_cs = seg_cs + [GROWTH]
    return out, seg_cs


def _prep_transition(tp, w, seg_cs, wp, ap):
    s, b = tp["bn"]
    wc = np.asarray(tp["conv"][:, :, 0, 0], np.float32)
    c_out = wc.shape[0]
    e1 = _expand_1x1_seg(wc, w, seg_cs)
    p_w = np.kron(_pool_half(w).T, np.eye(c_out, dtype=np.float32))
    fused = e1 @ p_w                         # fold the W-avg-pool into the conv
    n_real = (w // 2) * c_out
    fused = np.pad(fused, ((0, 0), (0, _slot(n_real) - n_real)))
    return dict(bn=ap.add_affine(*_seg_affine_rows(s, b, w, seg_cs)),
                w=wp.add(fused)), c_out


def _prep_head(params, w, seg_cs, u_type, wp, ap):
    s, b = params["bn_final"]
    hp = dict(bn=ap.add_affine(*_seg_affine_rows(s, b, w, seg_cs)))
    fc_w, fc_b = params["fc"]
    fc_w = np.asarray(fc_w, np.float32)
    blocks, off = [], 0
    for c in seg_cs:                          # fold GAP-over-W into the fc
        g = np.kron(np.ones((w, 1), np.float32) / w, np.eye(c, dtype=np.float32))
        blk = g @ fc_w[:, off:off + c].T
        real, slot = w * c, _slot(w * c)
        blocks.append(np.pad(blk, ((0, slot - real), (0, 0))))
        off += c
    gf = np.concatenate(blocks, axis=0)
    hp["gf"] = wp.add(np.pad(gf, ((0, 0), (0, HEAD_LANES - H_DIM))))
    hp["fc_b"] = ap.add_bias(np.pad(np.asarray(fc_b, np.float32),
                                    (0, HEAD_LANES - H_DIM)))

    def lin_pad(p, k_pad=None, n_pad=None):
        wgt, bias = p
        wt = np.asarray(wgt, np.float32).T
        k, n = wt.shape
        wt = np.pad(wt, ((0, (k_pad or k) - k), (0, (n_pad or n) - n)))
        bs = np.pad(np.asarray(bias, np.float32), (0, (n_pad or n) - n))
        return wt, bs

    w1, b1 = lin_pad(params["pre_film1"], k_pad=HEAD_LANES)
    hp["pre1"], hp["pre1_b"] = wp.add(w1), ap.add_bias(b1)
    if u_type == "cat":
        w2, b2 = lin_pad(params["pre_film2"], n_pad=HEAD_LANES)
        hp["pre2"], hp["pre2_b"] = wp.add(w2), ap.add_bias(b2)
        cw, cb = params["cat1"]
        cw = np.asarray(cw, np.float32)
        hp["cat1_wu"] = wp.add(np.pad(cw[:, :2 * H_DIM].T,
                                      ((0, HEAD_LANES - 2 * H_DIM), (0, 0))))
        hp["cat1_wh"] = wp.add(np.pad(cw[:, 2 * H_DIM:].T,
                                      ((0, HEAD_LANES - H_DIM), (0, 0))))
        hp["cat1_b"] = ap.add_bias(np.asarray(cb, np.float32))
        w4, b4 = lin_pad(params["cat2"], n_pad=HEAD_LANES)
        hp["cat2"], hp["cat2_b"] = wp.add(w4), ap.add_bias(b4)
    else:
        w2, b2 = params["pre_film2"]
        w2 = np.asarray(w2, np.float32)
        b2 = np.asarray(b2, np.float32)
        hp["pre2s"] = wp.add(np.pad(w2[:H_DIM].T, ((0, 0), (0, HEAD_LANES - H_DIM))))
        hp["pre2t"] = wp.add(np.pad(w2[H_DIM:].T, ((0, 0), (0, HEAD_LANES - H_DIM))))
        hp["pre2s_b"] = ap.add_bias(np.pad(b2[:H_DIM], (0, HEAD_LANES - H_DIM)))
        hp["pre2t_b"] = ap.add_bias(np.pad(b2[H_DIM:], (0, HEAD_LANES - H_DIM)))
        wf1, bf1 = lin_pad(params["film1"], k_pad=HEAD_LANES)
        hp["film1"], hp["film1_b"] = wp.add(wf1), ap.add_bias(bf1)
        wf2, bf2 = lin_pad(params["film2"], n_pad=HEAD_LANES)
        hp["film2"], hp["film2_b"] = wp.add(wf2), ap.add_bias(bf2)
    return hp


def prepare_params(params, u_type=U_ARCH):
    """One-time weight prep: folds eval-mode BN, kron-expands convs into MXU
    matmul weights, fuses 3x3 taps / DenseNet segments / avg-pool / GAP into
    single matmuls, and packs everything into a handful of slabs."""
    assert H_IN == W_IN and H_IN % 4 == 0
    wp = _WeightPacker(W_DTYPE)
    ap = _AffinePacker(512)
    plan = {"u_type": u_type}
    w = H_IN
    plan["stem"] = wp.add(_expand_3x3_stack(params["conv1"], w,
                                            k_slot=_slot(W_IN * C_IN)))
    seg_cs = [2 * GROWTH]
    plan["dense1"], seg_cs = _prep_dense_block(params["dense1"], w, seg_cs, wp, ap)
    plan["trans1"], c = _prep_transition(params["trans1"], w, seg_cs, wp, ap)
    w, seg_cs = w // 2, [c]
    plan["dense2"], seg_cs = _prep_dense_block(params["dense2"], w, seg_cs, wp, ap)
    plan["trans2"], c = _prep_transition(params["trans2"], w, seg_cs, wp, ap)
    w, seg_cs = w // 2, [c]
    plan["dense3"], seg_cs = _prep_dense_block(params["dense3"], w, seg_cs, wp, ap)
    plan["head"] = _prep_head(params, w, seg_cs, u_type, wp, ap)
    return plan, ap.finalize(), wp.finalize()


# ----------------------------- the fused kernel ------------------------------
def _make_kernel(plan, slab_keys, use_roll):
    u_type = plan["u_type"]
    n_slabs = len(slab_keys)

    def kernel(x_ref, u_ref, aff_ref, *rest):
        w_refs = dict(zip(slab_keys, rest[:n_slabs]))
        y_ref = rest[n_slabs]

        def wmat(h):                         # static, aligned slab slice (view)
            n, off, k = h
            return w_refs[n][off:off + k, :]

        def mm(a, h):                        # bf16 MXU matmul, f32 accumulation
            wm = wmat(h)
            return jnp.dot(a.astype(wm.dtype), wm,
                           preferred_element_type=jnp.float32)

        def affine_relu(a, h):               # folded eval-mode BN + ReLU (f32)
            off, width = h
            s = aff_ref[off:off + 1, 0:width]
            b = aff_ref[off + 1:off + 2, 0:width]
            return jnp.maximum(a * s + b, 0.0)

        def bias_row(h):
            off, width = h
            return aff_ref[off:off + 1, 0:width]

        def conv3x3(a, h):
            # padding=1 3x3 conv as ONE matmul on [x[i-1] | x[i] | x[i+1]]:
            # vertical taps via sublane roll (XLU) + boundary mask, horizontal
            # taps via the banded structure baked into the weight.
            hh = a.shape[0]
            ri = lax.broadcasted_iota(jnp.int32, (hh, 1), 0)
            if use_roll:
                up = jnp.where(ri > 0, pltpu.roll(a, 1, axis=0), 0.0)
                dn = jnp.where(ri < hh - 1, pltpu.roll(a, -1, axis=0), 0.0)
            else:  # fallback: tiny iota-built shift matmuls (identical math)
                r = lax.broadcasted_iota(jnp.int32, (hh, hh), 0)
                c = lax.broadcasted_iota(jnp.int32, (hh, hh), 1)
                up = jnp.dot((c == r - 1).astype(a.dtype), a,
                             preferred_element_type=jnp.float32)
                dn = jnp.dot((c == r + 1).astype(a.dtype), a,
                             preferred_element_type=jnp.float32)
            z3 = jnp.concatenate([up, a, dn], axis=-1)
            return mm(z3, h)

        def pool_rows(a):                    # average consecutive row pairs
            hh = a.shape[0]
            r = lax.broadcasted_iota(jnp.int32, (hh // 2, hh), 0)
            c = lax.broadcasted_iota(jnp.int32, (hh // 2, hh), 1)
            p = jnp.where((c == 2 * r) | (c == 2 * r + 1), 0.5, 0.0)
            return jnp.dot(p.astype(a.dtype), a,
                           preferred_element_type=jnp.float32)

        def dense_block(x, layers):
            for lp in layers:
                z = mm(affine_relu(x, lp["bn1"]), lp["e1"])     # fused 1x1 conv
                z = affine_relu(z, lp["bn2"])
                x = jnp.concatenate([x, conv3x3(z, lp["e3"])], axis=-1)
            return x

        def transition(x, tr):
            a = pool_rows(affine_relu(x, tr["bn"]))
            return mm(a, tr["w"])            # 1x1 conv with W-avg-pool folded in

        hp = plan["head"]
        x = x_ref[...].astype(jnp.float32)                      # (H, 128)
        x = conv3x3(x, plan["stem"])                            # stem conv
        x = dense_block(x, plan["dense1"])
        x = transition(x, plan["trans1"])
        x = dense_block(x, plan["dense2"])
        x = transition(x, plan["trans2"])
        x = dense_block(x, plan["dense3"])

        # head: GAP over H in-kernel, GAP over W + fc folded into one matmul
        a = affine_relu(x, hp["bn"])
        g = jnp.mean(a, axis=0, keepdims=True)
        h = mm(g, hp["gf"]) + bias_row(hp["fc_b"])

        u_row = u_ref[0].astype(jnp.float32)                    # (1, 128)
        u1 = jnp.maximum(mm(u_row, hp["pre1"]) + bias_row(hp["pre1_b"]), 0.0)
        if u_type == "cat":
            u2 = mm(u1, hp["pre2"]) + bias_row(hp["pre2_b"])
            z = jnp.maximum(mm(u2, hp["cat1_wu"]) + mm(h, hp["cat1_wh"])
                            + bias_row(hp["cat1_b"]), 0.0)
            y = mm(z, hp["cat2"]) + bias_row(hp["cat2_b"])
        else:
            us = mm(u1, hp["pre2s"]) + bias_row(hp["pre2s_b"])
            ut = mm(u1, hp["pre2t"]) + bias_row(hp["pre2t_b"])
            uh = us * h + ut                                    # FiLM
            z = jnp.maximum(mm(uh, hp["film1"]) + bias_row(hp["film1_b"]), 0.0)
            y = mm(z, hp["film2"]) + bias_row(hp["film2_b"])
        y_ref[...] = y[None].astype(y_ref.dtype)                # (1, 1, 128)

    return kernel


# ----------------------------- forward ---------------------------------------
def film_densenet_forward(plan, aff_slab, w_slabs, x_nchw, u, use_roll=True):
    bsz, c, h, w = x_nchw.shape
    # NCHW -> NHWC -> (B*H, W*C) lane-dense rows, lanes zero-padded to 128.
    x2d = jnp.transpose(x_nchw.astype(jnp.float32), (0, 2, 3, 1)).reshape(bsz * h, w * c)
    xl = _slot(w * c)
    x2d = jnp.pad(x2d, ((0, 0), (0, xl - w * c)))
    u_pad = jnp.zeros((bsz, 1, HEAD_LANES), jnp.float32)
    u_pad = u_pad.at[:, 0, :u.shape[1]].set(u.astype(jnp.float32))

    keys = sorted(w_slabs)
    slabs = [w_slabs[k] for k in keys]
    kernel = _make_kernel(plan, keys, use_roll)

    in_specs = [pl.BlockSpec((h, xl), lambda b: (b, 0)),
                pl.BlockSpec((1, 1, HEAD_LANES), lambda b: (b, 0, 0)),
                pl.BlockSpec(aff_slab.shape, lambda b: (0, 0))]
    in_specs += [pl.BlockSpec(s.shape, lambda b: (0, 0)) for s in slabs]

    out = pl.pallas_call(
        kernel,
        grid=(bsz,),
        in_specs=in_specs,
        out_specs=pl.BlockSpec((1, 1, HEAD_LANES), lambda b: (b, 0, 0)),
        out_shape=jax.ShapeDtypeStruct((bsz, 1, HEAD_LANES), jnp.float32),
        compiler_params=pltpu.CompilerParams(
            dimension_semantics=("parallel",),
            vmem_limit_bytes=32 * 1024 * 1024),
    )(x2d, u_pad, aff_slab, *slabs)
    return out[:, 0, :N_Y]


# ----------------------------- main -------------------------------------------
if __name__ == "__main__":
    key = jax.random.PRNGKey(0)
    pkey, xkey, ukey = jax.random.split(key, 3)

    params = init_params(pkey)
    plan, aff_slab, w_slabs = prepare_params(params, u_type=U_ARCH)  # one-time prep

    x = jax.random.normal(xkey, (2, C_IN, H_IN, W_IN), jnp.float32)  # NCHW input
    u = jax.random.normal(ukey, (2, N_U), jnp.float32)

    def run(use_roll):
        f = jax.jit(lambda a, ws, xx, uu: film_densenet_forward(
            plan, a, ws, xx, uu, use_roll=use_roll))
        y = f(aff_slab, w_slabs, x, u)
        jax.block_until_ready(y)
        return y

    try:
        y = run(True)
    except Exception:
        # Fallback if the sublane pltpu.roll fails to lower on this backend:
        # identical math via tiny iota-built shift matmuls.
        y = run(False)

    assert y.shape == (2, N_Y) and y.dtype == jnp.float32
    assert bool(jnp.all(jnp.isfinite(y)))
    print("KERNEL_OK")
</pallas_src>

<mosaic_0001>
module attributes {stable_mosaic.version = 11 : i64} {
  func.func @kernel(%arg0: i32, %arg1: memref<16x128xf32, #tpu.memory_space<vmem>>, %arg2: memref<1x1x128xf32, #tpu.memory_space<vmem>>, %arg3: memref<40x512xf32, #tpu.memory_space<vmem>>, %arg4: memref<7680x128xbf16, #tpu.memory_space<vmem>>, %arg5: memref<768x256xbf16, #tpu.memory_space<vmem>>, %arg6: memref<640x512xbf16, #tpu.memory_space<vmem>>, %arg7: memref<1x1x128xf32, #tpu.memory_space<vmem>>) attributes {dimension_semantics = [#tpu.dimension_semantics<parallel>], iteration_bounds = array<i64: 2>, scalar_prefetch = 0 : i64, scratch_operands = 0 : i64, tpu.core_type = #tpu.core_type<tc>, window_params = [{transform_indices = @transform_0, window_bounds = array<i64: 16, 128>}, {transform_indices = @transform_1, window_bounds = array<i64: 1, 1, 128>}, {pipeline_mode = #tpu.pipeline_mode<synchronous>, transform_indices = @transform_2, window_bounds = array<i64: 40, 512>}, {pipeline_mode = #tpu.pipeline_mode<synchronous>, transform_indices = @transform_3, window_bounds = array<i64: 7680, 128>}, {pipeline_mode = #tpu.pipeline_mode<synchronous>, transform_indices = @transform_4, window_bounds = array<i64: 768, 256>}, {pipeline_mode = #tpu.pipeline_mode<synchronous>, transform_indices = @transform_5, window_bounds = array<i64: 640, 512>}, {transform_indices = @transform_6, window_bounds = array<i64: 1, 1, 128>}]} {
    %c0 = arith.constant 0 : index
    %c0_0 = arith.constant 0 : index
    %0 = vector.load %arg1[%c0, %c0_0] : memref<16x128xf32, #tpu.memory_space<vmem>>, vector<16x128xf32>
    %1 = tpu.iota {dimensions = array<i32: 0>} : vector<16x16xi32>
    %2 = tpu.iota {dimensions = array<i32: 1>} : vector<16x16xi32>
    %c1_i32 = arith.constant 1 : i32
    %3 = vector.broadcast %c1_i32 : i32 to vector<16x16xi32>
    %4 = arith.subi %1, %3 : vector<16x16xi32>
    %5 = arith.cmpi eq, %2, %4 : vector<16x16xi32>
    %6 = arith.extui %5 : vector<16x16xi1> to vector<16x16xi32>
    %7 = arith.sitofp %6 : vector<16x16xi32> to vector<16x16xf32>
    %cst = arith.constant dense<0.000000e+00> : vector<16x128xf32>
    %8 = tpu.matmul %7, %0, %cst {dimension_numbers = #tpu.dot_dimension_numbers<[1], [0], [0], [1], [0, 0, 1, 1], [], []>} : vector<16x16xf32>, vector<16x128xf32>, vector<16x128xf32> -> vector<16x128xf32>
    %c1_i32_1 = arith.constant 1 : i32
    %9 = vector.broadcast %c1_i32_1 : i32 to vector<16x16xi32>
    %10 = arith.addi %1, %9 : vector<16x16xi32>
    %11 = arith.cmpi eq, %2, %10 : vector<16x16xi32>
    %12 = arith.extui %11 : vector<16x16xi1> to vector<16x16xi32>
    %13 = arith.sitofp %12 : vector<16x16xi32> to vector<16x16xf32>
    %cst_2 = arith.constant dense<0.000000e+00> : vector<16x128xf32>
    %14 = tpu.matmul %13, %0, %cst_2 {dimension_numbers = #tpu.dot_dimension_numbers<[1], [0], [0], [1], [0, 0, 1, 1], [], []>} : vector<16x16xf32>, vector<16x128xf32>, vector<16x128xf32> -> vector<16x128xf32>
    %15 = tpu.concatenate %8, %0, %14 in 1 : vector<16x128xf32>, vector<16x128xf32>, vector<16x128xf32> -> vector<16x384xf32>
    %c0_3 = arith.constant 0 : index
    %c0_4 = arith.constant 0 : index
    %16 = vector.load %arg5[%c0_3, %c0_4] : memref<768x256xbf16, #tpu.memory_space<vmem>>, vector<384x256xbf16>
    %17 = arith.truncf %15 : vector<16x384xf32> to vector<16x384xbf16>
    %cst_5 = arith.constant dense<0.000000e+00> : vector<16x256xf32>
    %18 = tpu.matmul %17, %16, %cst_5 {dimension_numbers = #tpu.dot_dimension_numbers<[1], [0], [0], [1], [0, 0, 1, 1], [], []>} : vector<16x384xbf16>, vector<384x256xbf16>, vector<16x256xf32> -> vector<16x256xf32>
    %c0_6 = arith.constant 0 : index
    %c0_7 = arith.constant 0 : index
    %19 = vector.load %arg3[%c0_6, %c0_7] : memref<40x512xf32, #tpu.memory_space<vmem>>, vector<1x256xf32>
    %c1 = arith.constant 1 : index
    %c0_8 = arith.constant 0 : index
    %20 = vector.load %arg3[%c1, %c0_8] : memref<40x512xf32, #tpu.memory_space<vmem>>, vector<1x256xf32>
    %21 = vector.broadcast %19 : vector<1x256xf32> to vector<16x256xf32>
    %22 = arith.mulf %18, %21 : vector<16x256xf32>
    %23 = vector.broadcast %20 : vector<1x256xf32> to vector<16x256xf32>
    %24 = arith.addf %22, %23 : vector<16x256xf32>
    %cst_9 = arith.constant 0.000000e+00 : f32
    %25 = vector.broadcast %cst_9 : f32 to vector<16x256xf32>
    %26 = arith.maximumf %24, %25 : vector<16x256xf32>
    %c0_10 = arith.constant 0 : index
    %c0_11 = arith.constant 0 : index
    %27 = vector.load %arg6[%c0_10, %c0_11] : memref<640x512xbf16, #tpu.memory_space<vmem>>, vector<256x512xbf16>
    %28 = arith.truncf %26 : vector<16x256xf32> to vector<16x256xbf16>
    %cst_12 = arith.constant dense<0.000000e+00> : vector<16x512xf32>
    %29 = tpu.matmul %28, %27, %cst_12 {dimension_numbers = #tpu.dot_dimension_numbers<[1], [0], [0], [1], [0, 0, 1, 1], [], []>} : vector<16x256xbf16>, vector<256x512xbf16>, vector<16x512xf32> -> vector<16x512xf32>
    %c2 = arith.constant 2 : index
    %c0_13 = arith.constant 0 : index
    %30 = vector.load %arg3[%c2, %c0_13] : memref<40x512xf32, #tpu.memory_space<vmem>>, vector<1x512xf32>
    %c3 = arith.constant 3 : index
    %c0_14 = arith.constant 0 : index
    %31 = vector.load %arg3[%c3, %c0_14] : memref<40x512xf32, #tpu.memory_space<vmem>>, vector<1x512xf32>
    %32 = vector.broadcast %30 : vector<1x512xf32> to vector<16x512xf32>
    %33 = arith.mulf %29, %32 : vector<16x512xf32>
    %34 = vector.broadcast %31 : vector<1x512xf32> to vector<16x512xf32>
    %35 = arith.addf %33, %34 : vector<16x512xf32>
    %cst_15 = arith.constant 0.000000e+00 : f32
    %36 = vector.broadcast %cst_15 : f32 to vector<16x512xf32>
    %37 = arith.maximumf %35, %36 : vector<16x512xf32>
    %38 = tpu.iota {dimensions = array<i32: 0>} : vector<16x16xi32>
    %39 = tpu.iota {dimensions = array<i32: 1>} : vector<16x16xi32>
    %c1_i32_16 = arith.constant 1 : i32
    %40 = vector.broadcast %c1_i32_16 : i32 to vector<16x16xi32>
    %41 = arith.subi %38, %40 : vector<16x16xi32>
    %42 = arith.cmpi eq, %39, %41 : vector<16x16xi32>
    %43 = arith.extui %42 : vector<16x16xi1> to vector<16x16xi32>
    %44 = arith.sitofp %43 : vector<16x16xi32> to vector<16x16xf32>
    %cst_17 = arith.constant dense<0.000000e+00> : vector<16x512xf32>
    %45 = tpu.matmul %44, %37, %cst_17 {dimension_numbers = #tpu.dot_dimension_numbers<[1], [0], [0], [1], [0, 0, 1, 1], [], []>} : vector<16x16xf32>, vector<16x512xf32>, vector<16x512xf32> -> vector<16x512xf32>
    %c1_i32_18 = arith.constant 1 : i32
    %46 = vector.broadcast %c1_i32_18 : i32 to vector<16x16xi32>
    %47 = arith.addi %38, %46 : vector<16x16xi32>
    %48 = arith.cmpi eq, %39, %47 : vector<16x16xi32>
    %49 = arith.extui %48 : vector<16x16xi1> to vector<16x16xi32>
    %50 = arith.sitofp %49 : vector<16x16xi32> to vector<16x16xf32>
    %cst_19 = arith.constant dense<0.000000e+00> : vector<16x512xf32>
    %51 = tpu.matmul %50, %37, %cst_19 {dimension_numbers = #tpu.dot_dimension_numbers<[1], [0], [0], [1], [0, 0, 1, 1], [], []>} : vector<16x16xf32>, vector<16x512xf32>, vector<16x512xf32> -> vector<16x512xf32>
    %52 = tpu.concatenate %45, %37, %51 in 1 : vector<16x512xf32>, vector<16x512xf32>, vector<16x512xf32> -> vector<16x1536xf32>
    %c0_20 = arith.constant 0 : index
    %c0_21 = arith.constant 0 : index
    %53 = vector.load %arg4[%c0_20, %c0_21] : memref<7680x128xbf16, #tpu.memory_space<vmem>>, vector<1536x128xbf16>
    %54 = arith.truncf %52 : vector<16x1536xf32> to vector<16x1536xbf16>
    %cst_22 = arith.constant dense<0.000000e+00> : vector<16x128xf32>
    %55 = tpu.matmul %54, %53, %cst_22 {dimension_numbers = #tpu.dot_dimension_numbers<[1], [0], [0], [1], [0, 0, 1, 1], [], []>} : vector<16x1536xbf16>, vector<1536x128xbf16>, vector<16x128xf32> -> vector<16x128xf32>
    %56 = tpu.concatenate %18, %55 in 1 : vector<16x256xf32>, vector<16x128xf32> -> vector<16x384xf32>
    %c4 = arith.constant 4 : index
    %c0_23 = arith.constant 0 : index
    %57 = vector.load %arg3[%c4, %c0_23] : memref<40x512xf32, #tpu.memory_space<vmem>>, vector<1x384xf32>
    %c5 = arith.constant 5 : index
    %c0_24 = arith.constant 0 : index
    %58 = vector.load %arg3[%c5, %c0_24] : memref<40x512xf32, #tpu.memory_space<vmem>>, vector<1x384xf32>
    %59 = vector.broadcast %57 : vector<1x384xf32> to vector<16x384xf32>
    %60 = arith.mulf %56, %59 : vector<16x384xf32>
    %61 = vector.broadcast %58 : vector<1x384xf32> to vector<16x384xf32>
    %62 = arith.addf %60, %61 : vector<16x384xf32>
    %cst_25 = arith.constant 0.000000e+00 : f32
    %63 = vector.broadcast %cst_25 : f32 to vector<16x384xf32>
    %64 = arith.maximumf %62, %63 : vector<16x384xf32>
    %c256 = arith.constant 256 : index
    %c0_26 = arith.constant 0 : index
    %65 = vector.load %arg6[%c256, %c0_26] : memref<640x512xbf16, #tpu.memory_space<vmem>>, vector<384x512xbf16>
    %66 = arith.truncf %64 : vector<16x384xf32> to vector<16x384xbf16>
    %cst_27 = arith.constant dense<0.000000e+00> : vector<16x512xf32>
    %67 = tpu.matmul %66, %65, %cst_27 {dimension_numbers = #tpu.dot_dimension_numbers<[1], [0], [0], [1], [0, 0, 1, 1], [], []>} : vector<16x384xbf16>, vector<384x512xbf16>, vector<16x512xf32> -> vector<16x512xf32>
    %c6 = arith.constant 6 : index
    %c0_28 = arith.constant 0 : index
    %68 = vector.load %arg3[%c6, %c0_28] : memref<40x512xf32, #tpu.memory_space<vmem>>, vector<1x512xf32>
    %c7 = arith.constant 7 : index
    %c0_29 = arith.constant 0 : index
    %69 = vector.load %arg3[%c7, %c0_29] : memref<40x512xf32, #tpu.memory_space<vmem>>, vector<1x512xf32>
    %70 = vector.broadcast %68 : vector<1x512xf32> to vector<16x512xf32>
    %71 = arith.mulf %67, %70 : vector<16x512xf32>
    %72 = vector.broadcast %69 : vector<1x512xf32> to vector<16x512xf32>
    %73 = arith.addf %71, %72 : vector<16x512xf32>
    %cst_30 = arith.constant 0.000000e+00 : f32
    %74 = vector.broadcast %cst_30 : f32 to vector<16x512xf32>
    %75 = arith.maximumf %73, %74 : vector<16x512xf32>
    %76 = tpu.iota {dimensions = array<i32: 0>} : vector<16x16xi32>
    %77 = tpu.iota {dimensions = array<i32: 1>} : vector<16x16xi32>
    %c1_i32_31 = arith.constant 1 : i32
    %78 = vector.broadcast %c1_i32_31 : i32 to vector<16x16xi32>
    %79 = arith.subi %76, %78 : vector<16x16xi32>
    %80 = arith.cmpi eq, %77, %79 : vector<16x16xi32>
    %81 = arith.extui %80 : vector<16x16xi1> to vector<16x16xi32>
    %82 = arith.sitofp %81 : vector<16x16xi32> to vector<16x16xf32>
    %cst_32 = arith.constant dense<0.000000e+00> : vector<16x512xf32>
    %83 = tpu.matmul %82, %75, %cst_32 {dimension_numbers = #tpu.dot_dimension_numbers<[1], [0], [0], [1], [0, 0, 1, 1], [], []>} : vector<16x16xf32>, vector<16x512xf32>, vector<16x512xf32> -> vector<16x512xf32>
    %c1_i32_33 = arith.constant 1 : i32
    %84 = vector.broadcast %c1_i32_33 : i32 to vector<16x16xi32>
    %85 = arith.addi %76, %84 : vector<16x16xi32>
    %86 = arith.cmpi eq, %77, %85 : vector<16x16xi32>
    %87 = arith.extui %86 : vector<16x16xi1> to vector<16x16xi32>
    %88 = arith.sitofp %87 : vector<16x16xi32> to vector<16x16xf32>
    %cst_34 = arith.constant dense<0.000000e+00> : vector<16x512xf32>
    %89 = tpu.matmul %88, %75, %cst_34 {dimension_numbers = #tpu.dot_dimension_numbers<[1], [0], [0], [1], [0, 0, 1, 1], [], []>} : vector<16x16xf32>, vector<16x512xf32>, vector<16x512xf32> -> vector<16x512xf32>
    %90 = tpu.concatenate %83, %75, %89 in 1 : vector<16x512xf32>, vector<16x512xf32>, vector<16x512xf32> -> vector<16x1536xf32>
    %c1536 = arith.constant 1536 : index
    %c0_35 = arith.constant 0 : index
    %91 = vector.load %arg4[%c1536, %c0_35] : memref<7680x128xbf16, #tpu.memory_space<vmem>>, vector<1536x128xbf16>
    %92 = arith.truncf %90 : vector<16x1536xf32> to vector<16x1536xbf16>
    %cst_36 = arith.constant dense<0.000000e+00> : vector<16x128xf32>
    %93 = tpu.matmul %92, %91, %cst_36 {dimension_numbers = #tpu.dot_dimension_numbers<[1], [0], [0], [1], [0, 0, 1, 1], [], []>} : vector<16x1536xbf16>, vector<1536x128xbf16>, vector<16x128xf32> -> vector<16x128xf32>
    %94 = tpu.concatenate %56, %93 in 1 : vector<16x384xf32>, vector<16x128xf32> -> vector<16x512xf32>
    %c8 = arith.constant 8 : index
    %c0_37 = arith.constant 0 : index
    %95 = vector.load %arg3[%c8, %c0_37] : memref<40x512xf32, #tpu.memory_space<vmem>>, vector<1x512xf32>
    %c9 = arith.constant 9 : index
    %c0_38 = arith.constant 0 : index
    %96 = vector.load %arg3[%c9, %c0_38] : memref<40x512xf32, #tpu.memory_space<vmem>>, vector<1x512xf32>
    %97 = vector.broadcast %95 : vector<1x512xf32> to vector<16x512xf32>
    %98 = arith.mulf %94, %97 : vector<16x512xf32>
    %99 = vector.broadcast %96 : vector<1x512xf32> to vector<16x512xf32>
    %100 = arith.addf %98, %99 : vector<16x512xf32>
    %cst_39 = arith.constant 0.000000e+00 : f32
    %101 = vector.broadcast %cst_39 : f32 to vector<16x512xf32>
    %102 = arith.maximumf %100, %101 : vector<16x512xf32>
    %103 = tpu.iota {dimensions = array<i32: 0>} : vector<8x16xi32>
    %104 = tpu.iota {dimensions = array<i32: 1>} : vector<8x16xi32>
    %c2_i32 = arith.constant 2 : i32
    %105 = vector.broadcast %c2_i32 : i32 to vector<8x16xi32>
    %106 = arith.muli %105, %103 : vector<8x16xi32>
    %107 = arith.cmpi eq, %104, %106 : vector<8x16xi32>
    %c2_i32_40 = arith.constant 2 : i32
    %108 = vector.broadcast %c2_i32_40 : i32 to vector<8x16xi32>
    %109 = arith.muli %108, %103 : vector<8x16xi32>
    %c1_i32_41 = arith.constant 1 : i32
    %110 = vector.broadcast %c1_i32_41 : i32 to vector<8x16xi32>
    %111 = arith.addi %109, %110 : vector<8x16xi32>
    %112 = arith.cmpi eq, %104, %111 : vector<8x16xi32>
    %113 = arith.ori %107, %112 : vector<8x16xi1>
    %cst_42 = arith.constant 5.000000e-01 : f32
    %cst_43 = arith.constant 0.000000e+00 : f32
    %114 = vector.broadcast %cst_42 : f32 to vector<8x16xf32>
    %115 = vector.broadcast %cst_43 : f32 to vector<8x16xf32>
    %116 = arith.select %113, %114, %115 : vector<8x16xi1>, vector<8x16xf32>
    %cst_44 = arith.constant dense<0.000000e+00> : vector<8x512xf32>
    %117 = tpu.matmul %116, %102, %cst_44 {dimension_numbers = #tpu.dot_dimension_numbers<[1], [0], [0], [1], [0, 0, 1, 1], [], []>} : vector<8x16xf32>, vector<16x512xf32>, vector<8x512xf32> -> vector<8x512xf32>
    %c3072 = arith.constant 3072 : index
    %c0_45 = arith.constant 0 : index
    %118 = vector.load %arg4[%c3072, %c0_45] : memref<7680x128xbf16, #tpu.memory_space<vmem>>, vector<512x128xbf16>
    %119 = arith.truncf %117 : vector<8x512xf32> to vector<8x512xbf16>
    %cst_46 = arith.constant dense<0.000000e+00> : vector<8x128xf32>
    %120 = tpu.matmul %119, %118, %cst_46 {dimension_numbers = #tpu.dot_dimension_numbers<[1], [0], [0], [1], [0, 0, 1, 1], [], []>} : vector<8x512xbf16>, vector<512x128xbf16>, vector<8x128xf32> -> vector<8x128xf32>
    %c10 = arith.constant 10 : index
    %c0_47 = arith.constant 0 : index
    %121 = vector.load %arg3[%c10, %c0_47] : memref<40x512xf32, #tpu.memory_space<vmem>>, vector<1x128xf32>
    %c11 = arith.constant 11 : index
    %c0_48 = arith.constant 0 : index
    %122 = vector.load %arg3[%c11, %c0_48] : memref<40x512xf32, #tpu.memory_space<vmem>>, vector<1x128xf32>
    %123 = vector.broadcast %121 : vector<1x128xf32> to vector<8x128xf32>
    %124 = arith.mulf %120, %123 : vector<8x128xf32>
    %125 = vector.broadcast %122 : vector<1x128xf32> to vector<8x128xf32>
    %126 = arith.addf %124, %125 : vector<8x128xf32>
    %cst_49 = arith.constant 0.000000e+00 : f32
    %127 = vector.broadcast %cst_49 : f32 to vector<8x128xf32>
    %128 = arith.maximumf %126, %127 : vector<8x128xf32>
    %c384 = arith.constant 384 : index
    %c0_50 = arith.constant 0 : index
    %129 = vector.load %arg5[%c384, %c0_50] : memref<768x256xbf16, #tpu.memory_space<vmem>>, vector<128x256xbf16>
    %130 = arith.truncf %128 : vector<8x128xf32> to vector<8x128xbf16>
    %cst_51 = arith.constant dense<0.000000e+00> : vector<8x256xf32>
    %131 = tpu.matmul %130, %129, %cst_51 {dimension_numbers = #tpu.dot_dimension_numbers<[1], [0], [0], [1], [0, 0, 1, 1], [], []>} : vector<8x128xbf16>, vector<128x256xbf16>, vector<8x256xf32> -> vector<8x256xf32>
    %c12 = arith.constant 12 : index
    %c0_52 = arith.constant 0 : index
    %132 = vector.load %arg3[%c12, %c0_52] : memref<40x512xf32, #tpu.memory_space<vmem>>, vector<1x256xf32>
    %c13 = arith.constant 13 : index
    %c0_53 = arith.constant 0 : index
    %133 = vector.load %arg3[%c13, %c0_53] : memref<40x512xf32, #tpu.memory_space<vmem>>, vector<1x256xf32>
    %134 = vector.broadcast %132 : vector<1x256xf32> to vector<8x256xf32>
    %135 = arith.mulf %131, %134 : vector<8x256xf32>
    %136 = vector.broadcast %133 : vector<1x256xf32> to vector<8x256xf32>
    %137 = arith.addf %135, %136 : vector<8x256xf32>
    %cst_54 = arith.constant 0.000000e+00 : f32
    %138 = vector.broadcast %cst_54 : f32 to vector<8x256xf32>
    %139 = arith.maximumf %137, %138 : vector<8x256xf32>
    %140 = tpu.iota {dimensions = array<i32: 0>} : vector<8x8xi32>
    %141 = tpu.iota {dimensions = array<i32: 1>} : vector<8x8xi32>
    %c1_i32_55 = arith.constant 1 : i32
    %142 = vector.broadcast %c1_i32_55 : i32 to vector<8x8xi32>
    %143 = arith.subi %140, %142 : vector<8x8xi32>
    %144 = arith.cmpi eq, %141, %143 : vector<8x8xi32>
    %145 = arith.extui %144 : vector<8x8xi1> to vector<8x8xi32>
    %146 = arith.sitofp %145 : vector<8x8xi32> to vector<8x8xf32>
    %cst_56 = arith.constant dense<0.000000e+00> : vector<8x256xf32>
    %147 = tpu.matmul %146, %139, %cst_56 {dimension_numbers = #tpu.dot_dimension_numbers<[1], [0], [0], [1], [0, 0, 1, 1], [], []>} : vector<8x8xf32>, vector<8x256xf32>, vector<8x256xf32> -> vector<8x256xf32>
    %c1_i32_57 = arith.constant 1 : i32
    %148 = vector.broadcast %c1_i32_57 : i32 to vector<8x8xi32>
    %149 = arith.addi %140, %148 : vector<8x8xi32>
    %150 = arith.cmpi eq, %141, %149 : vector<8x8xi32>
    %151 = arith.extui %150 : vector<8x8xi1> to vector<8x8xi32>
    %152 = arith.sitofp %151 : vector<8x8xi32> to vector<8x8xf32>
    %cst_58 = arith.constant dense<0.000000e+00> : vector<8x256xf32>
    %153 = tpu.matmul %152, %139, %cst_58 {dimension_numbers = #tpu.dot_dimension_numbers<[1], [0], [0], [1], [0, 0, 1, 1], [], []>} : vector<8x8xf32>, vector<8x256xf32>, vector<8x256xf32> -> vector<8x256xf32>
    %154 = tpu.concatenate %147, %139, %153 in 1 : vector<8x256xf32>, vector<8x256xf32>, vector<8x256xf32> -> vector<8x768xf32>
    %c3584 = arith.constant 3584 : index
    %c0_59 = arith.constant 0 : index
    %155 = vector.load %arg4[%c3584, %c0_59] : memref<7680x128xbf16, #tpu.memory_space<vmem>>, vector<768x128xbf16>
    %156 = arith.truncf %154 : vector<8x768xf32> to vector<8x768xbf16>
    %cst_60 = arith.constant dense<0.000000e+00> : vector<8x128xf32>
    %157 = tpu.matmul %156, %155, %cst_60 {dimension_numbers = #tpu.dot_dimension_numbers<[1], [0], [0], [1], [0, 0, 1, 1], [], []>} : vector<8x768xbf16>, vector<768x128xbf16>, vector<8x128xf32> -> vector<8x128xf32>
    %158 = tpu.concatenate %120, %157 in 1 : vector<8x128xf32>, vector<8x128xf32> -> vector<8x256xf32>
    %c14 = arith.constant 14 : index
    %c0_61 = arith.constant 0 : index
    %159 = vector.load %arg3[%c14, %c0_61] : memref<40x512xf32, #tpu.memory_space<vmem>>, vector<1x256xf32>
    %c15 = arith.constant 15 : index
    %c0_62 = arith.constant 0 : index
    %160 = vector.load %arg3[%c15, %c0_62] : memref<40x512xf32, #tpu.memory_space<vmem>>, vector<1x256xf32>
    %161 = vector.broadcast %159 : vector<1x256xf32> to vector<8x256xf32>
    %162 = arith.mulf %158, %161 : vector<8x256xf32>
    %163 = vector.broadcast %160 : vector<1x256xf32> to vector<8x256xf32>
    %164 = arith.addf %162, %163 : vector<8x256xf32>
    %cst_63 = arith.constant 0.000000e+00 : f32
    %165 = vector.broadcast %cst_63 : f32 to vector<8x256xf32>
    %166 = arith.maximumf %164, %165 : vector<8x256xf32>
    %c512 = arith.constant 512 : index
    %c0_64 = arith.constant 0 : index
    %167 = vector.load %arg5[%c512, %c0_64] : memref<768x256xbf16, #tpu.memory_space<vmem>>, vector<256x256xbf16>
    %168 = arith.truncf %166 : vector<8x256xf32> to vector<8x256xbf16>
    %cst_65 = arith.constant dense<0.000000e+00> : vector<8x256xf32>
    %169 = tpu.matmul %168, %167, %cst_65 {dimension_numbers = #tpu.dot_dimension_numbers<[1], [0], [0], [1], [0, 0, 1, 1], [], []>} : vector<8x256xbf16>, vector<256x256xbf16>, vector<8x256xf32> -> vector<8x256xf32>
    %c16 = arith.constant 16 : index
    %c0_66 = arith.constant 0 : index
    %170 = vector.load %arg3[%c16, %c0_66] : memref<40x512xf32, #tpu.memory_space<vmem>>, vector<1x256xf32>
    %c17 = arith.constant 17 : index
    %c0_67 = arith.constant 0 : index
    %171 = vector.load %arg3[%c17, %c0_67] : memref<40x512xf32, #tpu.memory_space<vmem>>, vector<1x256xf32>
    %172 = vector.broadcast %170 : vector<1x256xf32> to vector<8x256xf32>
    %173 = arith.mulf %169, %172 : vector<8x256xf32>
    %174 = vector.broadcast %171 : vector<1x256xf32> to vector<8x256xf32>
    %175 = arith.addf %173, %174 : vector<8x256xf32>
    %cst_68 = arith.constant 0.000000e+00 : f32
    %176 = vector.broadcast %cst_68 : f32 to vector<8x256xf32>
    %177 = arith.maximumf %175, %176 : vector<8x256xf32>
    %178 = tpu.iota {dimensions = array<i32: 0>} : vector<8x8xi32>
    %179 = tpu.iota {dimensions = array<i32: 1>} : vector<8x8xi32>
    %c1_i32_69 = arith.constant 1 : i32
    %180 = vector.broadcast %c1_i32_69 : i32 to vector<8x8xi32>
    %181 = arith.subi %178, %180 : vector<8x8xi32>
    %182 = arith.cmpi eq, %179, %181 : vector<8x8xi32>
    %183 = arith.extui %182 : vector<8x8xi1> to vector<8x8xi32>
    %184 = arith.sitofp %183 : vector<8x8xi32> to vector<8x8xf32>
    %cst_70 = arith.constant dense<0.000000e+00> : vector<8x256xf32>
    %185 = tpu.matmul %184, %177, %cst_70 {dimension_numbers = #tpu.dot_dimension_numbers<[1], [0], [0], [1], [0, 0, 1, 1], [], []>} : vector<8x8xf32>, vector<8x256xf32>, vector<8x256xf32> -> vector<8x256xf32>
    %c1_i32_71 = arith.constant 1 : i32
    %186 = vector.broadcast %c1_i32_71 : i32 to vector<8x8xi32>
    %187 = arith.addi %178, %186 : vector<8x8xi32>
    %188 = arith.cmpi eq, %179, %187 : vector<8x8xi32>
    %189 = arith.extui %188 : vector<8x8xi1> to vector<8x8xi32>
    %190 = arith.sitofp %189 : vector<8x8xi32> to vector<8x8xf32>
    %cst_72 = arith.constant dense<0.000000e+00> : vector<8x256xf32>
    %191 = tpu.matmul %190, %177, %cst_72 {dimension_numbers = #tpu.dot_dimension_numbers<[1], [0], [0], [1], [0, 0, 1, 1], [], []>} : vector<8x8xf32>, vector<8x256xf32>, vector<8x256xf32> -> vector<8x256xf32>
    %192 = tpu.concatenate %185, %177, %191 in 1 : vector<8x256xf32>, vector<8x256xf32>, vector<8x256xf32> -> vector<8x768xf32>
    %c4352 = arith.constant 4352 : index
    %c0_73 = arith.constant 0 : index
    %193 = vector.load %arg4[%c4352, %c0_73] : memref<7680x128xbf16, #tpu.memory_space<vmem>>, vector<768x128xbf16>
    %194 = arith.truncf %192 : vector<8x768xf32> to vector<8x768xbf16>
    %cst_74 = arith.constant dense<0.000000e+00> : vector<8x128xf32>
    %195 = tpu.matmul %194, %193, %cst_74 {dimension_numbers = #tpu.dot_dimension_numbers<[1], [0], [0], [1], [0, 0, 1, 1], [], []>} : vector<8x768xbf16>, vector<768x128xbf16>, vector<8x128xf32> -> vector<8x128xf32>
    %196 = tpu.concatenate %158, %195 in 1 : vector<8x256xf32>, vector<8x128xf32> -> vector<8x384xf32>
    %c18 = arith.constant 18 : index
    %c0_75 = arith.constant 0 : index
    %197 = vector.load %arg3[%c18, %c0_75] : memref<40x512xf32, #tpu.memory_space<vmem>>, vector<1x384xf32>
    %c19 = arith.constant 19 : index
    %c0_76 = arith.constant 0 : index
    %198 = vector.load %arg3[%c19, %c0_76] : memref<40x512xf32, #tpu.memory_space<vmem>>, vector<1x384xf32>
    %199 = vector.broadcast %197 : vector<1x384xf32> to vector<8x384xf32>
    %200 = arith.mulf %196, %199 : vector<8x384xf32>
    %201 = vector.broadcast %198 : vector<1x384xf32> to vector<8x384xf32>
    %202 = arith.addf %200, %201 : vector<8x384xf32>
    %cst_77 = arith.constant 0.000000e+00 : f32
    %203 = vector.broadcast %cst_77 : f32 to vector<8x384xf32>
    %204 = arith.maximumf %202, %203 : vector<8x384xf32>
    %205 = tpu.iota {dimensions = array<i32: 0>} : vector<4x8xi32>
    %206 = tpu.iota {dimensions = array<i32: 1>} : vector<4x8xi32>
    %c2_i32_78 = arith.constant 2 : i32
    %207 = vector.broadcast %c2_i32_78 : i32 to vector<4x8xi32>
    %208 = arith.muli %207, %205 : vector<4x8xi32>
    %209 = arith.cmpi eq, %206, %208 : vector<4x8xi32>
    %c2_i32_79 = arith.constant 2 : i32
    %210 = vector.broadcast %c2_i32_79 : i32 to vector<4x8xi32>
    %211 = arith.muli %210, %205 : vector<4x8xi32>
    %c1_i32_80 = arith.constant 1 : i32
    %212 = vector.broadcast %c1_i32_80 : i32 to vector<4x8xi32>
    %213 = arith.addi %211, %212 : vector<4x8xi32>
    %214 = arith.cmpi eq, %206, %213 : vector<4x8xi32>
    %215 = arith.ori %209, %214 : vector<4x8xi1>
    %cst_81 = arith.constant 5.000000e-01 : f32
    %cst_82 = arith.constant 0.000000e+00 : f32
    %216 = vector.broadcast %cst_81 : f32 to vector<4x8xf32>
    %217 = vector.broadcast %cst_82 : f32 to vector<4x8xf32>
    %218 = arith.select %215, %216, %217 : vector<4x8xi1>, vector<4x8xf32>
    %cst_83 = arith.constant dense<0.000000e+00> : vector<4x384xf32>
    %219 = tpu.matmul %218, %204, %cst_83 {dimension_numbers = #tpu.dot_dimension_numbers<[1], [0], [0], [1], [0, 0, 1, 1], [], []>} : vector<4x8xf32>, vector<8x384xf32>, vector<4x384xf32> -> vector<4x384xf32>
    %c5120 = arith.constant 5120 : index
    %c0_84 = arith.constant 0 : index
    %220 = vector.load %arg4[%c5120, %c0_84] : memref<7680x128xbf16, #tpu.memory_space<vmem>>, vector<384x128xbf16>
    %221 = arith.truncf %219 : vector<4x384xf32> to vector<4x384xbf16>
    %cst_85 = arith.constant dense<0.000000e+00> : vector<4x128xf32>
    %222 = tpu.matmul %221, %220, %cst_85 {dimension_numbers = #tpu.dot_dimension_numbers<[1], [0], [0], [1], [0, 0, 1, 1], [], []>} : vector<4x384xbf16>, vector<384x128xbf16>, vector<4x128xf32> -> vector<4x128xf32>
    %c20 = arith.constant 20 : index
    %c0_86 = arith.constant 0 : index
    %223 = vector.load %arg3[%c20, %c0_86] : memref<40x512xf32, #tpu.memory_space<vmem>>, vector<1x128xf32>
    %c21 = arith.constant 21 : index
    %c0_87 = arith.constant 0 : index
    %224 = vector.load %arg3[%c21, %c0_87] : memref<40x512xf32, #tpu.memory_space<vmem>>, vector<1x128xf32>
    %225 = vector.broadcast %223 : vector<1x128xf32> to vector<4x128xf32>
    %226 = arith.mulf %222, %225 : vector<4x128xf32>
    %227 = vector.broadcast %224 : vector<1x128xf32> to vector<4x128xf32>
    %228 = arith.addf %226, %227 : vector<4x128xf32>
    %cst_88 = arith.constant 0.000000e+00 : f32
    %229 = vector.broadcast %cst_88 : f32 to vector<4x128xf32>
    %230 = arith.maximumf %228, %229 : vector<4x128xf32>
    %c5504 = arith.constant 5504 : index
    %c0_89 = arith.constant 0 : index
    %231 = vector.load %arg4[%c5504, %c0_89] : memref<7680x128xbf16, #tpu.memory_space<vmem>>, vector<128x128xbf16>
    %232 = arith.truncf %230 : vector<4x128xf32> to vector<4x128xbf16>
    %cst_90 = arith.constant dense<0.000000e+00> : vector<4x128xf32>
    %233 = tpu.matmul %232, %231, %cst_90 {dimension_numbers = #tpu.dot_dimension_numbers<[1], [0], [0], [1], [0, 0, 1, 1], [], []>} : vector<4x128xbf16>, vector<128x128xbf16>, vector<4x128xf32> -> vector<4x128xf32>
    %c22 = arith.constant 22 : index
    %c0_91 = arith.constant 0 : index
    %234 = vector.load %arg3[%c22, %c0_91] : memref<40x512xf32, #tpu.memory_space<vmem>>, vector<1x128xf32>
    %c23 = arith.constant 23 : index
    %c0_92 = arith.constant 0 : index
    %235 = vector.load %arg3[%c23, %c0_92] : memref<40x512xf32, #tpu.memory_space<vmem>>, vector<1x128xf32>
    %236 = vector.broadcast %234 : vector<1x128xf32> to vector<4x128xf32>
    %237 = arith.mulf %233, %236 : vector<4x128xf32>
    %238 = vector.broadcast %235 : vector<1x128xf32> to vector<4x128xf32>
    %239 = arith.addf %237, %238 : vector<4x128xf32>
    %cst_93 = arith.constant 0.000000e+00 : f32
    %240 = vector.broadcast %cst_93 : f32 to vector<4x128xf32>
    %241 = arith.maximumf %239, %240 : vector<4x128xf32>
    %242 = tpu.iota {dimensions = array<i32: 0>} : vector<4x4xi32>
    %243 = tpu.iota {dimensions = array<i32: 1>} : vector<4x4xi32>
    %c1_i32_94 = arith.constant 1 : i32
    %244 = vector.broadcast %c1_i32_94 : i32 to vector<4x4xi32>
    %245 = arith.subi %242, %244 : vector<4x4xi32>
    %246 = arith.cmpi eq, %243, %245 : vector<4x4xi32>
    %247 = arith.extui %246 : vector<4x4xi1> to vector<4x4xi32>
    %248 = arith.sitofp %247 : vector<4x4xi32> to vector<4x4xf32>
    %cst_95 = arith.constant dense<0.000000e+00> : vector<4x128xf32>
    %249 = tpu.matmul %248, %241, %cst_95 {dimension_numbers = #tpu.dot_dimension_numbers<[1], [0], [0], [1], [0, 0, 1, 1], [], []>} : vector<4x4xf32>, vector<4x128xf32>, vector<4x128xf32> -> vector<4x128xf32>
    %c1_i32_96 = arith.constant 1 : i32
    %250 = vector.broadcast %c1_i32_96 : i32 to vector<4x4xi32>
    %251 = arith.addi %242, %250 : vector<4x4xi32>
    %252 = arith.cmpi eq, %243, %251 : vector<4x4xi32>
    %253 = arith.extui %252 : vector<4x4xi1> to vector<4x4xi32>
    %254 = arith.sitofp %253 : vector<4x4xi32> to vector<4x4xf32>
    %cst_97 = arith.constant dense<0.000000e+00> : vector<4x128xf32>
    %255 = tpu.matmul %254, %241, %cst_97 {dimension_numbers = #tpu.dot_dimension_numbers<[1], [0], [0], [1], [0, 0, 1, 1], [], []>} : vector<4x4xf32>, vector<4x128xf32>, vector<4x128xf32> -> vector<4x128xf32>
    %256 = tpu.concatenate %249, %241, %255 in 1 : vector<4x128xf32>, vector<4x128xf32>, vector<4x128xf32> -> vector<4x384xf32>
    %c5632 = arith.constant 5632 : index
    %c0_98 = arith.constant 0 : index
    %257 = vector.load %arg4[%c5632, %c0_98] : memref<7680x128xbf16, #tpu.memory_space<vmem>>, vector<384x128xbf16>
    %258 = arith.truncf %256 : vector<4x384xf32> to vector<4x384xbf16>
    %cst_99 = arith.constant dense<0.000000e+00> : vector<4x128xf32>
    %259 = tpu.matmul %258, %257, %cst_99 {dimension_numbers = #tpu.dot_dimension_numbers<[1], [0], [0], [1], [0, 0, 1, 1], [], []>} : vector<4x384xbf16>, vector<384x128xbf16>, vector<4x128xf32> -> vector<4x128xf32>
    %260 = tpu.concatenate %222, %259 in 1 : vector<4x128xf32>, vector<4x128xf32> -> vector<4x256xf32>
    %c24 = arith.constant 24 : index
    %c0_100 = arith.constant 0 : index
    %261 = vector.load %arg3[%c24, %c0_100] : memref<40x512xf32, #tpu.memory_space<vmem>>, vector<1x256xf32>
    %c25 = arith.constant 25 : index
    %c0_101 = arith.constant 0 : index
    %262 = vector.load %arg3[%c25, %c0_101] : memref<40x512xf32, #tpu.memory_space<vmem>>, vector<1x256xf32>
    %263 = vector.broadcast %261 : vector<1x256xf32> to vector<4x256xf32>
    %264 = arith.mulf %260, %263 : vector<4x256xf32>
    %265 = vector.broadcast %262 : vector<1x256xf32> to vector<4x256xf32>
    %266 = arith.addf %264, %265 : vector<4x256xf32>
    %cst_102 = arith.constant 0.000000e+00 : f32
    %267 = vector.broadcast %cst_102 : f32 to vector<4x256xf32>
    %268 = arith.maximumf %266, %267 : vector<4x256xf32>
    %c6016 = arith.constant 6016 : index
    %c0_103 = arith.constant 0 : index
    %269 = vector.load %arg4[%c6016, %c0_103] : memref<7680x128xbf16, #tpu.memory_space<vmem>>, vector<256x128xbf16>
    %270 = arith.truncf %268 : vector<4x256xf32> to vector<4x256xbf16>
    %cst_104 = arith.constant dense<0.000000e+00> : vector<4x128xf32>
    %271 = tpu.matmul %270, %269, %cst_104 {dimension_numbers = #tpu.dot_dimension_numbers<[1], [0], [0], [1], [0, 0, 1, 1], [], []>} : vector<4x256xbf16>, vector<256x128xbf16>, vector<4x128xf32> -> vector<4x128xf32>
    %c26 = arith.constant 26 : index
    %c0_105 = arith.constant 0 : index
    %272 = vector.load %arg3[%c26, %c0_105] : memref<40x512xf32, #tpu.memory_space<vmem>>, vector<1x128xf32>
    %c27 = arith.constant 27 : index
    %c0_106 = arith.constant 0 : index
    %273 = vector.load %arg3[%c27, %c0_106] : memref<40x512xf32, #tpu.memory_space<vmem>>, vector<1x128xf32>
    %274 = vector.broadcast %272 : vector<1x128xf32> to vector<4x128xf32>
    %275 = arith.mulf %271, %274 : vector<4x128xf32>
    %276 = vector.broadcast %273 : vector<1x128xf32> to vector<4x128xf32>
    %277 = arith.addf %275, %276 : vector<4x128xf32>
    %cst_107 = arith.constant 0.000000e+00 : f32
    %278 = vector.broadcast %cst_107 : f32 to vector<4x128xf32>
    %279 = arith.maximumf %277, %278 : vector<4x128xf32>
    %280 = tpu.iota {dimensions = array<i32: 0>} : vector<4x4xi32>
    %281 = tpu.iota {dimensions = array<i32: 1>} : vector<4x4xi32>
    %c1_i32_108 = arith.constant 1 : i32
    %282 = vector.broadcast %c1_i32_108 : i32 to vector<4x4xi32>
    %283 = arith.subi %280, %282 : vector<4x4xi32>
    %284 = arith.cmpi eq, %281, %283 : vector<4x4xi32>
    %285 = arith.extui %284 : vector<4x4xi1> to vector<4x4xi32>
    %286 = arith.sitofp %285 : vector<4x4xi32> to vector<4x4xf32>
    %cst_109 = arith.constant dense<0.000000e+00> : vector<4x128xf32>
    %287 = tpu.matmul %286, %279, %cst_109 {dimension_numbers = #tpu.dot_dimension_numbers<[1], [0], [0], [1], [0, 0, 1, 1], [], []>} : vector<4x4xf32>, vector<4x128xf32>, vector<4x128xf32> -> vector<4x128xf32>
    %c1_i32_110 = arith.constant 1 : i32
    %288 = vector.broadcast %c1_i32_110 : i32 to vector<4x4xi32>
    %289 = arith.addi %280, %288 : vector<4x4xi32>
    %290 = arith.cmpi eq, %281, %289 : vector<4x4xi32>
    %291 = arith.extui %290 : vector<4x4xi1> to vector<4x4xi32>
    %292 = arith.sitofp %291 : vector<4x4xi32> to vector<4x4xf32>
    %cst_111 = arith.constant dense<0.000000e+00> : vector<4x128xf32>
    %293 = tpu.matmul %292, %279, %cst_111 {dimension_numbers = #tpu.dot_dimension_numbers<[1], [0], [0], [1], [0, 0, 1, 1], [], []>} : vector<4x4xf32>, vector<4x128xf32>, vector<4x128xf32> -> vector<4x128xf32>
    %294 = tpu.concatenate %287, %279, %293 in 1 : vector<4x128xf32>, vector<4x128xf32>, vector<4x128xf32> -> vector<4x384xf32>
    %c6272 = arith.constant 6272 : index
    %c0_112 = arith.constant 0 : index
    %295 = vector.load %arg4[%c6272, %c0_112] : memref<7680x128xbf16, #tpu.memory_space<vmem>>, vector<384x128xbf16>
    %296 = arith.truncf %294 : vector<4x384xf32> to vector<4x384xbf16>
    %cst_113 = arith.constant dense<0.000000e+00> : vector<4x128xf32>
    %297 = tpu.matmul %296, %295, %cst_113 {dimension_numbers = #tpu.dot_dimension_numbers<[1], [0], [0], [1], [0, 0, 1, 1], [], []>} : vector<4x384xbf16>, vector<384x128xbf16>, vector<4x128xf32> -> vector<4x128xf32>
    %298 = tpu.concatenate %260, %297 in 1 : vector<4x256xf32>, vector<4x128xf32> -> vector<4x384xf32>
    %c28 = arith.constant 28 : index
    %c0_114 = arith.constant 0 : index
    %299 = vector.load %arg3[%c28, %c0_114] : memref<40x512xf32, #tpu.memory_space<vmem>>, vector<1x384xf32>
    %c29 = arith.constant 29 : index
    %c0_115 = arith.constant 0 : index
    %300 = vector.load %arg3[%c29, %c0_115] : memref<40x512xf32, #tpu.memory_space<vmem>>, vector<1x384xf32>
    %301 = vector.broadcast %299 : vector<1x384xf32> to vector<4x384xf32>
    %302 = arith.mulf %298, %301 : vector<4x384xf32>
    %303 = vector.broadcast %300 : vector<1x384xf32> to vector<4x384xf32>
    %304 = arith.addf %302, %303 : vector<4x384xf32>
    %cst_116 = arith.constant 0.000000e+00 : f32
    %305 = vector.broadcast %cst_116 : f32 to vector<4x384xf32>
    %306 = arith.maximumf %304, %305 : vector<4x384xf32>
    %cst_117 = arith.constant dense<0.000000e+00> : vector<384xf32>
    %307 = vector.multi_reduction <add>, %306, %cst_117 [0] : vector<4x384xf32> to vector<384xf32>
    %308 = vector.shape_cast %307 : vector<384xf32> to vector<1x384xf32>
    %cst_118 = arith.constant 4.000000e+00 : f32
    %309 = vector.broadcast %cst_118 : f32 to vector<1x384xf32>
    %310 = arith.divf %308, %309 : vector<1x384xf32>
    %c6656 = arith.constant 6656 : index
    %c0_119 = arith.constant 0 : index
    %311 = vector.load %arg4[%c6656, %c0_119] : memref<7680x128xbf16, #tpu.memory_space<vmem>>, vector<384x128xbf16>
    %312 = arith.truncf %310 : vector<1x384xf32> to vector<1x384xbf16>
    %cst_120 = arith.constant dense<0.000000e+00> : vector<1x128xf32>
    %313 = tpu.matmul %312, %311, %cst_120 {dimension_numbers = #tpu.dot_dimension_numbers<[1], [0], [0], [1], [0, 0, 1, 1], [], []>} : vector<1x384xbf16>, vector<384x128xbf16>, vector<1x128xf32> -> vector<1x128xf32>
    %c30 = arith.constant 30 : index
    %c0_121 = arith.constant 0 : index
    %314 = vector.load %arg3[%c30, %c0_121] : memref<40x512xf32, #tpu.memory_space<vmem>>, vector<1x128xf32>
    %315 = arith.addf %313, %314 : vector<1x128xf32>
    %c0_122 = arith.constant 0 : index
    %c0_123 = arith.constant 0 : index
    %c0_124 = arith.constant 0 : index
    %316 = vector.load %arg2[%c0_122, %c0_123, %c0_124] : memref<1x1x128xf32, #tpu.memory_space<vmem>>, vector<1x1x128xf32>
    %317 = vector.shape_cast %316 : vector<1x1x128xf32> to vector<1x128xf32>
    %c7040 = arith.constant 7040 : index
    %c0_125 = arith.constant 0 : index
    %318 = vector.load %arg4[%c7040, %c0_125] : memref<7680x128xbf16, #tpu.memory_space<vmem>>, vector<128x128xbf16>
    %319 = arith.truncf %317 : vector<1x128xf32> to vector<1x128xbf16>
    %cst_126 = arith.constant dense<0.000000e+00> : vector<1x128xf32>
    %320 = tpu.matmul %319, %318, %cst_126 {dimension_numbers = #tpu.dot_dimension_numbers<[1], [0], [0], [1], [0, 0, 1, 1], [], []>} : vector<1x128xbf16>, vector<128x128xbf16>, vector<1x128xf32> -> vector<1x128xf32>
    %c31 = arith.constant 31 : index
    %c0_127 = arith.constant 0 : index
    %321 = vector.load %arg3[%c31, %c0_127] : memref<40x512xf32, #tpu.memory_space<vmem>>, vector<1x128xf32>
    %322 = arith.addf %320, %321 : vector<1x128xf32>
    %cst_128 = arith.constant 0.000000e+00 : f32
    %323 = vector.broadcast %cst_128 : f32 to vector<1x128xf32>
    %324 = arith.maximumf %322, %323 : vector<1x128xf32>
    %c7168 = arith.constant 7168 : index
    %c0_129 = arith.constant 0 : index
    %325 = vector.load %arg4[%c7168, %c0_129] : memref<7680x128xbf16, #tpu.memory_space<vmem>>, vector<128x128xbf16>
    %326 = arith.truncf %324 : vector<1x128xf32> to vector<1x128xbf16>
    %cst_130 = arith.constant dense<0.000000e+00> : vector<1x128xf32>
    %327 = tpu.matmul %326, %325, %cst_130 {dimension_numbers = #tpu.dot_dimension_numbers<[1], [0], [0], [1], [0, 0, 1, 1], [], []>} : vector<1x128xbf16>, vector<128x128xbf16>, vector<1x128xf32> -> vector<1x128xf32>
    %c32 = arith.constant 32 : index
    %c0_131 = arith.constant 0 : index
    %328 = vector.load %arg3[%c32, %c0_131] : memref<40x512xf32, #tpu.memory_space<vmem>>, vector<1x128xf32>
    %329 = arith.addf %327, %328 : vector<1x128xf32>
    %c7296 = arith.constant 7296 : index
    %c0_132 = arith.constant 0 : index
    %330 = vector.load %arg4[%c7296, %c0_132] : memref<7680x128xbf16, #tpu.memory_space<vmem>>, vector<128x128xbf16>
    %331 = arith.truncf %324 : vector<1x128xf32> to vector<1x128xbf16>
    %cst_133 = arith.constant dense<0.000000e+00> : vector<1x128xf32>
    %332 = tpu.matmul %331, %330, %cst_133 {dimension_numbers = #tpu.dot_dimension_numbers<[1], [0], [0], [1], [0, 0, 1, 1], [], []>} : vector<1x128xbf16>, vector<128x128xbf16>, vector<1x128xf32> -> vector<1x128xf32>
    %c33 = arith.constant 33 : index
    %c0_134 = arith.constant 0 : index
    %333 = vector.load %arg3[%c33, %c0_134] : memref<40x512xf32, #tpu.memory_space<vmem>>, vector<1x128xf32>
    %334 = arith.addf %332, %333 : vector<1x128xf32>
    %335 = arith.mulf %329, %315 : vector<1x128xf32>
    %336 = arith.addf %335, %334 : vector<1x128xf32>
    %c7424 = arith.constant 7424 : index
    %c0_135 = arith.constant 0 : index
    %337 = vector.load %arg4[%c7424, %c0_135] : memref<7680x128xbf16, #tpu.memory_space<vmem>>, vector<128x128xbf16>
    %338 = arith.truncf %336 : vector<1x128xf32> to vector<1x128xbf16>
    %cst_136 = arith.constant dense<0.000000e+00> : vector<1x128xf32>
    %339 = tpu.matmul %338, %337, %cst_136 {dimension_numbers = #tpu.dot_dimension_numbers<[1], [0], [0], [1], [0, 0, 1, 1], [], []>} : vector<1x128xbf16>, vector<128x128xbf16>, vector<1x128xf32> -> vector<1x128xf32>
    %c34 = arith.constant 34 : index
    %c0_137 = arith.constant 0 : index
    %340 = vector.load %arg3[%c34, %c0_137] : memref<40x512xf32, #tpu.memory_space<vmem>>, vector<1x128xf32>
    %341 = arith.addf %339, %340 : vector<1x128xf32>
    %cst_138 = arith.constant 0.000000e+00 : f32
    %342 = vector.broadcast %cst_138 : f32 to vector<1x128xf32>
    %343 = arith.maximumf %341, %342 : vector<1x128xf32>
    %c7552 = arith.constant 7552 : index
    %c0_139 = arith.constant 0 : index
    %344 = vector.load %arg4[%c7552, %c0_139] : memref<7680x128xbf16, #tpu.memory_space<vmem>>, vector<128x128xbf16>
    %345 = arith.truncf %343 : vector<1x128xf32> to vector<1x128xbf16>
    %cst_140 = arith.constant dense<0.000000e+00> : vector<1x128xf32>
    %346 = tpu.matmul %345, %344, %cst_140 {dimension_numbers = #tpu.dot_dimension_numbers<[1], [0], [0], [1], [0, 0, 1, 1], [], []>} : vector<1x128xbf16>, vector<128x128xbf16>, vector<1x128xf32> -> vector<1x128xf32>
    %c35 = arith.constant 35 : index
    %c0_141 = arith.constant 0 : index
    %347 = vector.load %arg3[%c35, %c0_141] : memref<40x512xf32, #tpu.memory_space<vmem>>, vector<1x128xf32>
    %348 = arith.addf %346, %347 : vector<1x128xf32>
    %349 = vector.shape_cast %348 : vector<1x128xf32> to vector<1x1x128xf32>
    %c0_142 = arith.constant 0 : index
    %c0_143 = arith.constant 0 : index
    %c0_144 = arith.constant 0 : index
    %350 = vector.load %arg7[%c0_142, %c0_143, %c0_144] : memref<1x1x128xf32, #tpu.memory_space<vmem>>, vector<1x1x128xf32>
    tpu.vector_store %arg7[%c0_142, %c0_143, %c0_144], %349 {strides = array<i32>} : memref<1x1x128xf32, #tpu.memory_space<vmem>>, vector<1x1x128xf32>,
    return
  }
  func.func @transform_0(%arg0: i32) -> (i32, i32) {
    %c0_i32 = arith.constant 0 : i32
    %c0_i32_0 = arith.constant 0 : i32
    return %arg0, %c0_i32 : i32, i32
  }
  func.func @transform_1(%arg0: i32) -> (i32, i32, i32) {
    %c0_i32 = arith.constant 0 : i32
    %c0_i32_0 = arith.constant 0 : i32
    %c0_i32_1 = arith.constant 0 : i32
    return %arg0, %c0_i32, %c0_i32_0 : i32, i32, i32
  }
  func.func @transform_2(%arg0: i32) -> (i32, i32) {
    %c0_i32 = arith.constant 0 : i32
    %c0_i32_0 = arith.constant 0 : i32
    %c0_i32_1 = arith.constant 0 : i32
    return %c0_i32, %c0_i32_0 : i32, i32
  }
  func.func @transform_3(%arg0: i32) -> (i32, i32) {
    %c0_i32 = arith.constant 0 : i32
    %c0_i32_0 = arith.constant 0 : i32
    %c0_i32_1 = arith.constant 0 : i32
    return %c0_i32, %c0_i32_0 : i32, i32
  }
  func.func @transform_4(%arg0: i32) -> (i32, i32) {
    %c0_i32 = arith.constant 0 : i32
    %c0_i32_0 = arith.constant 0 : i32
    %c0_i32_1 = arith.constant 0 : i32
    return %c0_i32, %c0_i32_0 : i32, i32
  }
  func.func @transform_5(%arg0: i32) -> (i32, i32) {
    %c0_i32 = arith.constant 0 : i32
    %c0_i32_0 = arith.constant 0 : i32
    %c0_i32_1 = arith.constant 0 : i32
    return %c0_i32, %c0_i32_0 : i32, i32
  }
  func.func @transform_6(%arg0: i32) -> (i32, i32, i32) {
    %c0_i32 = arith.constant 0 : i32
    %c0_i32_0 = arith.constant 0 : i32
    %c0_i32_1 = arith.constant 0 : i32
    return %arg0, %c0_i32, %c0_i32_0 : i32, i32, i32
  }
}

</mosaic_0001>

<bundles_post_ra>
// kernel: _lambda_.1
= control target key start
LH: loop header
LB: loop body
LE: loop exit
PB: predicated region body
PF: predicated region fallthrough
CT: control target
= control target key end

     0   :  { %s13635_s0 = inlined_call_operand.vmem [shape: f32[32,128], index: 0, kind: input, shape index: {}]   ;;  %s13636_s1 = inlined_call_operand.vmem [shape: f32[2,1,128], index: 1, kind: input, shape index: {}]   ;;  %s13637_s2 = inlined_call_operand.hbm [shape: f32[40,512], index: 2, kind: input, shape index: {}]   ;;  %s13638_s3 = inlined_call_operand.hbm [shape: bf16[7680,128], index: 3, kind: input, shape index: {}]   ;;  %s13639_s4 = inlined_call_operand.hbm [shape: bf16[768,256], index: 4, kind: input, shape index: {}]   ;;  %s13640_s5 = inlined_call_operand.hbm [shape: bf16[640,512], index: 5, kind: input, shape index: {}]   ;;  %s13641_s6 = inlined_call_operand.hbm [shape: f32[2,1,128], index: 6, kind: output, shape index: {}]  }
   0x1   :  { %13645 = sst [smem:[#allocation16_spill]] %s13638_s3 }
   0x2   :  { %11 = vsyncpa [#allocation3], 0 }
   0x3   :  { %12 = vsyncpa [#allocation6], 0 }
   0x4   :  { %13 = vsyncpa [#allocation9], 0 }
   0x5   :  { %14 = vsyncpa [#allocation4], 0 }
   0x6   :  { %16 = vsyncpa [#allocation4 + $0x1], 0  ;;  %s12930_s21 = smov 0   ;;  %s12932_s22 = smov 0  }
   0x7   :  { %s12934_s23 = smov 0   ;;  %s12936_s24 = smov 0  }
   0x8 LB: > { %s12951_s25 = sadd.s32 4294967295, %s12877_s24   ;;  %s9980_s26 = sadd.s32 4294967294, %s12877_s24   ;;  %s12877_s24 = sphi %s12936_s24, %s13666_s24   ;;  %s12873_s23 = sphi %s12934_s23, %s13665_s23   ;;  %s12869_s22 = sphi %s12932_s22, %s13664_s22   ;;  %s12865_s21 = sphi %s12930_s21, %s13663_s21  }
   0x9   : > { %s12955_s27 = sadd.s32 1, %s12877_s24   ;;  %s165_s28 = sadd.s32 1, %s12873_s23 }
   0xa   : > { %s162_s29 = ssub.s32 %s12877_s24, %s12955_s27  ;;  %p175_p0 = scmp.ne.s32.totalorder %s12873_s23, %s12869_s22 }
   0xb   : > { %p163_p1 = scmp.eq.s32.totalorder %s162_s29, 0  ;;  %p176_p2 = scmp.eq.s32.totalorder %s12951_s25, 1 }
   0xc   : > { %p181_p3 = scmp.ne.s32.totalorder %s12869_s22, %s12865_s21  ;;  %p182_p4 = scmp.eq.s32.totalorder %s9980_s26, 1 }
   0xd   : > { %s12966_s30 = scalar_select %p163_p1, %s12873_s23, %s165_s28  }
   0xe   : > { %p12968_p5 = por %p176_p2, %p175_p0  ;;  %p12972_p6 = por %p182_p4, %p181_p3 }
   0xf   : > { %13646 = sst [smem:[#allocation15_spill]] %s12966_s30  ;;  %p9981_p7 = scmp.ge.s32.totalorder %s12877_s24, 1 }
  0x10   : > { %s13647_s7 = scalar_select %p12968_p5, 1, 0 }
  0x11   : > { %s13648_s8 = scalar_select %p12972_p6, 1, 0 }
  0x12   : > { %p189_p8 = scmp.lt.s32.totalorder %s12877_s24, 3  ;;  %p13642_p9 = scmp.eq.s32.totalorder %s12951_s25, 0 }
  0x13   : > { %s12879_s10 = smov [#allocation5]   ;;  %s12880_s13 = smov [#allocation2]  }
  0x14   : > { %p12979_p10 = pnand %p9981_p7, %p189_p8  ;;  %s214_s11 = sshll.u32 %s12879_s10, 4  ;;  %s215_s11 = int_to_ptr.vmem [resolvable:$true] %s214_s11 }
  0x15   : > { %s201_s14 = sshll.u32 %s12880_s13, 4  ;;  %s13651_s3 = sld [smem:[#allocation16_spill]]  ;;  %s12991_s14 = int_to_ptr.vmem [resolvable:$true] %s201_s14 }
  0x16   : > { %s13649_s9 = scalar_select %p12979_p10, 1, 0 }
  0x17   : > { %p11750_p11 = pneg %p12979_p10 }
  0x19   : > { %p12987_p12 = pnand %p13642_p9, %p11750_p11 }
  0x1b   : > { %s12691_s17 = scalar_lea.hbm %s13651_s3, 61440  ;;  %p13001_p0 = pneg %p12987_p12 }
  0x1c   : > { %p12692_p13 = scmp.ne.s32.totalorder %s13651_s3, %s12691_s17  ;;  %p12698_p3 = scmp.lt.u32.totalorder %s12691_s17, %s13651_s3 }
  0x1e   : > { %p12694_p1 = pnand %p13001_p0, %p12692_p13 }
  0x20   : > { %p12695_p2 = pneg %p12694_p1 }
  0x22   : > { %p12700_p4 = pnand %p12698_p3, %p12695_p2 }
  0x24   : > { %12703 = shalt.err (!%p12700_p4)
}
  0x25   : > { %s12704_s29 = scalar_lea.vmem %s215_s11, 61440  ;;  %p12712_p9 = scmp.lt.s32.totalorder %s215_s11, %s215_s11 }
  0x26   : > { %p12705_p7 = scmp.ne.s32.totalorder %s215_s11, %s12704_s29  ;;  %p12713_p6 = scmp.lt.s32.totalorder %s12704_s29, %s12704_s29 }
  0x28   : > { %p12707_p8 = pnand %p12705_p7, %p13001_p0  ;;  %p12714_p5 = por %p12713_p6, %p12712_p9 }
  0x2a   : > { %p12708_p11 = pneg %p12707_p8 }
  0x2c   : > { %p12715_p10 = pnand %p12714_p5, %p12708_p11 }
  0x2e   : > { %12718 = shalt.err (!%p12715_p10)
}
  0x2f   : > { %s12881_s10 = smov 64   ;;  %s12882_s13 = smov 4  }
  0x30   : > { %11756 = dma.hbm_to_vmem [thread:$0]  (!%p12987_p12), %s13651_s3, 61440, %s215_s11, [#allocation6], %s12881_s10, %s12881_s10, %s12882_s13  }
  0x31   : > { %s12719_s19 = scalar_lea.hbm %s13637_s2, 2560 }
  0x32   : > { %p12720_p13 = scmp.ne.s32.totalorder %s13637_s2, %s12719_s19  ;;  %p12726_p9 = scmp.lt.u32.totalorder %s12719_s19, %s13637_s2 }
  0x34   : > { %p12722_p5 = pnand %p12720_p13, %p13001_p0 }
  0x36   : > { %p12723_p6 = pneg %p12722_p5 }
  0x38   : > { %p12728_p10 = pnand %p12726_p9, %p12723_p6 }
  0x3a   : > { %12731 = shalt.err (!%p12728_p10)
}
  0x3b   : > { %s12732_s11 = scalar_lea.vmem %s12991_s14, 2560  ;;  %p12740_p4 = scmp.lt.s32.totalorder %s12991_s14, %s12991_s14 }
  0x3c   : > { %p12733_p1 = scmp.ne.s32.totalorder %s12991_s14, %s12732_s11  ;;  %p12741_p7 = scmp.lt.s32.totalorder %s12732_s11, %s12732_s11 }
  0x3e   : > { %p12735_p2 = pnand %p12733_p1, %p13001_p0  ;;  %p12742_p8 = por %p12741_p7, %p12740_p4 }
  0x40   : > { %p12736_p3 = pneg %p12735_p2 }
  0x42   : > { %p12743_p11 = pnand %p12742_p8, %p12736_p3 }
  0x44   : > { %12746 = shalt.err (!%p12743_p11)
}
  0x45   : > { %s12883_s10 = smov 512   ;;  %s12884_s30 = smov 32  }
  0x46   : > { %11753 = dma.hbm_to_vmem [thread:$0]  (!%p12987_p12), %s13637_s2, 2560, %s12991_s14, [#allocation3], %s12883_s10, %s12883_s10, %s12884_s30  }
  0x47   : > { %s12885_s16 = smov [#allocation7]   ;;  %s12747_s26 = scalar_lea.hbm %s13639_s4, 12288 }
  0x48   : > { %s227_s17 = sshll.u32 %s12885_s16, 4  ;;  %p12748_p13 = scmp.ne.s32.totalorder %s13639_s4, %s12747_s26  ;;  %s228_s17 = int_to_ptr.vmem [resolvable:$true] %s227_s17 }
  0x49   : > { %p12754_p9 = scmp.lt.u32.totalorder %s12747_s26, %s13639_s4 }
  0x4a   : > { %p12750_p5 = pnand %p12748_p13, %p13001_p0 }
  0x4c   : > { %p12751_p6 = pneg %p12750_p5 }
  0x4e   : > { %p12756_p10 = pnand %p12754_p9, %p12751_p6 }
  0x50   : > { %12759 = shalt.err (!%p12756_p10)
}
  0x51   : > { %s12760_s14 = scalar_lea.vmem %s228_s17, 12288  ;;  %p12768_p4 = scmp.lt.s32.totalorder %s228_s17, %s228_s17 }
  0x52   : > { %p12761_p1 = scmp.ne.s32.totalorder %s228_s17, %s12760_s14  ;;  %p12769_p7 = scmp.lt.s32.totalorder %s12760_s14, %s12760_s14 }
  0x54   : > { %p12763_p2 = pnand %p12761_p1, %p13001_p0  ;;  %p12770_p8 = por %p12769_p7, %p12768_p4 }
  0x56   : > { %p12764_p3 = pneg %p12763_p2 }
  0x58   : > { %p12771_p11 = pnand %p12770_p8, %p12764_p3 }
  0x5a   : > { %12774 = shalt.err (!%p12771_p11)
}
  0x5b   : > { %s12886_s10 = smov 128   ;;  %s12887_s30 = smov 8  }
  0x5c   : > { %11759 = dma.hbm_to_vmem [thread:$0]  (!%p12987_p12), %s13639_s4, 12288, %s228_s17, [#allocation6], %s12886_s10, %s12886_s10, %s12887_s30  }
  0x5d   : > { %s12888_s15 = smov [#allocation8]   ;;  %s12775_s26 = scalar_lea.hbm %s13640_s5, 20480 }
  0x5e   : > { %s240_s16 = sshll.u32 %s12888_s15, 4  ;;  %p12776_p13 = scmp.ne.s32.totalorder %s13640_s5, %s12775_s26  ;;  %s241_s16 = int_to_ptr.vmem [resolvable:$true] %s240_s16 }
  0x5f   : > { %p12782_p9 = scmp.lt.u32.totalorder %s12775_s26, %s13640_s5 }
  0x60   : > { %p12778_p5 = pnand %p12776_p13, %p13001_p0 }
  0x62   : > { %p12779_p6 = pneg %p12778_p5 }
  0x64   : > { %p12784_p10 = pnand %p12782_p9, %p12779_p6 }
  0x66   : > { %12787 = shalt.err (!%p12784_p10)
}
  0x67   : > { %s12788_s17 = scalar_lea.vmem %s241_s16, 20480  ;;  %p12796_p4 = scmp.lt.s32.totalorder %s241_s16, %s241_s16 }
  0x68   : > { %p12789_p1 = scmp.ne.s32.totalorder %s241_s16, %s12788_s17  ;;  %p12797_p7 = scmp.lt.s32.totalorder %s12788_s17, %s12788_s17 }
  0x6a   : > { %p12791_p2 = pnand %p12789_p1, %p13001_p0  ;;  %p12798_p8 = por %p12797_p7, %p12796_p4 }
  0x6c   : > { %p12792_p3 = pneg %p12791_p2 }
  0x6e   : > { %p12799_p11 = pnand %p12798_p8, %p12792_p3 }
  0x70   : > { %12802 = shalt.err (!%p12799_p11)
}
  0x71   : > { %s12889_s10 = smov 256   ;;  %s12890_s30 = smov 16  }
  0x72   : > { %11762 = dma.hbm_to_vmem [thread:$0]  (!%p12987_p12), %s13640_s5, 20480, %s241_s16, [#allocation9], %s12889_s10, %s12889_s10, %s12890_s30  }
  0x73   : > { %p13653_p13 = scmp.ne.s32.totalorder %s13649_s9, 0 }
  0x74   : > { %p13654_p5 = scmp.eq.s32.totalorder (!%p13653_p13), %s12951_s25, 0 }
  0x75   : > { %271 = sbr.rel (%p13653_p13) target bundleno = 6474 (0x194a), region = 44 }
  0x7c   : > { %12848 = dma.done.wait (%p13654_p5), [#allocation3], 2560   ;;  %p13655_p0 = pmov %p13654_p5 }
  0x7e   : > { %12850 = vsyncadd (%p13655_p0), [#allocation3], 4294964736  ;;  %p13656_p6 = pmov %p13655_p0 }
  0x7f   : > { %p13657_p9 = pmov %p13655_p0 }
  0x80   : > { %12852 = dma.done.wait (%p13656_p6), [#allocation6], 73728  }
  0x81   : > { %12854 = vsyncadd (%p13657_p9), [#allocation6], 4294893568  ;;  %p13658_p10 = pmov %p13655_p0 }
  0x82   : > { %p13659_p12 = pmov %p13655_p0 }
  0x83   : > { %12856 = dma.done.wait (%p13658_p10), [#allocation9], 20480  }
  0x84   : > { %12858 = vsyncadd (%p13659_p12), [#allocation9], 4294946816  ;;  %s9992_s9 = sshll.u32 %s12951_s25, 1  ;;  %v327_v0 = vlaneseq  ;;  %vm340_vm0 = vcmask 130048   ;;  %v12891_v10 = vmov 0.0   ;;  %vm5746_vm8 = vcmask 64512  }
  0x85   : > { %p316_p1 = scmp.lt.s32.totalorder %s9992_s9, 3  ;;  %v11825_v14 = vld [vmem:[#allocation7 + $0x4] ss:$8 sps:$4 sm:$0xff]   ;;  %v11823_v17 = vld [vmem:[#allocation7] ss:$8 sps:$4 sm:$0xff]   ;;  %vm12893_vm9 = vmmov 0  }
  0x86   : > { %v13091_v1 = vshrl.u32 %v327_v0, 7  ;;  %v13093_v2 = vand.u32 127, %v327_v0  ;;  %v11828_v18 = vld [vmem:[#allocation7 + $0x14] ss:$8 sps:$4 sm:$0xff]   ;;  %v11826_v19 = vld [vmem:[#allocation7 + $0x10] ss:$8 sps:$4 sm:$0xff]  }
  0x87   : > { %s13668_s9 = smov (!%p316_p1, %s9992_s9), 3  ;;  %v11831_v20 = vld [vmem:[#allocation7 + $0x24] ss:$8 sps:$4 sm:$0xff]   ;;  %v11829_v21 = vld [vmem:[#allocation7 + $0x20] ss:$8 sps:$4 sm:$0xff]   ;;  %vm7932_vm10 = vcmask 31744  }
  0x88   : > { %v9994_v3 = vadd.s32 4294967295, %v13091_v1  ;;  %v329_v4 = vadd.s32 8, %v13091_v1  ;;  %s9993_s12 = sshll.u32 %s13668_s9, 3  ;;  %v422_v5 = vadd.s32 1, %v13091_v1  ;;  %v11834_v22 = vld [vmem:[#allocation7 + $0x34] ss:$8 sps:$4 sm:$0xff]  }
  0x89   : > { %s319_s16 = scalar_lea.vmem %s13635_s0, %s9993_s12  ;;  %v11832_v23 = vld [vmem:[#allocation7 + $0x30] ss:$8 sps:$4 sm:$0xff]   ;;  %v11837_v24 = vld [vmem:[#allocation7 + $0x44] ss:$8 sps:$4 sm:$0xff]   ;;  %v11835_v25 = vld [vmem:[#allocation7 + $0x40] ss:$8 sps:$4 sm:$0xff]  }
  0x8a   : > { %vm334_vm1 = vcmp.eq.s32.totalorder %v13093_v2, %v9994_v3  ;;  %v9995_v6 = vadd.s32 4294967295, %v329_v4  ;;  %v423_v7 = vadd.s32 1, %v329_v4  ;;  %v325_v8 = vld [vmem:[%s319_s16] sm:$0xff]  ;;  %v326_v9 = vld [vmem:[%s319_s16 + $0x8] sm:$0xff]  ;;  %vm424_vm2 = vcmp.eq.s32.totalorder %v13093_v2, %v422_v5  ;;  %v11840_v26 = vld [vmem:[#allocation7 + $0x54] ss:$8 sps:$4 sm:$0xff]  }
  0x8b   : > { %v13103_v11 = vsel %vm334_vm1, 1.0, %v12891_v10  ;;  %v11672_v12 = vpack.c.bf16 %v326_v9, %v325_v8  ;;  %v13110_v13 = vsel %vm424_vm2, 1.0, %v12891_v10  ;;  %v11838_v27 = vld [vmem:[#allocation7 + $0x50] ss:$8 sps:$4 sm:$0xff]   ;;  %v11843_v28 = vld [vmem:[#allocation7 + $0x64] ss:$8 sps:$4 sm:$0xff]  }
  0x8c   : > { %11437 = vmatprep.mubr.msk.f32.mxu0 %vm340_vm0, %v13103_v11  ;;  %vm335_vm3 = vcmp.eq.s32.totalorder %v13093_v2, %v9995_v6  ;;  %vm425_vm4 = vcmp.eq.s32.totalorder %v13093_v2, %v423_v7  ;;  %11444 = vmatprep.mubr.msk.f32.mxu1 %vm340_vm0, %v13110_v13  ;;  %v11841_v29 = vld [vmem:[#allocation7 + $0x60] ss:$8 sps:$4 sm:$0xff]   ;;  %v11846_v30 = vld [vmem:[#allocation7 + $0x74] ss:$8 sps:$4 sm:$0xff]   ;;  %v11844_v31 = vld [vmem:[#allocation7 + $0x70] ss:$8 sps:$4 sm:$0xff]  }
  0x8d   : > { %11673 = vmatprep.subr.bf16.mxu0 %v11672_v12  ;;  %11677 = vmatprep.subr.bf16.mxu1 %v11672_v12  ;;  %v13116_v15 = vsel %vm335_vm3, 1.0, %v12891_v10  ;;  %v13119_v16 = vsel %vm425_vm4, 1.0, %v12891_v10  ;;  %v11849_v32 = vld [vmem:[#allocation7 + $0x84] ss:$8 sps:$4 sm:$0xff]   ;;  %v11847_v33 = vld [vmem:[#allocation7 + $0x80] ss:$8 sps:$4 sm:$0xff]  }
  0x8e   : > { %11675 = vmatpush3.bf16.msra.mxu0 %v11672_v12  ;;  %11679 = vmatpush3.bf16.msra.mxu1 %v11672_v12  ;;  %v11852_v34 = vld [vmem:[#allocation7 + $0x94] ss:$8 sps:$4 sm:$0xff]   ;;  %v11850_v35 = vld [vmem:[#allocation7 + $0x90] ss:$8 sps:$4 sm:$0xff]   ;;  %v11855_v36 = vld [vmem:[#allocation7 + $0xa4] ss:$8 sps:$4 sm:$0xff]  }
  0x8f   : > { %802 = vmatprep.subr.bf16.mxu0 %v11825_v14  ;;  %v11853_v37 = vld [vmem:[#allocation7 + $0xa0] ss:$8 sps:$4 sm:$0xff]   ;;  %v11858_v38 = vld [vmem:[#allocation7 + $0xb4] ss:$8 sps:$4 sm:$0xff]   ;;  %v11856_v39 = vld [vmem:[#allocation7 + $0xb0] ss:$8 sps:$4 sm:$0xff]  }
  0x90   : > { %v11861_v40 = vld [vmem:[#allocation7 + $0xc4] ss:$8 sps:$4 sm:$0xff]   ;;  %v11859_v41 = vld [vmem:[#allocation7 + $0xc0] ss:$8 sps:$4 sm:$0xff]   ;;  %v11864_v42 = vld [vmem:[#allocation7 + $0xd4] ss:$8 sps:$4 sm:$0xff]  }
  0x91   : > { %11438 = vmatmul.mubr.msk.f32.vlgmr.msra.gmra.mrb[0].mxu0 %vm340_vm0, %v13116_v15  ;;  %11445 = vmatmul.mubr.msk.f32.vlgmr.msra.gmra.mrb[0].mxu1 %vm340_vm0, %v13119_v16  ;;  %v11862_v43 = vld [vmem:[#allocation7 + $0xd0] ss:$8 sps:$4 sm:$0xff]   ;;  %v11867_v44 = vld [vmem:[#allocation7 + $0xe4] ss:$8 sps:$4 sm:$0xff]   ;;  %v11865_v45 = vld [vmem:[#allocation7 + $0xe0] ss:$8 sps:$4 sm:$0xff]  }
  0x92   : > { %803 = vmatpush1.bf16.msra.mxu0 %v11823_v17  ;;  %834 = vmatprep.mubr.bf16.mxu0 %v11672_v12  ;;  %v11870_v46 = vld [vmem:[#allocation7 + $0xf4] ss:$8 sps:$4 sm:$0xff]   ;;  %v11868_v47 = vld [vmem:[#allocation7 + $0xf0] ss:$8 sps:$4 sm:$0xff]   ;;  %v11873_v48 = vld [vmem:[#allocation7 + $0x104] ss:$8 sps:$4 sm:$0xff]  }
  0x93   : > { %804 = vmatprep.subr.bf16.mxu0 %v11828_v18  ;;  %v11895_v49 = vld [vmem:[#allocation8] ss:$16 sps:$4 sm:$0xff]   ;;  %v11897_v50 = vld [vmem:[#allocation8 + $0x4] ss:$16 sps:$4 sm:$0xff]   ;;  %vm7935_vm11 = vcmask 1043456   ;;  %p321_p2 = scmp.lt.s32.totalorder %s12951_s25, 1 }
  0x94   : > { %v11900_v51 = vld [vmem:[#allocation8 + $0x24] ss:$16 sps:$4 sm:$0xff]   ;;  %1311 = vmatprep.subr.bf16.mxu1 %v11897_v50  ;;  %v11898_v52 = vld [vmem:[#allocation8 + $0x20] ss:$16 sps:$4 sm:$0xff]   ;;  %s313_s29 = sand.u32 1, %s12869_s22   ;;  %s10772_s11 = sshll.u32 %s12951_s25, 4 }
  0x95   : > { %1312 = vmatpush1.bf16.msra.mxu1 %v11895_v49  ;;  %v11903_v53 = vld [vmem:[#allocation8 + $0x44] ss:$16 sps:$4 sm:$0xff]   ;;  %v11901_v54 = vld [vmem:[#allocation8 + $0x40] ss:$16 sps:$4 sm:$0xff]   ;;  %s322_s18 = scalar_select %p321_p2, %s12951_s25, 1 }
  0x96   : > { %805 = vmatpush1.bf16.msra.mxu0 %v11826_v19  ;;  %1313 = vmatprep.subr.bf16.mxu1 %v11900_v51  ;;  %v11906_v55 = vld [vmem:[#allocation8 + $0x64] ss:$16 sps:$4 sm:$0xff]   ;;  %v11904_v56 = vld [vmem:[#allocation8 + $0x60] ss:$16 sps:$4 sm:$0xff]   ;;  %s314_s14 = scalar_lea.vmem [#allocation10], %s313_s29  ;;  %s13593_s3 = scalar_lea.hbm %s13641_s6, %s10772_s11 }
  0x97   : > { %806 = vmatprep.subr.bf16.mxu0 %v11831_v20  ;;  %v11909_v57 = vld [vmem:[#allocation8 + $0x84] ss:$16 sps:$4 sm:$0xff]   ;;  %v11907_v58 = vld [vmem:[#allocation8 + $0x80] ss:$16 sps:$4 sm:$0xff]   ;;  %s323_s28 = scalar_lea.vmem %s13636_s1, %s322_s18  ;;  %s9875_s17 = sshll.u32 %s314_s14, 4  ;;  %s13595_s17 = int_to_ptr.vmem [resolvable:$true] %s9875_s17 }
  0x98   : > { %v11912_v59 = vld [vmem:[#allocation8 + $0xa4] ss:$16 sps:$4 sm:$0xff]   ;;  %v11910_v60 = vld [vmem:[#allocation8 + $0xa0] ss:$16 sps:$4 sm:$0xff]   ;;  %s9863_s13 = scalar_lea.sflag [#allocation4], %s313_s29  ;;  %s12803_s25 = scalar_lea.vmem %s13595_s17, 16 }
  0x99   : > { %1314 = vmatpush1.bf16.msra.mxu1 %v11898_v52  ;;  %v11915_v61 = vld [vmem:[#allocation8 + $0xc4] ss:$16 sps:$4 sm:$0xff]   ;;  %v11913_v62 = vld [vmem:[#allocation8 + $0xc0] ss:$16 sps:$4 sm:$0xff]   ;;  %p12804_p3 = scmp.ne.s32.totalorder %s13595_s17, %s12803_s25  ;;  %p13660_p4 = scmp.ne.s32.totalorder %s13647_s7, 0 }
  0x9a   : > { %807 = vmatpush1.bf16.msra.mxu0 %v11829_v21  ;;  %1315 = vmatprep.subr.bf16.mxu1 %v11903_v53  ;;  %v11918_v63 = vld [vmem:[#allocation8 + $0xe4] ss:$16 sps:$4 sm:$0xff]   ;;  %v11916_v0 = vld [vmem:[#allocation8 + $0xe0] ss:$16 sps:$4 sm:$0xff]   ;;  %s12894_s9 = smov [#allocation10]  }
  0x9b   : > { %808 = vmatprep.subr.bf16.mxu0 %v11834_v22  ;;  %v11921_v3 = vld [vmem:[#allocation8 + $0x104] ss:$16 sps:$4 sm:$0xff]   ;;  %v11919_v4 = vld [vmem:[#allocation8 + $0x100] ss:$16 sps:$4 sm:$0xff]   ;;  %p12805_p7 = pnand %p12804_p3, %p13660_p4  ;;  %s12807_s12 = sshll.u32 %s12894_s9, 4  ;;  %s12808_s12 = int_to_ptr.vmem [resolvable:$false] %s12807_s12 }
  0x9c   : > { %v11924_v5 = vld [vmem:[#allocation8 + $0x124] ss:$16 sps:$4 sm:$0xff]   ;;  %v11922_v6 = vld [vmem:[#allocation8 + $0x120] ss:$16 sps:$4 sm:$0xff]   ;;  %s12809_s20 = scalar_lea.vmem %s12808_s12, 32  ;;  %p12810_p11 = scmp.lt.s32.totalorder %s13595_s17, %s12808_s12 }
  0x9d   : > { %1316 = vmatpush1.bf16.msra.mxu1 %v11901_v54  ;;  %v11927_v7 = vld [vmem:[#allocation8 + $0x144] ss:$16 sps:$4 sm:$0xff]   ;;  %v11925_v8 = vld [vmem:[#allocation8 + $0x140] ss:$16 sps:$4 sm:$0xff]   ;;  %p12806_p8 = pneg %p12805_p7  ;;  %p12811_p13 = scmp.lt.s32.totalorder %s12809_s20, %s12803_s25 }
  0x9e   : > { %809 = vmatpush1.bf16.msra.mxu0 %v11832_v23  ;;  %1317 = vmatprep.subr.bf16.mxu1 %v11906_v55  ;;  %v11930_v9 = vld [vmem:[#allocation8 + $0x164] ss:$16 sps:$4 sm:$0xff]   ;;  %v11928_v12 = vld [vmem:[#allocation8 + $0x160] ss:$16 sps:$4 sm:$0xff]  }
  0x9f   : > { %810 = vmatprep.subr.bf16.mxu0 %v11837_v24  ;;  %v11933_v14 = vld [vmem:[#allocation8 + $0x184] ss:$16 sps:$4 sm:$0xff]   ;;  %v11931_v17 = vld [vmem:[#allocation8 + $0x180] ss:$16 sps:$4 sm:$0xff]   ;;  %p12812_p5 = por %p12811_p13, %p12810_p11 }
  0xa0   : > { %v11871_v18 = vld [vmem:[#allocation7 + $0x100] ss:$8 sps:$4 sm:$0xff]   ;;  %v11876_v20 = vld [vmem:[#allocation7 + $0x114] ss:$8 sps:$4 sm:$0xff]  }
  0xa1   : > { %1318 = vmatpush1.bf16.msra.mxu1 %v11904_v56  ;;  %v888_v49 = vld [vmem:[#allocation2] ss:$8 sm:$0x3]  ;;  %v2802_v50 = vld [vmem:[#allocation2 + $0x4] ss:$8 sm:$0x7]  ;;  %p12813_p0 = pnand %p12812_p5, %p12806_p8 }
  0xa2   : > { %811 = vmatpush1.bf16.msra.mxu0 %v11835_v25  ;;  %1319 = vmatprep.subr.bf16.mxu1 %v11909_v57  ;;  %v5011_v51 = vld [vmem:[#allocation2 + $0x20] ss:$8 sm:$0xf]  ;;  %v890_v52 = vld [vmem:[#allocation2 + $0x1] ss:$8 sm:$0x3] }
  0xa3   : > { %812 = vmatprep.subr.bf16.mxu0 %v11840_v26  ;;  %v11874_v26 = vld [vmem:[#allocation7 + $0x110] ss:$8 sps:$4 sm:$0xff]   ;;  %v2804_v53 = vld [vmem:[#allocation2 + $0x5] ss:$8 sm:$0x7] }
  0xa4   : > { %v5013_v54 = vld [vmem:[#allocation2 + $0x21] ss:$8 sm:$0xf] }
  0xa5   : > { %1320 = vmatpush1.bf16.msra.mxu1 %v11907_v58 }
  0xa6   : > { %813 = vmatpush1.bf16.msra.mxu0 %v11838_v27  ;;  %1321 = vmatprep.subr.bf16.mxu1 %v11912_v59  ;;  %v11879_v27 = vld [vmem:[#allocation7 + $0x124] ss:$8 sps:$4 sm:$0xff]  }
  0xa7   : > { %814 = vmatprep.subr.bf16.mxu0 %v11843_v28  ;;  %v12892_v28 = vmov 0  }
  0xa9   : > { %1322 = vmatpush1.bf16.msra.mxu1 %v11910_v60 }
  0xaa   : > { %815 = vmatpush1.bf16.msra.mxu0 %v11841_v29  ;;  %1323 = vmatprep.subr.bf16.mxu1 %v11915_v61  ;;  %v11877_v29 = vld [vmem:[#allocation7 + $0x120] ss:$8 sps:$4 sm:$0xff]  }
  0xab   : > { %816 = vmatprep.subr.bf16.mxu0 %v11846_v30  ;;  %v11882_v30 = vld [vmem:[#allocation7 + $0x134] ss:$8 sps:$4 sm:$0xff]  }
  0xad   : > { %1324 = vmatpush1.bf16.msra.mxu1 %v11913_v62 }
  0xae   : > { %817 = vmatpush1.bf16.msra.mxu0 %v11844_v31  ;;  %1325 = vmatprep.subr.bf16.mxu1 %v11918_v63  ;;  %v11880_v31 = vld [vmem:[#allocation7 + $0x130] ss:$8 sps:$4 sm:$0xff]  }
  0xaf   : > { %818 = vmatprep.subr.bf16.mxu0 %v11849_v32  ;;  %v11885_v32 = vld [vmem:[#allocation7 + $0x144] ss:$8 sps:$4 sm:$0xff]  }
  0xb1   : > { %1326 = vmatpush1.bf16.msra.mxu1 %v11916_v0 }
  0xb2   : > { %819 = vmatpush1.bf16.msra.mxu0 %v11847_v33  ;;  %1327 = vmatprep.subr.bf16.mxu1 %v11921_v3  ;;  %v11883_v33 = vld [vmem:[#allocation7 + $0x140] ss:$8 sps:$4 sm:$0xff]  }
  0xb3   : > { %820 = vmatprep.subr.bf16.mxu0 %v11852_v34  ;;  %v11888_v34 = vld [vmem:[#allocation7 + $0x154] ss:$8 sps:$4 sm:$0xff]  }
  0xb5   : > { %1328 = vmatpush1.bf16.msra.mxu1 %v11919_v4 }
  0xb6   : > { %821 = vmatpush1.bf16.msra.mxu0 %v11850_v35  ;;  %1329 = vmatprep.subr.bf16.mxu1 %v11924_v5  ;;  %v11886_v35 = vld [vmem:[#allocation7 + $0x150] ss:$8 sps:$4 sm:$0xff]  }
  0xb7   : > { %822 = vmatprep.subr.bf16.mxu0 %v11855_v36  ;;  %v11891_v36 = vld [vmem:[#allocation7 + $0x164] ss:$8 sps:$4 sm:$0xff]  }
  0xb9   : > { %1330 = vmatpush1.bf16.msra.mxu1 %v11922_v6 }
  0xba   : > { %823 = vmatpush1.bf16.msra.mxu0 %v11853_v37  ;;  %1331 = vmatprep.subr.bf16.mxu1 %v11927_v7  ;;  %v11889_v37 = vld [vmem:[#allocation7 + $0x160] ss:$8 sps:$4 sm:$0xff]  }
  0xbb   : > { %824 = vmatprep.subr.bf16.mxu0 %v11858_v38  ;;  %v11894_v38 = vld [vmem:[#allocation7 + $0x174] ss:$8 sps:$4 sm:$0xff]  }
  0xbd   : > { %1332 = vmatpush1.bf16.msra.mxu1 %v11925_v8 }
  0xbe   : > { %825 = vmatpush1.bf16.msra.mxu0 %v11856_v39  ;;  %1333 = vmatprep.subr.bf16.mxu1 %v11930_v9  ;;  %v11892_v39 = vld [vmem:[#allocation7 + $0x170] ss:$8 sps:$4 sm:$0xff]  }
  0xbf   : > { %826 = vmatprep.subr.bf16.mxu0 %v11861_v40  ;;  %v11934_v40 = vld [vmem:[#allocation8 + $0x1a0] ss:$16 sps:$4 sm:$0xff]  }
  0xc1   : > { %1334 = vmatpush1.bf16.msra.mxu1 %v11928_v12 }
  0xc2   : > { %827 = vmatpush1.bf16.msra.mxu0 %v11859_v41  ;;  %1335 = vmatprep.subr.bf16.mxu1 %v11933_v14  ;;  %v11936_v41 = vld [vmem:[#allocation8 + $0x1a4] ss:$16 sps:$4 sm:$0xff]  }
  0xc3   : > { %828 = vmatprep.subr.bf16.mxu0 %v11864_v42  ;;  %v11939_v42 = vld [vmem:[#allocation8 + $0x1c4] ss:$16 sps:$4 sm:$0xff]  }
  0xc5   : > { %1336 = vmatpush1.bf16.msra.mxu1 %v11931_v17 }
  0xc6   : > { %829 = vmatpush1.bf16.msra.mxu0 %v11862_v43  ;;  %1337 = vmatprep.subr.bf16.mxu1 %v11936_v41  ;;  %v11937_v43 = vld [vmem:[#allocation8 + $0x1c0] ss:$16 sps:$4 sm:$0xff]  }
  0xc7   : > { %830 = vmatprep.subr.bf16.mxu0 %v11867_v44  ;;  %v11942_v44 = vld [vmem:[#allocation8 + $0x1e4] ss:$16 sps:$4 sm:$0xff]  }
  0xc9   : > { %1338 = vmatpush1.bf16.msra.mxu1 %v11934_v40 }
  0xca   : > { %831 = vmatpush1.bf16.msra.mxu0 %v11865_v45  ;;  %1339 = vmatprep.subr.bf16.mxu1 %v11939_v42  ;;  %v11940_v45 = vld [vmem:[#allocation8 + $0x1e0] ss:$16 sps:$4 sm:$0xff]  }
  0xcb   : > { %832 = vmatprep.subr.bf16.mxu0 %v11870_v46  ;;  %v11945_v46 = vld [vmem:[#allocation8 + $0xc] ss:$16 sps:$4 sm:$0xff]  }
  0xcd   : > { %1340 = vmatpush1.bf16.msra.mxu1 %v11937_v43 }
  0xce   : > { %833 = vmatpush1.bf16.msra.mxu0 %v11868_v47  ;;  %1341 = vmatprep.subr.bf16.mxu1 %v11942_v44  ;;  %v13128_v47 = vsub.s32 0, %v13091_v1 }
  0xcf   : > { %845 = vmatprep.subr.bf16.mxu0 %v11873_v48  ;;  %v13131_v48 = vsub.s32 1, %v13091_v1 }
  0xd0   : > { %v895_v55 = vrot.slane %v888_v49, %v13128_v47  ;;  %v2809_v56 = vrot.slane %v2802_v50, %v13128_v47  ;;  %v5018_v57 = vrot.slane %v5011_v51, %v13128_v47  ;;  %v910_v61 = vrot.slane %v890_v52, %v13128_v47 }
  0xd1   : > { %1342 = vmatpush1.bf16.msra.mxu1 %v11940_v45  ;;  %v899_v58 = vrot.slane %v888_v49, %v13131_v48  ;;  %v2813_v59 = vrot.slane %v2802_v50, %v13131_v48  ;;  %v5022_v60 = vrot.slane %v5011_v51, %v13131_v48  ;;  %v2831_v62 = vrot.slane %v2804_v53, %v13128_v47 }
  0xd2   : > { %1354 = vmatprep.subr.bf16.mxu1 %v11945_v46  ;;  %v5047_v63 = vrot.slane %v5013_v54, %v13128_v47  ;;  %v914_v3 = vrot.slane %v890_v52, %v13131_v48  ;;  %v2835_v4 = vrot.slane %v2804_v53, %v13131_v48  ;;  %v5051_v9 = vrot.slane %v5013_v54, %v13131_v48 }
 0x164   : > { %v11439_v19 = vpop.f32.mrb[0].mxu0  ;;  %v11446_v21 = vpop.f32.mrb[0].mxu1 }
 0x165   : > { %v413_v22 = vpop.f32.mrb[1].mxu0  ;;  %v502_v23 = vpop.f32.mrb[1].mxu1 }
 0x166   : > { %v559_v24 = vpack.c.bf16 %v11439_v19, %v413_v22  ;;  %v561_v25 = vpack.c.bf16 %v11446_v21, %v502_v23 }
 0x168   : > { %835 = vmatmul.mubr.bf16.vlgmr.msra.gmra.mrb[4].mxu0 %v559_v24 }
 0x169   : > { %846 = vmatpush1.bf16.msra.mxu0 %v11871_v18  ;;  %877 = vmatprep.mubr.bf16.mxu0 %v12892_v28 }
 0x16a   : > { %847 = vmatprep.subr.bf16.mxu0 %v11876_v20 }
 0x16d   : > { %848 = vmatpush1.bf16.msra.mxu0 %v11874_v26 }
 0x16e   : > { %849 = vmatprep.subr.bf16.mxu0 %v11879_v27 }
 0x171   : > { %850 = vmatpush1.bf16.msra.mxu0 %v11877_v29 }
 0x172   : > { %851 = vmatprep.subr.bf16.mxu0 %v11882_v30 }
 0x175   : > { %852 = vmatpush1.bf16.msra.mxu0 %v11880_v31 }
 0x176   : > { %853 = vmatprep.subr.bf16.mxu0 %v11885_v32 }
 0x179   : > { %854 = vmatpush1.bf16.msra.mxu0 %v11883_v33 }
 0x17a   : > { %855 = vmatprep.subr.bf16.mxu0 %v11888_v34 }
 0x17d   : > { %856 = vmatpush1.bf16.msra.mxu0 %v11886_v35 }
 0x17e   : > { %857 = vmatprep.subr.bf16.mxu0 %v11891_v36 }
 0x181   : > { %858 = vmatpush1.bf16.msra.mxu0 %v11889_v37 }
 0x182   : > { %859 = vmatprep.subr.bf16.mxu0 %v11894_v38 }
 0x185   : > { %860 = vmatpush1.bf16.msra.mxu0 %v11892_v39 }
 0x188   : > { %878 = vmatmul.mubr.bf16.vlgmr.msra.gmra.mrb[4].mxu0 %v561_v25 }
 0x189   : > { %1608 = vmatprep.mubr.f32.mxu0 %v12891_v10 }
 0x25b   : > { %v879_v0 = vpop.f32.mrb[4].mxu0 }
 0x25c   : > { %v902_v5 = vmul.f32 %v895_v55, %v879_v0  ;;  %v2821_v6 = vmul.f32 %v2809_v56, %v879_v0  ;;  %v5035_v7 = vmul.f32 %v5018_v57, %v879_v0  ;;  %v881_v8 = vpop.f32.mrb[5].mxu0  ;;  %v11954_v0 = vld [vmem:[#allocation8 + $0x6c] ss:$16 sps:$4 sm:$0xff]  }
 0x25d   : > { %v903_v12 = vmul.f32 %v899_v58, %v881_v8  ;;  %v2822_v14 = vmul.f32 %v2813_v59, %v881_v8  ;;  %v5036_v17 = vmul.f32 %v5022_v60, %v881_v8  ;;  %v883_v18 = vpop.f32.mrb[6].mxu0  ;;  %v11963_v8 = vld [vmem:[#allocation8 + $0xcc] ss:$16 sps:$4 sm:$0xff]  }
 0x25e   : > { %v917_v19 = vadd.f32 %v910_v61, %v902_v5  ;;  %v2843_v20 = vadd.f32 %v2831_v62, %v2821_v6  ;;  %v5064_v21 = vadd.f32 %v5047_v63, %v5035_v7  ;;  %v904_v22 = vmul.f32 %v895_v55, %v883_v18  ;;  %v885_v23 = vpop.f32.mrb[7].mxu0  ;;  %v11955_v5 = vld [vmem:[#allocation8 + $0x88] ss:$16 sps:$4 sm:$0xff]   ;;  %v11960_v6 = vld [vmem:[#allocation8 + $0xac] ss:$16 sps:$4 sm:$0xff]  }
 0x25f   : > { %v918_v24 = vadd.f32 %v914_v3, %v903_v12  ;;  %v2824_v25 = vmul.f32 %v2809_v56, %v883_v18  ;;  %v2844_v27 = vadd.f32 %v2835_v4, %v2822_v14  ;;  %v5065_v29 = vadd.f32 %v5051_v9, %v5036_v17  ;;  %v11943_v56 = vld [vmem:[#allocation8 + $0x8] ss:$16 sps:$4 sm:$0xff]   ;;  %v11966_v12 = vld [vmem:[#allocation8 + $0xec] ss:$16 sps:$4 sm:$0xff]  }
 0x260   : > { %v921_v26 = vmax.f32 %v917_v19, 0.0  ;;  %v919_v30 = vadd.f32 %v910_v61, %v904_v22  ;;  %v5039_v32 = vmul.f32 %v5018_v57, %v883_v18  ;;  %v905_v33 = vmul.f32 %v899_v58, %v885_v23  ;;  %v11946_v61 = vld [vmem:[#allocation8 + $0x28] ss:$16 sps:$4 sm:$0xff]   ;;  %v11969_v17 = vld [vmem:[#allocation8 + $0x10c] ss:$16 sps:$4 sm:$0xff]  }
 0x261   : > { %v2846_v31 = vadd.f32 %v2831_v62, %v2824_v25  ;;  %v2825_v34 = vmul.f32 %v2813_v59, %v885_v23  ;;  %v2849_v35 = vmax.f32 %v2843_v20, 0.0  ;;  %v5072_v36 = vmax.f32 %v5064_v21, 0.0  ;;  %v11948_v59 = vld [vmem:[#allocation8 + $0x2c] ss:$16 sps:$4 sm:$0xff]   ;;  %v11958_v7 = vld [vmem:[#allocation8 + $0xa8] ss:$16 sps:$4 sm:$0xff]  }
 0x262   : > { %v923_v37 = vmax.f32 %v919_v30, 0.0  ;;  %v5040_v38 = vmul.f32 %v5022_v60, %v885_v23  ;;  %v5068_v40 = vadd.f32 %v5047_v63, %v5039_v32  ;;  %v920_v41 = vadd.f32 %v914_v3, %v905_v33  ;;  %v11951_v62 = vld [vmem:[#allocation8 + $0x4c] ss:$16 sps:$4 sm:$0xff]   ;;  %v11949_v63 = vld [vmem:[#allocation8 + $0x48] ss:$16 sps:$4 sm:$0xff]  }
 0x263   : > { %v2852_v39 = vmax.f32 %v2846_v31, 0.0  ;;  %v2847_v42 = vadd.f32 %v2835_v4, %v2825_v34  ;;  %v922_v44 = vmax.f32 %v918_v24, 0.0  ;;  %v2850_v46 = vmax.f32 %v2844_v27, 0.0  ;;  %v11952_v3 = vld [vmem:[#allocation8 + $0x68] ss:$16 sps:$4 sm:$0xff]  }
 0x264   : > { %v5069_v43 = vadd.f32 %v5051_v9, %v5040_v38  ;;  %v13145_v45 = vpack.c.bf16 %v923_v37, %v921_v26  ;;  %v5076_v49 = vmax.f32 %v5068_v40, 0.0  ;;  %v924_v50 = vmax.f32 %v920_v41, 0.0  ;;  %v11957_v4 = vld [vmem:[#allocation8 + $0x8c] ss:$16 sps:$4 sm:$0xff]   ;;  %v11961_v9 = vld [vmem:[#allocation8 + $0xc8] ss:$16 sps:$4 sm:$0xff]  }
 0x265   : > { %v2853_v51 = vmax.f32 %v2847_v42, 0.0  ;;  %v13147_v52 = vpack.c.bf16 %v2852_v39, %v2849_v35  ;;  %v5073_v53 = vmax.f32 %v5065_v29, 0.0  ;;  %v11964_v14 = vld [vmem:[#allocation8 + $0xe8] ss:$16 sps:$4 sm:$0xff]   ;;  %v11972_v19 = vld [vmem:[#allocation8 + $0x12c] ss:$16 sps:$4 sm:$0xff]  }
 0x266   : > { %v5077_v54 = vmax.f32 %v5069_v43, 0.0  ;;  %v990_v55 = vpack.c.bf16 %v924_v50, %v922_v44  ;;  %v13151_v58 = vpack.c.bf16 %v5076_v49, %v5072_v36  ;;  %v11967_v18 = vld [vmem:[#allocation8 + $0x108] ss:$16 sps:$4 sm:$0xff]   ;;  %v11975_v21 = vld [vmem:[#allocation8 + $0x14c] ss:$16 sps:$4 sm:$0xff]  }
 0x267   : > { %v13149_v57 = vpack.c.bf16 %v2853_v51, %v2850_v46  ;;  %v11970_v20 = vld [vmem:[#allocation8 + $0x128] ss:$16 sps:$4 sm:$0xff]   ;;  %v11978_v23 = vld [vmem:[#allocation8 + $0x16c] ss:$16 sps:$4 sm:$0xff]  }
 0x268   : > { %v13153_v60 = vpack.c.bf16 %v5077_v54, %v5073_v53  ;;  %1343 = vmatprep.mubr.bf16.mxu1 %v990_v55  ;;  %v11973_v22 = vld [vmem:[#allocation8 + $0x148] ss:$16 sps:$4 sm:$0xff]   ;;  %v11981_v25 = vld [vmem:[#allocation8 + $0x18c] ss:$16 sps:$4 sm:$0xff]  }
 0x269   : > { %1344 = vmatmul.mubr.bf16.vlgmr.msra.gmra.mrb[4].mxu1 %v13145_v45  ;;  %v11976_v24 = vld [vmem:[#allocation8 + $0x168] ss:$16 sps:$4 sm:$0xff]   ;;  %v11984_v27 = vld [vmem:[#allocation8 + $0x1ac] ss:$16 sps:$4 sm:$0xff]  }
 0x26a   : > { %1355 = vmatpush1.bf16.msra.mxu1 %v11943_v56  ;;  %1386 = vmatprep.mubr.bf16.mxu1 %v990_v55  ;;  %v11979_v26 = vld [vmem:[#allocation8 + $0x188] ss:$16 sps:$4 sm:$0xff]   ;;  %v11987_v30 = vld [vmem:[#allocation8 + $0x1cc] ss:$16 sps:$4 sm:$0xff]  }
 0x26b   : > { %1356 = vmatprep.subr.bf16.mxu1 %v11948_v59  ;;  %v11982_v29 = vld [vmem:[#allocation8 + $0x1a8] ss:$16 sps:$4 sm:$0xff]   ;;  %v11990_v32 = vld [vmem:[#allocation8 + $0x1ec] ss:$16 sps:$4 sm:$0xff]  }
 0x26c   : > { %v11985_v31 = vld [vmem:[#allocation8 + $0x1c8] ss:$16 sps:$4 sm:$0xff]  }
 0x26d   : > { %v11988_v33 = vld [vmem:[#allocation8 + $0x1e8] ss:$16 sps:$4 sm:$0xff]  }
 0x26e   : > { %1357 = vmatpush1.bf16.msra.mxu1 %v11946_v61  ;;  %v1398_v34 = vld [vmem:[#allocation2 + $0x2] ss:$8 sm:$0xf]  ;;  %v1400_v35 = vld [vmem:[#allocation2 + $0x3] ss:$8 sm:$0xf] }
 0x26f   : > { %1358 = vmatprep.subr.bf16.mxu1 %v11951_v62  ;;  %v1405_v36 = vrot.slane %v1398_v34, %v13128_v47  ;;  %v1409_v37 = vrot.slane %v1398_v34, %v13131_v48  ;;  %v1434_v38 = vrot.slane %v1400_v35, %v13128_v47  ;;  %v1438_v40 = vrot.slane %v1400_v35, %v13131_v48 }
 0x272   : > { %1359 = vmatpush1.bf16.msra.mxu1 %v11949_v63 }
 0x273   : > { %1360 = vmatprep.subr.bf16.mxu1 %v11954_v0  ;;  %v13174_v0 = vsub.s32 2, %v13091_v1 }
 0x276   : > { %1361 = vmatpush1.bf16.msra.mxu1 %v11952_v3  ;;  %v13177_v3 = vsub.s32 3, %v13091_v1 }
 0x277   : > { %1362 = vmatprep.subr.bf16.mxu1 %v11957_v4  ;;  %v1413_v4 = vrot.slane %v1398_v34, %v13174_v0 }
 0x27a   : > { %1363 = vmatpush1.bf16.msra.mxu1 %v11955_v5  ;;  %v1417_v5 = vrot.slane %v1398_v34, %v13177_v3  ;;  %v11993_v34 = vld [vmem:[#allocation5 + $0x48] sm:$0xff]  }
 0x27b   : > { %1364 = vmatprep.subr.bf16.mxu1 %v11960_v6  ;;  %v1442_v6 = vrot.slane %v1400_v35, %v13174_v0 }
 0x27e   : > { %1365 = vmatpush1.bf16.msra.mxu1 %v11958_v7 }
 0x27f   : > { %1366 = vmatprep.subr.bf16.mxu1 %v11963_v8  ;;  %v1446_v8 = vrot.slane %v1400_v35, %v13177_v3  ;;  %v11994_v35 = vld [vmem:[#allocation5 + $0x8] sm:$0xff]  }
 0x282   : > { %1367 = vmatpush1.bf16.msra.mxu1 %v11961_v9 }
 0x283   : > { %1368 = vmatprep.subr.bf16.mxu1 %v11966_v12 }
 0x286   : > { %1369 = vmatpush1.bf16.msra.mxu1 %v11964_v14 }
 0x287   : > { %1370 = vmatprep.subr.bf16.mxu1 %v11969_v17 }
 0x28a   : > { %1371 = vmatpush1.bf16.msra.mxu1 %v11967_v18 }
 0x28b   : > { %1372 = vmatprep.subr.bf16.mxu1 %v11972_v19 }
 0x28e   : > { %1373 = vmatpush1.bf16.msra.mxu1 %v11970_v20 }
 0x28f   : > { %1374 = vmatprep.subr.bf16.mxu1 %v11975_v21 }
 0x292   : > { %1375 = vmatpush1.bf16.msra.mxu1 %v11973_v22 }
 0x293   : > { %1376 = vmatprep.subr.bf16.mxu1 %v11978_v23 }
 0x296   : > { %1377 = vmatpush1.bf16.msra.mxu1 %v11976_v24 }
 0x297   : > { %1378 = vmatprep.subr.bf16.mxu1 %v11981_v25 }
 0x29a   : > { %1379 = vmatpush1.bf16.msra.mxu1 %v11979_v26 }
 0x29b   : > { %1380 = vmatprep.subr.bf16.mxu1 %v11984_v27 }
 0x29e   : > { %1381 = vmatpush1.bf16.msra.mxu1 %v11982_v29 }
 0x29f   : > { %1382 = vmatprep.subr.bf16.mxu1 %v11987_v30 }
 0x2a2   : > { %1383 = vmatpush1.bf16.msra.mxu1 %v11985_v31 }
 0x2a3   : > { %1384 = vmatprep.subr.bf16.mxu1 %v11990_v32  ;;  %v11991_v32 = vld [vmem:[#allocation5 + $0x40] sm:$0xff]  }
 0x2a6   : > { %1385 = vmatpush1.bf16.msra.mxu1 %v11988_v33  ;;  %v11992_v33 = vld [vmem:[#allocation5] sm:$0xff]  }
 0x2a9   : > { %1387 = vmatmul.mubr.bf16.vlgmr.msra.gmra.mrb[8].mxu1 %v13145_v45 }
 0x2aa   : > { %1531 = vmatprep.mubr.f32.mxu1 %v12891_v10 }
 0x33c   : > { %v1345_v39 = vpop.f32.mrb[4].mxu1 }
 0x33d   : > { %v1422_v41 = vmul.f32 %v1405_v36, %v1345_v39  ;;  %v1347_v42 = vpop.f32.mrb[5].mxu1  ;;  %v11998_v39 = vld [vmem:[#allocation5 + $0x18] sm:$0xff]  }
 0x33e   : > { %v1423_v43 = vmul.f32 %v1409_v37, %v1347_v42  ;;  %v1349_v44 = vpop.f32.mrb[6].mxu1  ;;  %v12001_v42 = vld [vmem:[#allocation5 + $0x68] sm:$0xff]  }
 0x33f   : > { %v1451_v46 = vadd.f32 %v1434_v38, %v1422_v41  ;;  %v1426_v49 = vmul.f32 %v1405_v36, %v1349_v44  ;;  %v1351_v45 = vpop.f32.mrb[7].mxu1  ;;  %v11995_v36 = vld [vmem:[#allocation5 + $0x50] sm:$0xff]   ;;  %v12000_v41 = vld [vmem:[#allocation5 + $0x20] sm:$0xff]  }
 0x340   : > { %v1452_v50 = vadd.f32 %v1438_v40, %v1423_v43  ;;  %v1427_v51 = vmul.f32 %v1409_v37, %v1351_v45  ;;  %v11996_v37 = vld [vmem:[#allocation5 + $0x10] sm:$0xff]   ;;  %v12002_v43 = vld [vmem:[#allocation5 + $0x28] sm:$0xff]   ;;  %v12006_v45 = vld [vmem:[#allocation5 + $0x38] sm:$0xff]  }
 0x341   : > { %v1455_v53 = vadd.f32 %v1434_v38, %v1426_v49  ;;  %v1459_v55 = vmax.f32 %v1451_v46, 0.0  ;;  %v11997_v38 = vld [vmem:[#allocation5 + $0x58] sm:$0xff]   ;;  %v12003_v44 = vld [vmem:[#allocation5 + $0x70] sm:$0xff]  }
 0x342   : > { %v1456_v54 = vadd.f32 %v1438_v40, %v1427_v51  ;;  %v1460_v59 = vmax.f32 %v1452_v50, 0.0  ;;  %v11999_v40 = vld [vmem:[#allocation5 + $0x60] sm:$0xff]   ;;  %v12004_v46 = vld [vmem:[#allocation5 + $0x30] sm:$0xff]   ;;  %v12005_v49 = vld [vmem:[#allocation5 + $0x78] sm:$0xff]  }
 0x343   : > { %v1463_v56 = vmax.f32 %v1455_v53, 0.0  ;;  %v12007_v50 = vld [vmem:[#allocation5 + $0x140] sm:$0xff]  }
 0x344   : > { %v1464_v61 = vmax.f32 %v1456_v54, 0.0  ;;  %v12023_v51 = vld [vmem:[#allocation5 + $0xc0] sm:$0xff]   ;;  %v12025_v54 = vld [vmem:[#allocation5 + $0xc8] sm:$0xff]  }
 0x345   : > { %v13162_v62 = vpack.c.bf16 %v1463_v56, %v1459_v55  ;;  %v12024_v53 = vld [vmem:[#allocation5 + $0x80] sm:$0xff]   ;;  %v12026_v55 = vld [vmem:[#allocation5 + $0x88] sm:$0xff]   ;;  %v12027_v56 = vld [vmem:[#allocation5 + $0xd0] sm:$0xff]  }
 0x346   : > { %v13164_v63 = vpack.c.bf16 %v1464_v61, %v1460_v59  ;;  %v12029_v59 = vld [vmem:[#allocation5 + $0x90] sm:$0xff]   ;;  %v12031_v61 = vld [vmem:[#allocation5 + $0xd8] sm:$0xff]  }
 0x348   : > { %11681 = vmatprep.subr.bf16.mxu1 %v13164_v63 }
 0x349   : > { %11683 = vmatpush1.bf16.msra.mxu1 %v13162_v62 }
 0x34a   : > { %10805 = vmatprep.subr.bf16.mxu1 %v12023_v51  ;;  %v12042_v51 = vld [vmem:[#allocation5 + $0x218] sm:$0xff]  }
 0x34c   : > { %10116 = vmatmul.mubr.msk.f32.vlgmr.msra.gmra.mrb[2].mxu1 %vm340_vm0, %v13103_v11 }
 0x34d   : > { %1537 = vmatprep.mubr.f32.mxu1 %v12891_v10  ;;  %10806 = vmatpush3.bf16.msra.mxu1 %v12024_v53  ;;  %v12044_v53 = vld [vmem:[#allocation5 + $0x260] sm:$0xff]  }
 0x34e   : > { %10807 = vmatprep.subr.bf16.mxu1 %v12025_v54  ;;  %v12046_v54 = vld [vmem:[#allocation5 + $0x220] sm:$0xff]  }
 0x350   : > { %10117 = vmatmul.mubr.msk.f32.gmra.mrb[12].mxu1 %vm340_vm0, %v13116_v15 }
 0x351   : > { %10808 = vmatpush3.bf16.msra.mxu1 %v12026_v55  ;;  %v12048_v55 = vld [vmem:[#allocation5 + $0x268] sm:$0xff]  }
 0x352   : > { %10809 = vmatprep.subr.bf16.mxu1 %v12027_v56  ;;  %v12050_v56 = vld [vmem:[#allocation5 + $0x228] sm:$0xff]  }
 0x355   : > { %10810 = vmatpush3.bf16.msra.mxu1 %v12029_v59  ;;  %v12054_v59 = vld [vmem:[#allocation5 + $0x230] sm:$0xff]  }
 0x356   : > { %10811 = vmatprep.subr.bf16.mxu1 %v12031_v61  ;;  %v12056_v61 = vld [vmem:[#allocation5 + $0x278] sm:$0xff]  }
 0x37c   : > { %v1388_v7 = vpop.f32.mrb[8].mxu1 }
 0x37d   : > { %v1424_v9 = vmul.f32 %v1413_v4, %v1388_v7  ;;  %v1390_v12 = vpop.f32.mrb[9].mxu1  ;;  %v12039_v7 = vld [vmem:[#allocation5 + $0xe8] sm:$0xff]  }
 0x37e   : > { %v1425_v14 = vmul.f32 %v1417_v5, %v1390_v12  ;;  %v1392_v17 = vpop.f32.mrb[10].mxu1  ;;  %v12045_v12 = vld [vmem:[#allocation5 + $0xb0] sm:$0xff]  }
 0x37f   : > { %v1453_v18 = vadd.f32 %v1442_v6, %v1424_v9  ;;  %v1428_v19 = vmul.f32 %v1413_v4, %v1392_v17  ;;  %v1394_v20 = vpop.f32.mrb[11].mxu1  ;;  %v12033_v4 = vld [vmem:[#allocation5 + $0x98] sm:$0xff]   ;;  %v12043_v9 = vld [vmem:[#allocation5 + $0xf0] sm:$0xff]  }
 0x380   : > { %v1454_v21 = vadd.f32 %v1446_v8, %v1425_v14  ;;  %v1429_v22 = vmul.f32 %v1417_v5, %v1394_v20  ;;  %v12035_v5 = vld [vmem:[#allocation5 + $0xe0] sm:$0xff]   ;;  %10812 = vmatpush3.bf16.msra.mxu1 %v12033_v4  ;;  %v12047_v14 = vld [vmem:[#allocation5 + $0xf8] sm:$0xff]  }
 0x381   : > { %v1457_v23 = vadd.f32 %v1442_v6, %v1428_v19  ;;  %v1461_v25 = vmax.f32 %v1453_v18, 0.0  ;;  %v12037_v6 = vld [vmem:[#allocation5 + $0xa0] sm:$0xff]   ;;  %10813 = vmatprep.subr.bf16.mxu1 %v12035_v5  ;;  %v12049_v17 = vld [vmem:[#allocation5 + $0xb8] sm:$0xff]  }
 0x382   : > { %v1458_v24 = vadd.f32 %v1446_v8, %v1429_v22  ;;  %v1462_v27 = vmax.f32 %v1454_v21, 0.0  ;;  %v12041_v8 = vld [vmem:[#allocation5 + $0xa8] sm:$0xff]   ;;  %v12051_v18 = vld [vmem:[#allocation5 + $0x1c0] sm:$0xff]  }
 0x383   : > { %v1465_v26 = vmax.f32 %v1457_v23, 0.0 }
 0x384   : > { %v1466_v29 = vmax.f32 %v1458_v24, 0.0  ;;  %10814 = vmatpush3.bf16.msra.mxu1 %v12037_v6  ;;  %v12058_v6 = vld [vmem:[#allocation5 + $0x238] sm:$0xff]  }
 0x385   : > { %v13183_v30 = vpack.c.bf16 %v1465_v26, %v1461_v25  ;;  %10815 = vmatprep.subr.bf16.mxu1 %v12039_v7  ;;  %v12008_v25 = vld [vmem:[#allocation5 + $0x100] sm:$0xff]   ;;  %v12009_v26 = vld [vmem:[#allocation5 + $0x148] sm:$0xff]  }
 0x386   : > { %v13185_v31 = vpack.c.bf16 %v1466_v29, %v1462_v27  ;;  %v12010_v27 = vld [vmem:[#allocation5 + $0x108] sm:$0xff]   ;;  %v12011_v29 = vld [vmem:[#allocation5 + $0x150] sm:$0xff]  }
 0x387   : > { %v12062_v7 = vld [vmem:[#allocation8 + $0x204] ss:$16 sps:$4 sm:$0xff]  }
 0x388   : > { %11685 = vmatprep.subr.bf16.mxu0 %v13185_v31  ;;  %10816 = vmatpush3.bf16.msra.mxu1 %v12041_v8 }
 0x389   : > { %11687 = vmatpush1.bf16.msra.mxu0 %v13183_v30  ;;  %10817 = vmatprep.subr.bf16.mxu1 %v12043_v9 }
 0x38a   : > { %11689 = vmatprep.subr.bf16.mxu0 %v13164_v63 }
 0x38c   : > { %10118 = vmatmul.mubr.msk.f32.vlgmr.msra.gmra.mrb[2].mxu0 %vm340_vm0, %v13103_v11  ;;  %10818 = vmatpush3.bf16.msra.mxu1 %v12045_v12 }
 0x38d   : > { %11691 = vmatpush1.bf16.msra.mxu0 %v13162_v62  ;;  %1614 = vmatprep.mubr.f32.mxu0 %v12891_v10 }
 0x38e   : > { %11693 = vmatprep.subr.bf16.mxu0 %v13185_v31  ;;  %10819 = vmatprep.subr.bf16.mxu1 %v12047_v14 }
 0x390   : > { %10119 = vmatmul.mubr.msk.f32.gmra.mrb[8].mxu0 %vm340_vm0, %v13116_v15  ;;  %10820 = vmatpush3.bf16.msra.mxu1 %v12049_v17  ;;  %v12053_v17 = vld [vmem:[#allocation5 + $0x180] sm:$0xff]  }
 0x391   : > { %1685 = vmatprep.mubr.f32.mxu0 %v12891_v10  ;;  %10849 = vmatprep.subr.bf16.mxu1 %v12051_v18  ;;  %v12055_v18 = vld [vmem:[#allocation5 + $0x1c8] sm:$0xff]  }
 0x394   : > { %10120 = vmatmul.mubr.msk.f32.vlgmr.msra.gmra.mrb[10].mxu0 %vm340_vm0, %v13110_v13 }
 0x395   : > { %11695 = vmatpush1.bf16.msra.mxu0 %v13183_v30  ;;  %1691 = vmatprep.mubr.f32.mxu0 %v12891_v10 }
 0x396   : > { %10783 = vmatprep.subr.bf16.mxu0 %v11991_v32  ;;  %v12012_v32 = vld [vmem:[#allocation5 + $0x110] sm:$0xff]  }
 0x398   : > { %10121 = vmatmul.mubr.msk.f32.gmra.mrb[12].mxu0 %vm340_vm0, %v13119_v16 }
 0x399   : > { %1762 = vmatprep.mubr.f32.mxu0 %v12891_v10 }
 0x39c   : > { %10122 = vmatmul.mubr.msk.f32.vlgmr.msra.gmra.mrb[14].mxu0 %vm340_vm0, %v13110_v13 }
 0x39d   : > { %1768 = vmatprep.mubr.f32.mxu0 %v12891_v10  ;;  %10784 = vmatpush3.bf16.msra.mxu0 %v11992_v33  ;;  %v12013_v33 = vld [vmem:[#allocation5 + $0x158] sm:$0xff]  }
 0x39e   : > { %10785 = vmatprep.subr.bf16.mxu0 %v11993_v34  ;;  %v12014_v34 = vld [vmem:[#allocation5 + $0x118] sm:$0xff]  }
 0x3a0   : > { %10123 = vmatmul.mubr.msk.f32.gmra.mrb[16].mxu0 %vm340_vm0, %v13119_v16 }
 0x3a1   : > { %10786 = vmatpush3.bf16.msra.mxu0 %v11994_v35  ;;  %v12015_v35 = vld [vmem:[#allocation5 + $0x160] sm:$0xff]  }
 0x3a2   : > { %10787 = vmatprep.subr.bf16.mxu0 %v11995_v36  ;;  %v12016_v36 = vld [vmem:[#allocation5 + $0x120] sm:$0xff]  }
 0x3a5   : > { %10788 = vmatpush3.bf16.msra.mxu0 %v11996_v37  ;;  %v12017_v37 = vld [vmem:[#allocation5 + $0x168] sm:$0xff]  }
 0x3a6   : > { %10789 = vmatprep.subr.bf16.mxu0 %v11997_v38  ;;  %v12018_v38 = vld [vmem:[#allocation5 + $0x128] sm:$0xff]  }
 0x3a9   : > { %10790 = vmatpush3.bf16.msra.mxu0 %v11998_v39  ;;  %v12019_v39 = vld [vmem:[#allocation5 + $0x170] sm:$0xff]  }
 0x3aa   : > { %10791 = vmatprep.subr.bf16.mxu0 %v11999_v40  ;;  %v12021_v40 = vld [vmem:[#allocation5 + $0x178] sm:$0xff]  }
 0x3ad   : > { %10792 = vmatpush3.bf16.msra.mxu0 %v12000_v41  ;;  %v12022_v41 = vld [vmem:[#allocation5 + $0x138] sm:$0xff]  }
 0x3ae   : > { %10793 = vmatprep.subr.bf16.mxu0 %v12001_v42  ;;  %v12028_v42 = vld [vmem:[#allocation5 + $0x240] sm:$0xff]  }
 0x3b1   : > { %10794 = vmatpush3.bf16.msra.mxu0 %v12002_v43  ;;  %v12030_v43 = vld [vmem:[#allocation5 + $0x200] sm:$0xff]  }
 0x3b2   : > { %10795 = vmatprep.subr.bf16.mxu0 %v12003_v44  ;;  %v12032_v44 = vld [vmem:[#allocation5 + $0x248] sm:$0xff]  }
 0x3b5   : > { %10796 = vmatpush3.bf16.msra.mxu0 %v12004_v46  ;;  %v12034_v46 = vld [vmem:[#allocation5 + $0x208] sm:$0xff]  }
 0x3b6   : > { %10797 = vmatprep.subr.bf16.mxu0 %v12005_v49  ;;  %v12036_v49 = vld [vmem:[#allocation5 + $0x250] sm:$0xff]  }
 0x3b9   : > { %10798 = vmatpush3.bf16.msra.mxu0 %v12006_v45  ;;  %v12038_v45 = vld [vmem:[#allocation5 + $0x210] sm:$0xff]  }
 0x3ba   : > { %10827 = vmatprep.subr.bf16.mxu0 %v12007_v50  ;;  %v12040_v50 = vld [vmem:[#allocation5 + $0x258] sm:$0xff]  }
 0x41f   : > { %v1533_v19 = vpop.f32.mrb[2].mxu1 }
 0x420   : > { %v1535_v20 = vpop.f32.mrb[3].mxu1 }
 0x423   : > { %v1539_v21 = vpop.f32.mrb[12].mxu1 }
 0x424   : > { %v1967_v22 = vpack.c.bf16 %v1539_v21, %v1533_v19  ;;  %v1541_v23 = vpop.f32.mrb[13].mxu1  ;;  %v12057_v21 = vld [vmem:[#allocation5 + $0x188] sm:$0xff]  }
 0x425   : > { %v1968_v24 = vpack.c.bf16 %v1541_v23, %v1535_v20 }
 0x427   : > { %2587 = vmatprep.mubr.bf16.mxu0 %v1968_v24 }
 0x428   : > { %2588 = vmatmul.mubr.bf16.vlgmr.msra.gmra.mrb[20].mxu0 %v1967_v22  ;;  %v12059_v22 = vld [vmem:[#allocation5 + $0x1d0] sm:$0xff]  }
 0x429   : > { %10828 = vmatpush3.bf16.msra.mxu0 %v12008_v25  ;;  %2669 = vmatprep.mubr.bf16.mxu0 %v13164_v63  ;;  %v12020_v63 = vld [vmem:[#allocation5 + $0x130] sm:$0xff]  }
 0x42a   : > { %10829 = vmatprep.subr.bf16.mxu0 %v12009_v26 }
 0x42d   : > { %10830 = vmatpush3.bf16.msra.mxu0 %v12010_v27  ;;  %v12060_v27 = vld [vmem:[#allocation8 + $0x200] ss:$16 sps:$4 sm:$0xff]  }
 0x42e   : > { %10831 = vmatprep.subr.bf16.mxu0 %v12011_v29  ;;  %v12063_v29 = vld [vmem:[#allocation5 + $0x190] sm:$0xff]  }
 0x431   : > { %10832 = vmatpush3.bf16.msra.mxu0 %v12012_v32  ;;  %v12064_v32 = vld [vmem:[#allocation5 + $0x1d8] sm:$0xff]  }
 0x432   : > { %10833 = vmatprep.subr.bf16.mxu0 %v12013_v33  ;;  %v12067_v33 = vld [vmem:[#allocation8 + $0x224] ss:$16 sps:$4 sm:$0xff]  }
 0x435   : > { %10834 = vmatpush3.bf16.msra.mxu0 %v12014_v34 }
 0x436   : > { %10835 = vmatprep.subr.bf16.mxu0 %v12015_v35 }
 0x439   : > { %10836 = vmatpush3.bf16.msra.mxu0 %v12016_v36  ;;  %v12068_v36 = vld [vmem:[#allocation5 + $0x198] sm:$0xff]  }
 0x43a   : > { %10837 = vmatprep.subr.bf16.mxu0 %v12017_v37  ;;  %v12069_v37 = vld [vmem:[#allocation5 + $0x1e0] sm:$0xff]  }
 0x43d   : > { %10838 = vmatpush3.bf16.msra.mxu0 %v12018_v38  ;;  %v12072_v38 = vld [vmem:[#allocation8 + $0x244] ss:$16 sps:$4 sm:$0xff]  }
 0x43e   : > { %10839 = vmatprep.subr.bf16.mxu0 %v12019_v39 }
 0x441   : > { %10840 = vmatpush3.bf16.msra.mxu0 %v12020_v63 }
 0x442   : > { %10841 = vmatprep.subr.bf16.mxu0 %v12021_v40 }
 0x445   : > { %10842 = vmatpush3.bf16.msra.mxu0 %v12022_v41  ;;  %v12070_v41 = vld [vmem:[#allocation8 + $0x240] ss:$16 sps:$4 sm:$0xff]  }
 0x446   : > { %10871 = vmatprep.subr.bf16.mxu0 %v12028_v42  ;;  %v12073_v42 = vld [vmem:[#allocation5 + $0x1a0] sm:$0xff]  }
 0x448   : > { %2670 = vmatmul.mubr.bf16.vlgmr.msra.gmra.mrb[24].mxu0 %v13162_v62  ;;  %v12052_v62 = vld [vmem:[#allocation5 + $0x270] sm:$0xff]  }
 0x449   : > { %10872 = vmatpush3.bf16.msra.mxu0 %v12030_v43 }
 0x44a   : > { %10873 = vmatprep.subr.bf16.mxu0 %v12032_v44  ;;  %v12074_v44 = vld [vmem:[#allocation5 + $0x1e8] sm:$0xff]  }
 0x44d   : > { %10874 = vmatpush3.bf16.msra.mxu0 %v12034_v46  ;;  %v12077_v46 = vld [vmem:[#allocation8 + $0x264] ss:$16 sps:$4 sm:$0xff]  }
 0x44e   : > { %10875 = vmatprep.subr.bf16.mxu0 %v12036_v49  ;;  %v12075_v49 = vld [vmem:[#allocation8 + $0x260] ss:$16 sps:$4 sm:$0xff]  }
 0x451   : > { %10876 = vmatpush3.bf16.msra.mxu0 %v12038_v45  ;;  %v12078_v45 = vld [vmem:[#allocation5 + $0x1a8] sm:$0xff]  }
 0x452   : > { %10877 = vmatprep.subr.bf16.mxu0 %v12040_v50  ;;  %v12079_v50 = vld [vmem:[#allocation5 + $0x1f0] sm:$0xff]  }
 0x455   : > { %10878 = vmatpush3.bf16.msra.mxu0 %v12042_v51  ;;  %v12082_v51 = vld [vmem:[#allocation8 + $0x284] ss:$16 sps:$4 sm:$0xff]  }
 0x456   : > { %10879 = vmatprep.subr.bf16.mxu0 %v12044_v53  ;;  %v12080_v53 = vld [vmem:[#allocation8 + $0x280] ss:$16 sps:$4 sm:$0xff]  }
 0x459   : > { %10880 = vmatpush3.bf16.msra.mxu0 %v12046_v54  ;;  %v12083_v54 = vld [vmem:[#allocation5 + $0x1b0] sm:$0xff]  }
 0x45a   : > { %10881 = vmatprep.subr.bf16.mxu0 %v12048_v55  ;;  %v12084_v55 = vld [vmem:[#allocation5 + $0x1f8] sm:$0xff]  }
 0x45d   : > { %10882 = vmatpush3.bf16.msra.mxu0 %v12050_v56  ;;  %v12087_v56 = vld [vmem:[#allocation8 + $0x2a4] ss:$16 sps:$4 sm:$0xff]  }
 0x45e   : > { %10883 = vmatprep.subr.bf16.mxu0 %v12052_v62  ;;  %v12085_v62 = vld [vmem:[#allocation8 + $0x2a0] ss:$16 sps:$4 sm:$0xff]  }
 0x45f   : > { %v1610_v4 = vpop.f32.mrb[2].mxu0 }
 0x460   : > { %v1612_v5 = vpop.f32.mrb[3].mxu0 }
 0x461   : > { %10884 = vmatpush3.bf16.msra.mxu0 %v12054_v59  ;;  %v12088_v59 = vld [vmem:[#allocation5 + $0x1b8] sm:$0xff]  }
 0x462   : > { %10885 = vmatprep.subr.bf16.mxu0 %v12056_v61  ;;  %v12089_v61 = vld [vmem:[#allocation5 + $0x2c0] sm:$0xff]  }
 0x463   : > { %v1616_v8 = vpop.f32.mrb[8].mxu0 }
 0x464   : > { %v1969_v9 = vpack.c.bf16 %v1616_v8, %v1610_v4  ;;  %v1618_v12 = vpop.f32.mrb[9].mxu0  ;;  %v12092_v4 = vld [vmem:[#allocation8 + $0x2c4] ss:$16 sps:$4 sm:$0xff]  }
 0x465   : > { %v1970_v14 = vpack.c.bf16 %v1618_v12, %v1612_v5  ;;  %10886 = vmatpush3.bf16.msra.mxu0 %v12058_v6  ;;  %v12090_v5 = vld [vmem:[#allocation8 + $0x2c0] ss:$16 sps:$4 sm:$0xff]   ;;  %v12097_v8 = vld [vmem:[#allocation8 + $0x2e4] ss:$16 sps:$4 sm:$0xff]   ;;  %v12098_v12 = vld [vmem:[#allocation5 + $0x288] sm:$0xff]  }
 0x466   : > { %3434 = vmatprep.subr.bf16.mxu0 %v12062_v7  ;;  %v12093_v6 = vld [vmem:[#allocation5 + $0x280] sm:$0xff]   ;;  %v12094_v7 = vld [vmem:[#allocation5 + $0x2c8] sm:$0xff]  }
 0x467   : > { %2628 = vmatprep.mubr.bf16.mxu1 %v1970_v14  ;;  %v1687_v19 = vpop.f32.mrb[10].mxu0  ;;  %v12099_v14 = vld [vmem:[#allocation5 + $0x2d0] sm:$0xff]  }
 0x468   : > { %2629 = vmatmul.mubr.bf16.vlgmr.msra.gmra.mrb[16].mxu1 %v1969_v9  ;;  %v1689_v20 = vpop.f32.mrb[11].mxu0  ;;  %v12095_v9 = vld [vmem:[#allocation8 + $0x2e0] ss:$16 sps:$4 sm:$0xff]  }
 0x469   : > { %10850 = vmatpush3.bf16.msra.mxu1 %v12053_v17  ;;  %2710 = vmatprep.mubr.bf16.mxu1 %v13185_v31  ;;  %v12065_v31 = vld [vmem:[#allocation8 + $0x220] ss:$16 sps:$4 sm:$0xff]   ;;  %v12102_v17 = vld [vmem:[#allocation8 + $0x304] ss:$16 sps:$4 sm:$0xff]  }
 0x46a   : > { %10851 = vmatprep.subr.bf16.mxu1 %v12055_v18  ;;  %v12100_v18 = vld [vmem:[#allocation8 + $0x300] ss:$16 sps:$4 sm:$0xff]  }
 0x46b   : > { %v1693_v23 = vpop.f32.mrb[12].mxu0 }
 0x46c   : > { %v1975_v24 = vpack.c.bf16 %v1693_v23, %v1687_v19  ;;  %v1695_v25 = vpop.f32.mrb[13].mxu0  ;;  %v12103_v19 = vld [vmem:[#allocation5 + $0x290] sm:$0xff]   ;;  %v12109_v23 = vld [vmem:[#allocation5 + $0x2e0] sm:$0xff]  }
 0x46d   : > { %v1976_v26 = vpack.c.bf16 %v1695_v25, %v1689_v20  ;;  %10852 = vmatpush3.bf16.msra.mxu1 %v12057_v21  ;;  %v12104_v20 = vld [vmem:[#allocation5 + $0x2d8] sm:$0xff]   ;;  %v12107_v21 = vld [vmem:[#allocation8 + $0x324] ss:$16 sps:$4 sm:$0xff]   ;;  %v12110_v25 = vld [vmem:[#allocation8 + $0x340] ss:$16 sps:$4 sm:$0xff]  }
 0x46e   : > { %10853 = vmatprep.subr.bf16.mxu1 %v12059_v22  ;;  %v12108_v22 = vld [vmem:[#allocation5 + $0x298] sm:$0xff]  }
 0x46f   : > { %2751 = vmatprep.mubr.bf16.mxu0 %v1976_v26  ;;  %v13213_v34 = vpop.f32.mrb[14].mxu0  ;;  %v12113_v26 = vld [vmem:[#allocation5 + $0x2a0] sm:$0xff]  }
 0x470   : > { %2752 = vmatmul.mubr.bf16.vlgmr.msra.gmra.mrb[28].mxu0 %v1975_v24  ;;  %v13215_v35 = vpop.f32.mrb[15].mxu0  ;;  %v12112_v24 = vld [vmem:[#allocation8 + $0x344] ss:$16 sps:$4 sm:$0xff]  }
 0x471   : > { %10854 = vmatpush3.bf16.msra.mxu1 %v12063_v29  ;;  %3435 = vmatpush1.bf16.msra.mxu0 %v12060_v27  ;;  %v12114_v27 = vld [vmem:[#allocation5 + $0x2e8] sm:$0xff]   ;;  %v12117_v29 = vld [vmem:[#allocation8 + $0x364] ss:$16 sps:$4 sm:$0xff]  }
 0x472   : > { %3466 = vmatprep.mubr.bf16.mxu0 %v13149_v57  ;;  %10855 = vmatprep.subr.bf16.mxu1 %v12064_v32  ;;  %v12115_v32 = vld [vmem:[#allocation8 + $0x360] ss:$16 sps:$4 sm:$0xff]  }
 0x473   : > { %3436 = vmatprep.subr.bf16.mxu0 %v12067_v33  ;;  %v13218_v39 = vpop.f32.mrb[16].mxu0  ;;  %v12118_v33 = vld [vmem:[#allocation5 + $0x2a8] sm:$0xff]  }
 0x474   : > { %v1977_v63 = vpack.c.bf16 %v13218_v39, %v13213_v34  ;;  %v1772_v40 = vpop.f32.mrb[17].mxu0  ;;  %v12149_v34 = vld [vmem:[#allocation8 + $0x28c] ss:$16 sps:$4 sm:$0xff]   ;;  %v12147_v39 = vld [vmem:[#allocation8 + $0x288] ss:$16 sps:$4 sm:$0xff]  }
 0x475   : > { %10856 = vmatpush3.bf16.msra.mxu1 %v12068_v36  ;;  %3437 = vmatpush1.bf16.msra.mxu0 %v12065_v31  ;;  %v1978_v43 = vpack.c.bf16 %v1772_v40, %v13215_v35  ;;  %v12119_v35 = vld [vmem:[#allocation5 + $0x2f0] sm:$0xff]  }
 0x476   : > { %10857 = vmatprep.subr.bf16.mxu1 %v12069_v37  ;;  %3438 = vmatprep.subr.bf16.mxu0 %v12072_v38  ;;  %v12122_v31 = vld [vmem:[#allocation8 + $0x384] ss:$16 sps:$4 sm:$0xff]   ;;  %v12120_v36 = vld [vmem:[#allocation8 + $0x380] ss:$16 sps:$4 sm:$0xff]   ;;  %v12124_v38 = vld [vmem:[#allocation5 + $0x2f8] sm:$0xff]  }
 0x477   : > { %v12123_v37 = vld [vmem:[#allocation5 + $0x2b0] sm:$0xff]  }
 0x478   : > { %v12127_v40 = vld [vmem:[#allocation8 + $0x3a4] ss:$16 sps:$4 sm:$0xff]  }
 0x479   : > { %10858 = vmatpush3.bf16.msra.mxu1 %v12073_v42  ;;  %3439 = vmatpush1.bf16.msra.mxu0 %v12070_v41  ;;  %v12125_v41 = vld [vmem:[#allocation8 + $0x3a0] ss:$16 sps:$4 sm:$0xff]   ;;  %v12128_v42 = vld [vmem:[#allocation5 + $0x2b8] sm:$0xff]  }
 0x47a   : > { %10859 = vmatprep.subr.bf16.mxu1 %v12074_v44  ;;  %3440 = vmatprep.subr.bf16.mxu0 %v12077_v46  ;;  %v12134_v44 = vld [vmem:[#allocation8 + $0x20c] ss:$16 sps:$4 sm:$0xff]   ;;  %v12129_v46 = vld [vmem:[#allocation8 + $0x3c0] ss:$16 sps:$4 sm:$0xff]  }
 0x47d   : > { %10860 = vmatpush3.bf16.msra.mxu1 %v12078_v45  ;;  %3441 = vmatpush1.bf16.msra.mxu0 %v12075_v49  ;;  %v12132_v49 = vld [vmem:[#allocation8 + $0x208] ss:$16 sps:$4 sm:$0xff]   ;;  %v12137_v45 = vld [vmem:[#allocation8 + $0x3e4] ss:$16 sps:$4 sm:$0xff]  }
 0x47e   : > { %10861 = vmatprep.subr.bf16.mxu1 %v12079_v50  ;;  %3442 = vmatprep.subr.bf16.mxu0 %v12082_v51  ;;  %v12140_v50 = vld [vmem:[#allocation8 + $0x22c] ss:$16 sps:$4 sm:$0xff]   ;;  %v12135_v51 = vld [vmem:[#allocation8 + $0x3e0] ss:$16 sps:$4 sm:$0xff]  }
 0x481   : > { %10862 = vmatpush3.bf16.msra.mxu1 %v12083_v54  ;;  %3443 = vmatpush1.bf16.msra.mxu0 %v12080_v53  ;;  %v12138_v53 = vld [vmem:[#allocation8 + $0x228] ss:$16 sps:$4 sm:$0xff]   ;;  %v12143_v54 = vld [vmem:[#allocation8 + $0x24c] ss:$16 sps:$4 sm:$0xff]  }
 0x482   : > { %10863 = vmatprep.subr.bf16.mxu1 %v12084_v55  ;;  %3444 = vmatprep.subr.bf16.mxu0 %v12087_v56  ;;  %v12141_v55 = vld [vmem:[#allocation8 + $0x248] ss:$16 sps:$4 sm:$0xff]   ;;  %v12146_v56 = vld [vmem:[#allocation8 + $0x26c] ss:$16 sps:$4 sm:$0xff]  }
 0x485   : > { %10864 = vmatpush3.bf16.msra.mxu1 %v12088_v59  ;;  %3445 = vmatpush1.bf16.msra.mxu0 %v12085_v62  ;;  %v12144_v62 = vld [vmem:[#allocation8 + $0x268] ss:$16 sps:$4 sm:$0xff]   ;;  %v12155_v59 = vld [vmem:[#allocation8 + $0x2cc] ss:$16 sps:$4 sm:$0xff]  }
 0x486   : > { %10893 = vmatprep.subr.bf16.mxu1 %v12089_v61  ;;  %3446 = vmatprep.subr.bf16.mxu0 %v12092_v4  ;;  %v12153_v61 = vld [vmem:[#allocation8 + $0x2c8] ss:$16 sps:$4 sm:$0xff]   ;;  %v12158_v4 = vld [vmem:[#allocation8 + $0x2ec] ss:$16 sps:$4 sm:$0xff]  }
 0x488   : > { %2711 = vmatmul.mubr.bf16.vlgmr.msra.gmra.mrb[20].mxu1 %v13183_v30  ;;  %v12105_v30 = vld [vmem:[#allocation8 + $0x320] ss:$16 sps:$4 sm:$0xff]  }
 0x489   : > { %10894 = vmatpush3.bf16.msra.mxu1 %v12093_v6  ;;  %3447 = vmatpush1.bf16.msra.mxu0 %v12090_v5  ;;  %v12156_v5 = vld [vmem:[#allocation8 + $0x2e8] ss:$16 sps:$4 sm:$0xff]   ;;  %v12161_v6 = vld [vmem:[#allocation8 + $0x30c] ss:$16 sps:$4 sm:$0xff]  }
 0x48a   : > { %10895 = vmatprep.subr.bf16.mxu1 %v12094_v7  ;;  %3448 = vmatprep.subr.bf16.mxu0 %v12097_v8  ;;  %v12159_v7 = vld [vmem:[#allocation8 + $0x308] ss:$16 sps:$4 sm:$0xff]   ;;  %v12164_v8 = vld [vmem:[#allocation8 + $0x32c] ss:$16 sps:$4 sm:$0xff]  }
 0x48b   : > { %2792 = vmatprep.mubr.bf16.mxu1 %v1978_v43  ;;  %v12131_v43 = vld [vmem:[#allocation8 + $0x3c4] ss:$16 sps:$4 sm:$0xff]  }
 0x48d   : > { %10896 = vmatpush3.bf16.msra.mxu1 %v12098_v12  ;;  %3449 = vmatpush1.bf16.msra.mxu0 %v12095_v9  ;;  %v12162_v9 = vld [vmem:[#allocation8 + $0x328] ss:$16 sps:$4 sm:$0xff]   ;;  %v12167_v12 = vld [vmem:[#allocation8 + $0x34c] ss:$16 sps:$4 sm:$0xff]  }
 0x48e   : > { %10897 = vmatprep.subr.bf16.mxu1 %v12099_v14  ;;  %3450 = vmatprep.subr.bf16.mxu0 %v12102_v17  ;;  %v12165_v14 = vld [vmem:[#allocation8 + $0x348] ss:$16 sps:$4 sm:$0xff]   ;;  %v12170_v17 = vld [vmem:[#allocation8 + $0x36c] ss:$16 sps:$4 sm:$0xff]  }
 0x491   : > { %10898 = vmatpush3.bf16.msra.mxu1 %v12103_v19  ;;  %3451 = vmatpush1.bf16.msra.mxu0 %v12100_v18  ;;  %v12168_v18 = vld [vmem:[#allocation8 + $0x368] ss:$16 sps:$4 sm:$0xff]   ;;  %v12173_v19 = vld [vmem:[#allocation8 + $0x38c] ss:$16 sps:$4 sm:$0xff]  }
 0x492   : > { %10899 = vmatprep.subr.bf16.mxu1 %v12104_v20  ;;  %3452 = vmatprep.subr.bf16.mxu0 %v12107_v21  ;;  %v12171_v20 = vld [vmem:[#allocation8 + $0x388] ss:$16 sps:$4 sm:$0xff]   ;;  %v12176_v21 = vld [vmem:[#allocation8 + $0x3ac] ss:$16 sps:$4 sm:$0xff]  }
 0x495   : > { %10900 = vmatpush3.bf16.msra.mxu1 %v12108_v22  ;;  %3453 = vmatpush1.bf16.msra.mxu0 %v12105_v30  ;;  %v12174_v30 = vld [vmem:[#allocation8 + $0x3a8] ss:$16 sps:$4 sm:$0xff]   ;;  %v12179_v22 = vld [vmem:[#allocation8 + $0x3cc] ss:$16 sps:$4 sm:$0xff]  }
 0x496   : > { %10901 = vmatprep.subr.bf16.mxu1 %v12109_v23  ;;  %3454 = vmatprep.subr.bf16.mxu0 %v12112_v24  ;;  %v12177_v23 = vld [vmem:[#allocation8 + $0x3c8] ss:$16 sps:$4 sm:$0xff]   ;;  %v12182_v24 = vld [vmem:[#allocation8 + $0x3ec] ss:$16 sps:$4 sm:$0xff]  }
 0x499   : > { %10902 = vmatpush3.bf16.msra.mxu1 %v12113_v26  ;;  %3455 = vmatpush1.bf16.msra.mxu0 %v12110_v25  ;;  %v12180_v25 = vld [vmem:[#allocation8 + $0x3e8] ss:$16 sps:$4 sm:$0xff]   ;;  %v12183_v26 = vld [vmem:[#allocation8 + $0x400] ss:$16 sps:$4 sm:$0xff]  }
 0x49a   : > { %10903 = vmatprep.subr.bf16.mxu1 %v12114_v27  ;;  %3456 = vmatprep.subr.bf16.mxu0 %v12117_v29  ;;  %v12185_v27 = vld [vmem:[#allocation8 + $0x404] ss:$16 sps:$4 sm:$0xff]   ;;  %v12188_v29 = vld [vmem:[#allocation8 + $0x40c] ss:$16 sps:$4 sm:$0xff]  }
 0x49d   : > { %10904 = vmatpush3.bf16.msra.mxu1 %v12118_v33  ;;  %3457 = vmatpush1.bf16.msra.mxu0 %v12115_v32  ;;  %v12191_v32 = vld [vmem:[#allocation8 + $0x424] ss:$16 sps:$4 sm:$0xff]   ;;  %v12186_v33 = vld [vmem:[#allocation8 + $0x408] ss:$16 sps:$4 sm:$0xff]  }
 0x49e   : > { %10905 = vmatprep.subr.bf16.mxu1 %v12119_v35  ;;  %3458 = vmatprep.subr.bf16.mxu0 %v12122_v31  ;;  %v12189_v35 = vld [vmem:[#allocation8 + $0x420] ss:$16 sps:$4 sm:$0xff]   ;;  %v12194_v31 = vld [vmem:[#allocation8 + $0x42c] ss:$16 sps:$4 sm:$0xff]  }
 0x4a1   : > { %10906 = vmatpush3.bf16.msra.mxu1 %v12123_v37  ;;  %3459 = vmatpush1.bf16.msra.mxu0 %v12120_v36  ;;  %v12197_v36 = vld [vmem:[#allocation8 + $0x444] ss:$16 sps:$4 sm:$0xff]   ;;  %v12192_v37 = vld [vmem:[#allocation8 + $0x428] ss:$16 sps:$4 sm:$0xff]  }
 0x4a2   : > { %10907 = vmatprep.subr.bf16.mxu1 %v12124_v38  ;;  %3460 = vmatprep.subr.bf16.mxu0 %v12127_v40  ;;  %v12195_v38 = vld [vmem:[#allocation8 + $0x440] ss:$16 sps:$4 sm:$0xff]   ;;  %v12200_v40 = vld [vmem:[#allocation8 + $0x44c] ss:$16 sps:$4 sm:$0xff]  }
 0x4a5   : > { %10908 = vmatpush3.bf16.msra.mxu1 %v12128_v42  ;;  %3461 = vmatpush1.bf16.msra.mxu0 %v12125_v41  ;;  %v12203_v41 = vld [vmem:[#allocation8 + $0x464] ss:$16 sps:$4 sm:$0xff]   ;;  %v12198_v42 = vld [vmem:[#allocation8 + $0x448] ss:$16 sps:$4 sm:$0xff]  }
 0x4a6   : > { %3462 = vmatprep.subr.bf16.mxu0 %v12131_v43  ;;  %3520 = vmatprep.subr.bf16.mxu1 %v12134_v44  ;;  %v12201_v43 = vld [vmem:[#allocation8 + $0x460] ss:$16 sps:$4 sm:$0xff]   ;;  %v12206_v44 = vld [vmem:[#allocation8 + $0x46c] ss:$16 sps:$4 sm:$0xff]  }
 0x4a8   : > { %2793 = vmatmul.mubr.bf16.vlgmr.msra.gmra.mrb[24].mxu1 %v1977_v63  ;;  %v12150_v63 = vld [vmem:[#allocation8 + $0x2a8] ss:$16 sps:$4 sm:$0xff]  }
 0x4a9   : > { %3463 = vmatpush1.bf16.msra.mxu0 %v12129_v46  ;;  %3521 = vmatpush1.bf16.msra.mxu1 %v12132_v49  ;;  %v12204_v46 = vld [vmem:[#allocation8 + $0x468] ss:$16 sps:$4 sm:$0xff]   ;;  %v12212_v49 = vld [vmem:[#allocation8 + $0x48c] ss:$16 sps:$4 sm:$0xff]  }
 0x4aa   : > { %3552 = vmatprep.mubr.bf16.mxu1 %v13149_v57  ;;  %3464 = vmatprep.subr.bf16.mxu0 %v12137_v45  ;;  %v12152_v57 = vld [vmem:[#allocation8 + $0x2ac] ss:$16 sps:$4 sm:$0xff]  }
 0x4ab   : > { %3522 = vmatprep.subr.bf16.mxu1 %v12140_v50  ;;  %v12207_v50 = vld [vmem:[#allocation8 + $0x480] ss:$16 sps:$4 sm:$0xff]  }
 0x4ad   : > { %3465 = vmatpush1.bf16.msra.mxu0 %v12135_v51  ;;  %3523 = vmatpush1.bf16.msra.mxu1 %v12138_v53  ;;  %v12210_v51 = vld [vmem:[#allocation8 + $0x488] ss:$16 sps:$4 sm:$0xff]  }
 0x4ae   : > { %3524 = vmatprep.subr.bf16.mxu1 %v12143_v54  ;;  %3477 = vmatprep.subr.bf16.mxu0 %v12185_v27 }
 0x4b0   : > { %3467 = vmatmul.mubr.bf16.vlgmr.msra.gmra.mrb[32].mxu0 %v13147_v52 }
 0x4b1   : > { %3525 = vmatpush1.bf16.msra.mxu1 %v12141_v55  ;;  %3509 = vmatprep.mubr.bf16.mxu0 %v12892_v28 }
 0x4b2   : > { %3526 = vmatprep.subr.bf16.mxu1 %v12146_v56  ;;  %3478 = vmatpush1.bf16.msra.mxu0 %v12183_v26 }
 0x4b3   : > { %3479 = vmatprep.subr.bf16.mxu0 %v12191_v32 }
 0x4b5   : > { %3527 = vmatpush1.bf16.msra.mxu1 %v12144_v62  ;;  %v12215_v62 = vld [vmem:[#allocation8 + $0x4a4] ss:$16 sps:$4 sm:$0xff]  }
 0x4b6   : > { %3528 = vmatprep.subr.bf16.mxu1 %v12149_v34  ;;  %3480 = vmatpush1.bf16.msra.mxu0 %v12189_v35  ;;  %v12218_v34 = vld [vmem:[#allocation8 + $0x4ac] ss:$16 sps:$4 sm:$0xff]  }
 0x4b7   : > { %3481 = vmatprep.subr.bf16.mxu0 %v12197_v36 }
 0x4b9   : > { %3529 = vmatpush1.bf16.msra.mxu1 %v12147_v39 }
 0x4ba   : > { %3530 = vmatprep.subr.bf16.mxu1 %v12152_v57  ;;  %3482 = vmatpush1.bf16.msra.mxu0 %v12195_v38  ;;  %v12213_v57 = vld [vmem:[#allocation8 + $0x4a0] ss:$16 sps:$4 sm:$0xff]  }
 0x4bb   : > { %3483 = vmatprep.subr.bf16.mxu0 %v12203_v41 }
 0x4bd   : > { %3531 = vmatpush1.bf16.msra.mxu1 %v12150_v63  ;;  %v12216_v63 = vld [vmem:[#allocation8 + $0x4a8] ss:$16 sps:$4 sm:$0xff]  }
 0x4be   : > { %3532 = vmatprep.subr.bf16.mxu1 %v12155_v59  ;;  %3484 = vmatpush1.bf16.msra.mxu0 %v12201_v43  ;;  %v12221_v59 = vld [vmem:[#allocation8 + $0x4c4] ss:$16 sps:$4 sm:$0xff]  }
 0x4c1   : > { %3533 = vmatpush1.bf16.msra.mxu1 %v12153_v61  ;;  %v12224_v61 = vld [vmem:[#allocation8 + $0x4cc] ss:$16 sps:$4 sm:$0xff]  }
 0x4c2   : > { %3534 = vmatprep.subr.bf16.mxu1 %v12158_v4  ;;  %v12219_v4 = vld [vmem:[#allocation8 + $0x4c0] ss:$16 sps:$4 sm:$0xff]  }
 0x4c5   : > { %3535 = vmatpush1.bf16.msra.mxu1 %v12156_v5  ;;  %v12222_v5 = vld [vmem:[#allocation8 + $0x4c8] ss:$16 sps:$4 sm:$0xff]  }
 0x4c6   : > { %3536 = vmatprep.subr.bf16.mxu1 %v12161_v6  ;;  %v12227_v6 = vld [vmem:[#allocation8 + $0x4e4] ss:$16 sps:$4 sm:$0xff]  }
 0x4c9   : > { %3537 = vmatpush1.bf16.msra.mxu1 %v12159_v7  ;;  %v12230_v7 = vld [vmem:[#allocation8 + $0x4ec] ss:$16 sps:$4 sm:$0xff]  }
 0x4ca   : > { %3538 = vmatprep.subr.bf16.mxu1 %v12164_v8  ;;  %v12225_v8 = vld [vmem:[#allocation8 + $0x4e0] ss:$16 sps:$4 sm:$0xff]  }
 0x4cd   : > { %3539 = vmatpush1.bf16.msra.mxu1 %v12162_v9  ;;  %v12228_v9 = vld [vmem:[#allocation8 + $0x4e8] ss:$16 sps:$4 sm:$0xff]  }
 0x4ce   : > { %3540 = vmatprep.subr.bf16.mxu1 %v12167_v12 }
 0x4d1   : > { %3541 = vmatpush1.bf16.msra.mxu1 %v12165_v14 }
 0x4d2   : > { %3542 = vmatprep.subr.bf16.mxu1 %v12170_v17 }
 0x4d5   : > { %3543 = vmatpush1.bf16.msra.mxu1 %v12168_v18 }
 0x4d6   : > { %3544 = vmatprep.subr.bf16.mxu1 %v12173_v19 }
 0x4d9   : > { %3545 = vmatpush1.bf16.msra.mxu1 %v12171_v20 }
 0x4da   : > { %3546 = vmatprep.subr.bf16.mxu1 %v12176_v21 }
 0x4dd   : > { %3547 = vmatpush1.bf16.msra.mxu1 %v12174_v30 }
 0x4de   : > { %3548 = vmatprep.subr.bf16.mxu1 %v12179_v22 }
 0x4e1   : > { %3549 = vmatpush1.bf16.msra.mxu1 %v12177_v23 }
 0x4e2   : > { %3550 = vmatprep.subr.bf16.mxu1 %v12182_v24 }
 0x4e5   : > { %3551 = vmatpush1.bf16.msra.mxu1 %v12180_v25 }
 0x4e6   : > { %3563 = vmatprep.subr.bf16.mxu1 %v12188_v29 }
 0x4e8   : > { %3553 = vmatmul.mubr.bf16.vlgmr.msra.gmra.mrb[28].mxu1 %v13147_v52  ;;  %v12209_v52 = vld [vmem:[#allocation8 + $0x484] ss:$16 sps:$4 sm:$0xff]  }
 0x4e9   : > { %3564 = vmatpush1.bf16.msra.mxu1 %v12186_v33  ;;  %3595 = vmatprep.mubr.bf16.mxu1 %v12892_v28 }
 0x4ea   : > { %3565 = vmatprep.subr.bf16.mxu1 %v12194_v31  ;;  %3485 = vmatprep.subr.bf16.mxu0 %v12209_v52 }
 0x4eb   : > { %3486 = vmatpush1.bf16.msra.mxu0 %v12207_v50 }
 0x4ec   : > { %3487 = vmatprep.subr.bf16.mxu0 %v12215_v62  ;;  %v13233_v62 = vld [vmem:[#allocation2 + $0x20] ss:$8 sm:$0xf] }
 0x4ed   : > { %3566 = vmatpush1.bf16.msra.mxu1 %v12192_v37 }
 0x4ee   : > { %3567 = vmatprep.subr.bf16.mxu1 %v12200_v40 }
 0x4ef   : > { %3488 = vmatpush1.bf16.msra.mxu0 %v12213_v57 }
 0x4f0   : > { %3489 = vmatprep.subr.bf16.mxu0 %v12221_v59  ;;  %v12689_v59 = vld [vmem:[#allocation2 + $0x5] ss:$8 sm:$0x7] }
 0x4f1   : > { %3568 = vmatpush1.bf16.msra.mxu1 %v12198_v42 }
 0x4f2   : > { %3569 = vmatprep.subr.bf16.mxu1 %v12206_v44 }
 0x4f3   : > { %3490 = vmatpush1.bf16.msra.mxu0 %v12219_v4  ;;  %v13238_v4 = vld [vmem:[#allocation2 + $0x21] ss:$8 sm:$0xf] }
 0x4f4   : > { %3491 = vmatprep.subr.bf16.mxu0 %v12227_v6 }
 0x4f5   : > { %3570 = vmatpush1.bf16.msra.mxu1 %v12204_v46 }
 0x4f6   : > { %3571 = vmatprep.subr.bf16.mxu1 %v12212_v49 }
 0x4f7   : > { %3492 = vmatpush1.bf16.msra.mxu0 %v12225_v8 }
 0x4f9   : > { %3572 = vmatpush1.bf16.msra.mxu1 %v12210_v51 }
 0x4fa   : > { %3573 = vmatprep.subr.bf16.mxu1 %v12218_v34  ;;  %v5026_v34 = vrot.slane %v13233_v62, %v13174_v0 }
 0x4fb   : > { %v10799_v45 = vpop.f32.mrb[20].mxu0 }
 0x4fc   : > { %v10800_v53 = vpop.f32.mrb[21].mxu0 }
 0x4fd   : > { %v10801_v54 = vadd.f32 %v10800_v53, %v10799_v45  ;;  %v10802_v55 = vpop.f32.mrb[22].mxu0  ;;  %3574 = vmatpush1.bf16.msra.mxu1 %v12216_v63 }
 0x4fe   : > { %v10803_v56 = vpop.f32.mrb[23].mxu0  ;;  %3575 = vmatprep.subr.bf16.mxu1 %v12224_v61  ;;  %v2839_v61 = vrot.slane %v12689_v59, %v13174_v0 }
 0x4ff   : > { %v10804_v39 = vadd.f32 %v10803_v56, %v10802_v55  ;;  %v12687_v55 = vld [vmem:[#allocation2 + $0x4] ss:$8 sm:$0x7] }
 0x500   : > { %v2817_v56 = vrot.slane %v12687_v55, %v13174_v0 }
 0x501   : > { %3576 = vmatpush1.bf16.msra.mxu1 %v12222_v5  ;;  %v5055_v5 = vrot.slane %v13238_v4, %v13174_v0 }
 0x502   : > { %3577 = vmatprep.subr.bf16.mxu1 %v12230_v7 }
 0x505   : > { %3578 = vmatpush1.bf16.msra.mxu1 %v12228_v9 }
 0x51b   : > { %v10843_v12 = vpop.f32.mrb[24].mxu0 }
 0x51c   : > { %v10844_v14 = vpop.f32.mrb[25].mxu0 }
 0x51d   : > { %v10845_v17 = vadd.f32 %v10844_v14, %v10843_v12  ;;  %v10846_v18 = vpop.f32.mrb[26].mxu0 }
 0x51e   : > { %v10847_v19 = vpop.f32.mrb[27].mxu0 }
 0x51f   : > { %v10848_v20 = vadd.f32 %v10847_v19, %v10846_v18 }
 0x53b   : > { %v10821_v21 = vpop.f32.mrb[16].mxu1 }
 0x53c   : > { %v10822_v30 = vpop.f32.mrb[17].mxu1 }
 0x53d   : > { %v10823_v22 = vadd.f32 %v10822_v30, %v10821_v21  ;;  %v10824_v23 = vpop.f32.mrb[18].mxu1 }
 0x53e   : > { %v10825_v24 = vpop.f32.mrb[19].mxu1 }
 0x53f   : > { %v2631_v25 = vadd.f32 %v10823_v22, %v10801_v54  ;;  %v10826_v26 = vadd.f32 %v10825_v24, %v10824_v23 }
 0x541   : > { %v2634_v27 = vadd.f32 %v10826_v26, %v10804_v39  ;;  %v2672_v29 = vadd.f32 %v10845_v17, %v2631_v25  ;;  %v3607_v26 = vld [vmem:[#allocation2 + $0x6] ss:$8 sm:$0xf] }
 0x543   : > { %v10887_v32 = vpop.f32.mrb[28].mxu0  ;;  %v2675_v33 = vadd.f32 %v10848_v20, %v2634_v27  ;;  %v3609_v27 = vld [vmem:[#allocation2 + $0x7] ss:$8 sm:$0xf] }
 0x544   : > { %v10888_v35 = vpop.f32.mrb[29].mxu0 }
 0x545   : > { %v10889_v31 = vadd.f32 %v10888_v35, %v10887_v32  ;;  %v10890_v36 = vpop.f32.mrb[30].mxu0  ;;  %v3622_v32 = vrot.slane %v3607_v26, %v13174_v0  ;;  %v3626_v35 = vrot.slane %v3607_v26, %v13177_v3 }
 0x546   : > { %v10891_v37 = vpop.f32.mrb[31].mxu0 }
 0x547   : > { %v10892_v38 = vadd.f32 %v10891_v37, %v10890_v36  ;;  %v3651_v36 = vrot.slane %v3609_v27, %v13174_v0 }
 0x55b   : > { %v10865_v40 = vpop.f32.mrb[20].mxu1 }
 0x55c   : > { %v10866_v41 = vpop.f32.mrb[21].mxu1 }
 0x55d   : > { %v10867_v42 = vadd.f32 %v10866_v41, %v10865_v40  ;;  %v10868_v43 = vpop.f32.mrb[22].mxu1  ;;  %v3647_v40 = vrot.slane %v3609_v27, %v13131_v48  ;;  %v3655_v41 = vrot.slane %v3609_v27, %v13177_v3 }
 0x55e   : > { %v10869_v44 = vpop.f32.mrb[23].mxu1 }
 0x55f   : > { %v2713_v46 = vadd.f32 %v10867_v42, %v2672_v29  ;;  %v10870_v52 = vadd.f32 %v10869_v44, %v10868_v43  ;;  %v3614_v29 = vrot.slane %v3607_v26, %v13128_v47 }
 0x561   : > { %v2716_v49 = vadd.f32 %v10870_v52, %v2675_v33  ;;  %v2754_v45 = vadd.f32 %v10889_v31, %v2713_v46  ;;  %v3618_v33 = vrot.slane %v3607_v26, %v13131_v48  ;;  %v3643_v31 = vrot.slane %v3609_v27, %v13128_v47  ;;  %v12232_v26 = vld [vmem:[#allocation5 + $0x3c0] sm:$0xff]  }
 0x562   : > { %v12233_v27 = vld [vmem:[#allocation5 + $0x300] sm:$0xff]  }
 0x563   : > { %v2757_v50 = vadd.f32 %v10892_v38, %v2716_v49 }
 0x57b   : > { %v10909_v51 = vpop.f32.mrb[24].mxu1 }
 0x57c   : > { %v10910_v53 = vpop.f32.mrb[25].mxu1 }
 0x57d   : > { %v10911_v54 = vadd.f32 %v10910_v53, %v10909_v51  ;;  %v10912_v39 = vpop.f32.mrb[26].mxu1 }
 0x57e   : > { %v10913_v57 = vpop.f32.mrb[27].mxu1 }
 0x57f   : > { %v2795_v63 = vadd.f32 %v10911_v54, %v2754_v45  ;;  %v10914_v6 = vadd.f32 %v10913_v57, %v10912_v39 }
 0x581   : > { %v2823_v7 = vmul.f32 %v2817_v56, %v2795_v63  ;;  %v5037_v8 = vmul.f32 %v5026_v34, %v2795_v63  ;;  %v2798_v9 = vadd.f32 %v10914_v6, %v2757_v50 }
 0x583   : > { %v2845_v12 = vadd.f32 %v2839_v61, %v2823_v7  ;;  %v5066_v14 = vadd.f32 %v5055_v5, %v5037_v8  ;;  %v2826_v17 = vmul.f32 %v2817_v56, %v2798_v9  ;;  %v5041_v18 = vmul.f32 %v5026_v34, %v2798_v9 }
 0x585   : > { %v2848_v19 = vadd.f32 %v2839_v61, %v2826_v17  ;;  %v5070_v20 = vadd.f32 %v5055_v5, %v5041_v18  ;;  %v2851_v21 = vmax.f32 %v2845_v12, 0.0  ;;  %v5074_v30 = vmax.f32 %v5066_v14, 0.0 }
 0x587   : > { %v2854_v22 = vmax.f32 %v2848_v19, 0.0  ;;  %v5078_v23 = vmax.f32 %v5070_v20, 0.0 }
 0x589   : > { %v2953_v24 = vpack.c.bf16 %v2854_v22, %v2851_v21  ;;  %v13242_v25 = vpack.c.bf16 %v5078_v23, %v5074_v30 }
 0x58b   : > { %3510 = vmatmul.mubr.bf16.vlgmr.msra.gmra.mrb[32].mxu0 %v2953_v24  ;;  %3596 = vmatmul.mubr.bf16.vlgmr.msra.gmra.mrb[28].mxu1 %v2953_v24  ;;  %v12231_v24 = vld [vmem:[#allocation5 + $0x340] sm:$0xff]  }
 0x58c   : > { %3740 = vmatprep.mubr.f32.mxu0 %v12891_v10  ;;  %3817 = vmatprep.mubr.f32.mxu1 %v12891_v10 }
 0x65e   : > { %v3511_v37 = vpop.f32.mrb[32].mxu0  ;;  %v3597_v38 = vpop.f32.mrb[28].mxu1 }
 0x65f   : > { %v3631_v42 = vmul.f32 %v3614_v29, %v3511_v37  ;;  %v3633_v43 = vmul.f32 %v3622_v32, %v3597_v38  ;;  %v3513_v44 = vpop.f32.mrb[33].mxu0  ;;  %v3599_v46 = vpop.f32.mrb[29].mxu1  ;;  %v12241_v37 = vld [vmem:[#allocation5 + $0x310] sm:$0xff]  }
 0x660   : > { %v3632_v52 = vmul.f32 %v3618_v33, %v3513_v44  ;;  %v3634_v49 = vmul.f32 %v3626_v35, %v3599_v46  ;;  %v3515_v45 = vpop.f32.mrb[34].mxu0  ;;  %v3601_v50 = vpop.f32.mrb[30].mxu1  ;;  %v12242_v38 = vld [vmem:[#allocation5 + $0x390] sm:$0xff]   ;;  %v12247_v44 = vld [vmem:[#allocation5 + $0x360] sm:$0xff]  }
 0x661   : > { %v3660_v51 = vadd.f32 %v3643_v31, %v3631_v42  ;;  %v3662_v53 = vadd.f32 %v3651_v36, %v3633_v43  ;;  %v3635_v54 = vmul.f32 %v3614_v29, %v3515_v45  ;;  %v3637_v55 = vmul.f32 %v3622_v32, %v3601_v50  ;;  %v3517_v56 = vpop.f32.mrb[35].mxu0  ;;  %v3603_v34 = vpop.f32.mrb[31].mxu1  ;;  %v12234_v29 = vld [vmem:[#allocation5 + $0x380] sm:$0xff]   ;;  %v12235_v32 = vld [vmem:[#allocation5 + $0x348] sm:$0xff]   ;;  %v12245_v42 = vld [vmem:[#allocation5 + $0x318] sm:$0xff]  }
 0x662   : > { %v3661_v39 = vadd.f32 %v3647_v40, %v3632_v52  ;;  %v3663_v57 = vadd.f32 %v3655_v41, %v3634_v49  ;;  %v3636_v63 = vmul.f32 %v3618_v33, %v3517_v56  ;;  %v3638_v59 = vmul.f32 %v3626_v35, %v3603_v34  ;;  %v12236_v33 = vld [vmem:[#allocation5 + $0x3c8] sm:$0xff]   ;;  %v12246_v43 = vld [vmem:[#allocation5 + $0x398] sm:$0xff]   ;;  %v12248_v46 = vld [vmem:[#allocation5 + $0x3e0] sm:$0xff]  }
 0x663   : > { %v3664_v61 = vadd.f32 %v3643_v31, %v3635_v54  ;;  %v3666_v5 = vadd.f32 %v3651_v36, %v3637_v55  ;;  %v3668_v8 = vmax.f32 %v3660_v51, 0.0  ;;  %v3670_v9 = vmax.f32 %v3662_v53, 0.0  ;;  %v12238_v35 = vld [vmem:[#allocation5 + $0x388] sm:$0xff]   ;;  %v12239_v31 = vld [vmem:[#allocation5 + $0x350] sm:$0xff]   ;;  %v12249_v52 = vld [vmem:[#allocation5 + $0x320] sm:$0xff]  }
 0x664   : > { %v3665_v6 = vadd.f32 %v3647_v40, %v3636_v63  ;;  %v3667_v7 = vadd.f32 %v3655_v41, %v3638_v59  ;;  %v3669_v17 = vmax.f32 %v3661_v39, 0.0  ;;  %v3671_v18 = vmax.f32 %v3663_v57, 0.0  ;;  %v12240_v36 = vld [vmem:[#allocation5 + $0x3d0] sm:$0xff]   ;;  %v12243_v40 = vld [vmem:[#allocation5 + $0x358] sm:$0xff]   ;;  %v12251_v49 = vld [vmem:[#allocation5 + $0x368] sm:$0xff]  }
 0x665   : > { %v3672_v12 = vmax.f32 %v3664_v61, 0.0  ;;  %v3674_v14 = vmax.f32 %v3666_v5, 0.0  ;;  %v12244_v41 = vld [vmem:[#allocation5 + $0x3d8] sm:$0xff]   ;;  %v12252_v45 = vld [vmem:[#allocation5 + $0x3e8] sm:$0xff]   ;;  %v12255_v53 = vld [vmem:[#allocation5 + $0x370] sm:$0xff]  }
 0x666   : > { %v3673_v19 = vmax.f32 %v3665_v6, 0.0  ;;  %v3675_v20 = vmax.f32 %v3667_v7, 0.0  ;;  %v12253_v50 = vld [vmem:[#allocation5 + $0x328] sm:$0xff]   ;;  %v12256_v54 = vld [vmem:[#allocation5 + $0x3f0] sm:$0xff]   ;;  %v12259_v34 = vld [vmem:[#allocation5 + $0x378] sm:$0xff]  }
 0x667   : > { %v13254_v21 = vpack.c.bf16 %v3672_v12, %v3668_v8  ;;  %v13256_v30 = vpack.c.bf16 %v3674_v14, %v3670_v9  ;;  %v12254_v51 = vld [vmem:[#allocation5 + $0x3a8] sm:$0xff]   ;;  %v12257_v55 = vld [vmem:[#allocation5 + $0x330] sm:$0xff]   ;;  %v12260_v39 = vld [vmem:[#allocation5 + $0x3f8] sm:$0xff]  }
 0x668   : > { %v13258_v22 = vpack.c.bf16 %v3673_v19, %v3669_v17  ;;  %v13260_v23 = vpack.c.bf16 %v3675_v20, %v3671_v18  ;;  %v12258_v56 = vld [vmem:[#allocation5 + $0x3b0] sm:$0xff]   ;;  %v12261_v57 = vld [vmem:[#allocation5 + $0x338] sm:$0xff]   ;;  %v12263_v59 = vld [vmem:[#allocation5 + $0x440] sm:$0xff]  }
 0x669   : > { %v12262_v63 = vld [vmem:[#allocation5 + $0x3b8] sm:$0xff]   ;;  %v12264_v61 = vld [vmem:[#allocation5 + $0x4c0] sm:$0xff]  }
 0x66a   : > { %11697 = vmatprep.subr.bf16.mxu0 %v13258_v22  ;;  %11701 = vmatprep.subr.bf16.mxu1 %v13260_v23 }
 0x66b   : > { %11699 = vmatpush1.bf16.msra.mxu0 %v13254_v21  ;;  %11703 = vmatpush1.bf16.msra.mxu1 %v13256_v30 }
 0x66c   : > { %11705 = vmatprep.subr.bf16.mxu0 %v13258_v22  ;;  %11709 = vmatprep.subr.bf16.mxu1 %v13260_v23 }
 0x66e   : > { %10316 = vmatmul.mubr.msk.f32.vlgmr.msra.gmra.mrb[18].mxu0 %vm340_vm0, %v13103_v11  ;;  %10318 = vmatmul.mubr.msk.f32.vlgmr.msra.gmra.mrb[14].mxu1 %vm340_vm0, %v13103_v11 }
 0x66f   : > { %11707 = vmatpush1.bf16.msra.mxu0 %v13254_v21  ;;  %11711 = vmatpush1.bf16.msra.mxu1 %v13256_v30 }
 0x670   : > { %3746 = vmatprep.mubr.f32.mxu0 %v12891_v10  ;;  %3823 = vmatprep.mubr.f32.mxu1 %v12891_v10 }
 0x671   : > { %10915 = vmatprep.subr.bf16.mxu0 %v12231_v24  ;;  %10937 = vmatprep.subr.bf16.mxu1 %v12232_v26  ;;  %v12265_v26 = vld [vmem:[#allocation5 + $0x400] sm:$0xff]  }
 0x672   : > { %10317 = vmatmul.mubr.msk.f32.gmra.mrb[36].mxu0 %vm340_vm0, %v13116_v15  ;;  %10319 = vmatmul.mubr.msk.f32.gmra.mrb[32].mxu1 %vm340_vm0, %v13116_v15  ;;  %v12237_v15 = vld [vmem:[#allocation5 + $0x308] sm:$0xff]  }
 0x673   : > { %3894 = vmatprep.mubr.f32.mxu0 %v12891_v10  ;;  %3971 = vmatprep.mubr.f32.mxu1 %v12891_v10 }
 0x676   : > { %10320 = vmatmul.mubr.msk.f32.vlgmr.msra.gmra.mrb[38].mxu0 %vm340_vm0, %v13110_v13  ;;  %10322 = vmatmul.mubr.msk.f32.vlgmr.msra.gmra.mrb[34].mxu1 %vm340_vm0, %v13110_v13 }
 0x677   : > { %3900 = vmatprep.mubr.f32.mxu0 %v12891_v10  ;;  %3977 = vmatprep.mubr.f32.mxu1 %v12891_v10 }
 0x678   : > { %10916 = vmatpush3.bf16.msra.mxu0 %v12233_v27  ;;  %10938 = vmatpush3.bf16.msra.mxu1 %v12234_v29  ;;  %v12266_v27 = vld [vmem:[#allocation5 + $0x480] sm:$0xff]   ;;  %v12267_v29 = vld [vmem:[#allocation5 + $0x448] sm:$0xff]  }
 0x679   : > { %10917 = vmatprep.subr.bf16.mxu0 %v12235_v32  ;;  %10939 = vmatprep.subr.bf16.mxu1 %v12236_v33  ;;  %v12268_v32 = vld [vmem:[#allocation5 + $0x4c8] sm:$0xff]  }
 0x67a   : > { %10321 = vmatmul.mubr.msk.f32.gmra.mrb[40].mxu0 %vm340_vm0, %v13119_v16  ;;  %10323 = vmatmul.mubr.msk.f32.gmra.mrb[36].mxu1 %vm340_vm0, %v13119_v16  ;;  %v12250_v16 = vld [vmem:[#allocation5 + $0x3a0] sm:$0xff]  }
 0x67c   : > { %10918 = vmatpush3.bf16.msra.mxu0 %v12237_v15  ;;  %10940 = vmatpush3.bf16.msra.mxu1 %v12238_v35 }
 0x67d   : > { %10919 = vmatprep.subr.bf16.mxu0 %v12239_v31  ;;  %10941 = vmatprep.subr.bf16.mxu1 %v12240_v36  ;;  %v12269_v36 = vld [vmem:[#allocation5 + $0x408] sm:$0xff]  }
 0x680   : > { %10920 = vmatpush3.bf16.msra.mxu0 %v12241_v37  ;;  %10942 = vmatpush3.bf16.msra.mxu1 %v12242_v38  ;;  %v12270_v37 = vld [vmem:[#allocation5 + $0x488] sm:$0xff]   ;;  %v12271_v38 = vld [vmem:[#allocation5 + $0x450] sm:$0xff]  }
 0x681   : > { %10921 = vmatprep.subr.bf16.mxu0 %v12243_v40  ;;  %10943 = vmatprep.subr.bf16.mxu1 %v12244_v41  ;;  %v12272_v40 = vld [vmem:[#allocation5 + $0x4d0] sm:$0xff]  }
 0x684   : > { %10922 = vmatpush3.bf16.msra.mxu0 %v12245_v42  ;;  %10944 = vmatpush3.bf16.msra.mxu1 %v12246_v43 }
 0x685   : > { %10923 = vmatprep.subr.bf16.mxu0 %v12247_v44  ;;  %10945 = vmatprep.subr.bf16.mxu1 %v12248_v46 }
 0x688   : > { %10924 = vmatpush3.bf16.msra.mxu0 %v12249_v52  ;;  %10946 = vmatpush3.bf16.msra.mxu1 %v12250_v16 }
 0x689   : > { %10925 = vmatprep.subr.bf16.mxu0 %v12251_v49  ;;  %10947 = vmatprep.subr.bf16.mxu1 %v12252_v45  ;;  %v12275_v45 = vld [vmem:[#allocation5 + $0x458] sm:$0xff]  }
 0x68c   : > { %10926 = vmatpush3.bf16.msra.mxu0 %v12253_v50  ;;  %10948 = vmatpush3.bf16.msra.mxu1 %v12254_v51  ;;  %v12276_v50 = vld [vmem:[#allocation5 + $0x4d8] sm:$0xff]  }
 0x68d   : > { %10927 = vmatprep.subr.bf16.mxu0 %v12255_v53  ;;  %10949 = vmatprep.subr.bf16.mxu1 %v12256_v54  ;;  %v12277_v51 = vld [vmem:[#allocation5 + $0x418] sm:$0xff]   ;;  %v12279_v54 = vld [vmem:[#allocation5 + $0x460] sm:$0xff]  }
 0x68e   : > { %v12278_v53 = vld [vmem:[#allocation5 + $0x498] sm:$0xff]  }
 0x690   : > { %10928 = vmatpush3.bf16.msra.mxu0 %v12257_v55  ;;  %10950 = vmatpush3.bf16.msra.mxu1 %v12258_v56  ;;  %v12280_v55 = vld [vmem:[#allocation5 + $0x4e0] sm:$0xff]  }
 0x691   : > { %10929 = vmatprep.subr.bf16.mxu0 %v12259_v34  ;;  %10951 = vmatprep.subr.bf16.mxu1 %v12260_v39  ;;  %v12281_v56 = vld [vmem:[#allocation5 + $0x420] sm:$0xff]   ;;  %v12283_v39 = vld [vmem:[#allocation5 + $0x468] sm:$0xff]  }
 0x692   : > { %v12282_v34 = vld [vmem:[#allocation5 + $0x4a0] sm:$0xff]  }
 0x694   : > { %10930 = vmatpush3.bf16.msra.mxu0 %v12261_v57  ;;  %10952 = vmatpush3.bf16.msra.mxu1 %v12262_v63  ;;  %v12284_v57 = vld [vmem:[#allocation5 + $0x4e8] sm:$0xff]  }
 0x695   : > { %10959 = vmatprep.subr.bf16.mxu0 %v12263_v59  ;;  %10981 = vmatprep.subr.bf16.mxu1 %v12264_v61  ;;  %v12285_v63 = vld [vmem:[#allocation5 + $0x428] sm:$0xff]   ;;  %v12287_v61 = vld [vmem:[#allocation5 + $0x470] sm:$0xff]  }
 0x696   : > { %v12286_v59 = vld [vmem:[#allocation5 + $0x4a8] sm:$0xff]  }
 0x741   : > { %v3742_v5 = vpop.f32.mrb[18].mxu0  ;;  %v3819_v6 = vpop.f32.mrb[14].mxu1 }
 0x742   : > { %v3744_v7 = vpop.f32.mrb[19].mxu0  ;;  %v3821_v8 = vpop.f32.mrb[15].mxu1 }
 0x745   : > { %v3748_v9 = vpop.f32.mrb[36].mxu0  ;;  %v3825_v12 = vpop.f32.mrb[32].mxu1 }
 0x746   : > { %v4176_v14 = vpack.c.bf16 %v3748_v9, %v3742_v5  ;;  %v4178_v17 = vpack.c.bf16 %v3825_v12, %v3819_v6  ;;  %v3750_v18 = vpop.f32.mrb[37].mxu0  ;;  %v3827_v19 = vpop.f32.mrb[33].mxu1  ;;  %v12288_v5 = vld [vmem:[#allocation5 + $0x4f0] sm:$0xff]   ;;  %v12292_v9 = vld [vmem:[#allocation5 + $0x4f8] sm:$0xff]  }
 0x747   : > { %v4177_v20 = vpack.c.bf16 %v3750_v18, %v3744_v7  ;;  %v4179_v24 = vpack.c.bf16 %v3827_v19, %v3821_v8  ;;  %v12289_v6 = vld [vmem:[#allocation5 + $0x430] sm:$0xff]   ;;  %v12291_v8 = vld [vmem:[#allocation5 + $0x478] sm:$0xff]   ;;  %v12296_v18 = vld [vmem:[#allocation5 + $0x5c0] sm:$0xff]  }
 0x748   : > { %v12290_v7 = vld [vmem:[#allocation5 + $0x4b0] sm:$0xff]   ;;  %v12293_v12 = vld [vmem:[#allocation5 + $0x438] sm:$0xff]   ;;  %v12297_v19 = vld [vmem:[#allocation5 + $0x500] sm:$0xff]  }
 0x749   : > { %4796 = vmatprep.mubr.bf16.mxu0 %v4177_v20  ;;  %4837 = vmatprep.mubr.bf16.mxu1 %v4179_v24  ;;  %v13292_v33 = vpop.f32.mrb[38].mxu0  ;;  %v13294_v15 = vpop.f32.mrb[34].mxu1  ;;  %v12298_v20 = vld [vmem:[#allocation5 + $0x580] sm:$0xff]   ;;  %v12299_v24 = vld [vmem:[#allocation5 + $0x548] sm:$0xff]  }
 0x74a   : > { %4797 = vmatmul.mubr.bf16.vlgmr.msra.gmra.mrb[44].mxu0 %v4176_v14  ;;  %4838 = vmatmul.mubr.bf16.vlgmr.msra.gmra.mrb[40].mxu1 %v4178_v17  ;;  %v13296_v35 = vpop.f32.mrb[39].mxu0  ;;  %v13298_v31 = vpop.f32.mrb[35].mxu1  ;;  %v12294_v14 = vld [vmem:[#allocation5 + $0x4b8] sm:$0xff]   ;;  %v12295_v17 = vld [vmem:[#allocation5 + $0x540] sm:$0xff]  }
 0x74b   : > { %10960 = vmatpush3.bf16.msra.mxu0 %v12265_v26  ;;  %10982 = vmatpush3.bf16.msra.mxu1 %v12266_v27  ;;  %v12300_v26 = vld [vmem:[#allocation5 + $0x5c8] sm:$0xff]  }
 0x74c   : > { %4878 = vmatprep.mubr.bf16.mxu0 %v13258_v22  ;;  %4919 = vmatprep.mubr.bf16.mxu1 %v13260_v23  ;;  %v12273_v22 = vld [vmem:[#allocation5 + $0x410] sm:$0xff]   ;;  %v12301_v27 = vld [vmem:[#allocation5 + $0x508] sm:$0xff]  }
 0x74d   : > { %10961 = vmatprep.subr.bf16.mxu0 %v12267_v29  ;;  %10983 = vmatprep.subr.bf16.mxu1 %v12268_v32  ;;  %v13302_v41 = vpop.f32.mrb[40].mxu0  ;;  %v13304_v42 = vpop.f32.mrb[36].mxu1  ;;  %v12274_v23 = vld [vmem:[#allocation5 + $0x490] sm:$0xff]   ;;  %v12302_v29 = vld [vmem:[#allocation5 + $0x588] sm:$0xff]  }
 0x74e   : > { %v4184_v43 = vpack.c.bf16 %v13302_v41, %v13292_v33  ;;  %v13308_v44 = vpop.f32.mrb[41].mxu0  ;;  %v4186_v46 = vpack.c.bf16 %v13304_v42, %v13294_v15  ;;  %v13312_v52 = vpop.f32.mrb[37].mxu1  ;;  %v12303_v32 = vld [vmem:[#allocation5 + $0x550] sm:$0xff]   ;;  %v12327_v33 = vld [vmem:[#allocation5 + $0x640] sm:$0xff]   ;;  %v12329_v15 = vld [vmem:[#allocation5 + $0x648] sm:$0xff]  }
 0x74f   : > { %10962 = vmatpush3.bf16.msra.mxu0 %v12269_v36  ;;  %10984 = vmatpush3.bf16.msra.mxu1 %v12270_v37  ;;  %v4185_v16 = vpack.c.bf16 %v13308_v44, %v13296_v35  ;;  %v4187_v49 = vpack.c.bf16 %v13312_v52, %v13298_v31  ;;  %v12304_v36 = vld [vmem:[#allocation5 + $0x5d0] sm:$0xff]   ;;  %v12307_v37 = vld [vmem:[#allocation5 + $0x558] sm:$0xff]   ;;  %v12311_v35 = vld [vmem:[#allocation5 + $0x560] sm:$0xff]  }
 0x750   : > { %10963 = vmatprep.subr.bf16.mxu0 %v12271_v38  ;;  %10985 = vmatprep.subr.bf16.mxu1 %v12272_v40  ;;  %v12308_v38 = vld [vmem:[#allocation5 + $0x5d8] sm:$0xff]   ;;  %v12312_v44 = vld [vmem:[#allocation5 + $0x5e0] sm:$0xff]   ;;  %v12331_v41 = vld [vmem:[#allocation5 + $0x650] sm:$0xff]  }
 0x751   : > { %v12309_v40 = vld [vmem:[#allocation5 + $0x518] sm:$0xff]   ;;  %v12313_v31 = vld [vmem:[#allocation5 + $0x520] sm:$0xff]   ;;  %v12332_v42 = vld [vmem:[#allocation5 + $0x610] sm:$0xff]  }
 0x752   : > { %v12314_v52 = vld [vmem:[#allocation5 + $0x5a0] sm:$0xff]  }
 0x753   : > { %10964 = vmatpush3.bf16.msra.mxu0 %v12273_v22  ;;  %10986 = vmatpush3.bf16.msra.mxu1 %v12274_v23  ;;  %v12310_v22 = vld [vmem:[#allocation5 + $0x598] sm:$0xff]   ;;  %v12315_v23 = vld [vmem:[#allocation5 + $0x568] sm:$0xff]  }
 0x754   : > { %10965 = vmatprep.subr.bf16.mxu0 %v12275_v45  ;;  %10987 = vmatprep.subr.bf16.mxu1 %v12276_v50  ;;  %v12318_v45 = vld [vmem:[#allocation5 + $0x5a8] sm:$0xff]   ;;  %v12319_v50 = vld [vmem:[#allocation5 + $0x570] sm:$0xff]  }
 0x757   : > { %10966 = vmatpush3.bf16.msra.mxu0 %v12277_v51  ;;  %10988 = vmatpush3.bf16.msra.mxu1 %v12278_v53  ;;  %v12320_v51 = vld [vmem:[#allocation5 + $0x5f0] sm:$0xff]  }
 0x758   : > { %10967 = vmatprep.subr.bf16.mxu0 %v12279_v54  ;;  %10989 = vmatprep.subr.bf16.mxu1 %v12280_v55  ;;  %v12321_v53 = vld [vmem:[#allocation5 + $0x530] sm:$0xff]   ;;  %v12323_v55 = vld [vmem:[#allocation5 + $0x578] sm:$0xff]  }
 0x759   : > { %v12322_v54 = vld [vmem:[#allocation5 + $0x5b0] sm:$0xff]  }
 0x75b   : > { %10968 = vmatpush3.bf16.msra.mxu0 %v12281_v56  ;;  %10990 = vmatpush3.bf16.msra.mxu1 %v12282_v34  ;;  %v12324_v56 = vld [vmem:[#allocation5 + $0x5f8] sm:$0xff]  }
 0x75c   : > { %10969 = vmatprep.subr.bf16.mxu0 %v12283_v39  ;;  %10991 = vmatprep.subr.bf16.mxu1 %v12284_v57  ;;  %v12325_v34 = vld [vmem:[#allocation5 + $0x538] sm:$0xff]   ;;  %v5080_v57 = vmul.u32 2, %v13091_v1  ;;  %v12330_v1 = vld [vmem:[#allocation5 + $0x608] sm:$0xff]  }
 0x75d   : > { %v12326_v39 = vld [vmem:[#allocation5 + $0x5b8] sm:$0xff]  }
 0x75e   : > { %vm5081_vm5 = vcmp.eq.s32.totalorder %v13093_v2, %v5080_v57 }
 0x75f   : > { %10970 = vmatpush3.bf16.msra.mxu0 %v12285_v63  ;;  %10992 = vmatpush3.bf16.msra.mxu1 %v12286_v59  ;;  %v5082_v63 = vadd.s32 1, %v5080_v57  ;;  %v12340_v59 = vld [vmem:[#allocation5 + $0x620] sm:$0xff]  }
 0x760   : > { %10971 = vmatprep.subr.bf16.mxu0 %v12287_v61  ;;  %10993 = vmatprep.subr.bf16.mxu1 %v12288_v5  ;;  %v12343_v61 = vld [vmem:[#allocation5 + $0x668] sm:$0xff]  }
 0x761   : > { %vm5083_vm6 = vcmp.eq.s32.totalorder %v13093_v2, %v5082_v63  ;;  %v12335_v2 = vld [vmem:[#allocation5 + $0x658] sm:$0xff]   ;;  %v12344_v5 = vld [vmem:[#allocation5 + $0x628] sm:$0xff]  }
 0x762   : > { %vm5084_vm7 = vmor %vm5081_vm5, %vm5083_vm6 }
 0x763   : > { %10972 = vmatpush3.bf16.msra.mxu0 %v12289_v6  ;;  %10994 = vmatpush3.bf16.msra.mxu1 %v12290_v7  ;;  %v12347_v6 = vld [vmem:[#allocation5 + $0x670] sm:$0xff]  }
 0x764   : > { %10973 = vmatprep.subr.bf16.mxu0 %v12291_v8  ;;  %10995 = vmatprep.subr.bf16.mxu1 %v12292_v9  ;;  %v12348_v7 = vld [vmem:[#allocation5 + $0x630] sm:$0xff]  }
 0x767   : > { %10974 = vmatpush3.bf16.msra.mxu0 %v12293_v12  ;;  %10996 = vmatpush3.bf16.msra.mxu1 %v12294_v14 }
 0x768   : > { %11003 = vmatprep.subr.bf16.mxu0 %v12295_v17  ;;  %11025 = vmatprep.subr.bf16.mxu1 %v12296_v18 }
 0x76a   : > { %4879 = vmatmul.mubr.bf16.vlgmr.msra.gmra.mrb[48].mxu0 %v13254_v21  ;;  %4920 = vmatmul.mubr.bf16.vlgmr.msra.gmra.mrb[44].mxu1 %v13256_v30  ;;  %v12305_v21 = vld [vmem:[#allocation5 + $0x510] sm:$0xff]  }
 0x76b   : > { %11004 = vmatpush3.bf16.msra.mxu0 %v12297_v19  ;;  %11026 = vmatpush3.bf16.msra.mxu1 %v12298_v20  ;;  %v12306_v30 = vld [vmem:[#allocation5 + $0x590] sm:$0xff]  }
 0x76c   : > { %11005 = vmatprep.subr.bf16.mxu0 %v12299_v24  ;;  %11027 = vmatprep.subr.bf16.mxu1 %v12300_v26 }
 0x76d   : > { %4960 = vmatprep.mubr.bf16.mxu0 %v4185_v16  ;;  %5001 = vmatprep.mubr.bf16.mxu1 %v4187_v49  ;;  %v12316_v16 = vld [vmem:[#allocation5 + $0x5e8] sm:$0xff]  }
 0x76e   : > { %v12317_v49 = vld [vmem:[#allocation5 + $0x528] sm:$0xff]  }
 0x76f   : > { %11006 = vmatpush3.bf16.msra.mxu0 %v12301_v27  ;;  %11028 = vmatpush3.bf16.msra.mxu1 %v12302_v29 }
 0x770   : > { %11007 = vmatprep.subr.bf16.mxu0 %v12303_v32  ;;  %11029 = vmatprep.subr.bf16.mxu1 %v12304_v36 }
 0x773   : > { %11008 = vmatpush3.bf16.msra.mxu0 %v12305_v21  ;;  %11030 = vmatpush3.bf16.msra.mxu1 %v12306_v30 }
 0x774   : > { %11009 = vmatprep.subr.bf16.mxu0 %v12307_v37  ;;  %11031 = vmatprep.subr.bf16.mxu1 %v12308_v38 }
 0x777   : > { %11010 = vmatpush3.bf16.msra.mxu0 %v12309_v40  ;;  %11032 = vmatpush3.bf16.msra.mxu1 %v12310_v22 }
 0x778   : > { %11011 = vmatprep.subr.bf16.mxu0 %v12311_v35  ;;  %11033 = vmatprep.subr.bf16.mxu1 %v12312_v44 }
 0x77b   : > { %11012 = vmatpush3.bf16.msra.mxu0 %v12313_v31  ;;  %11034 = vmatpush3.bf16.msra.mxu1 %v12314_v52  ;;  %v12351_v31 = vld [vmem:[#allocation5 + $0x678] sm:$0xff]  }
 0x77c   : > { %11013 = vmatprep.subr.bf16.mxu0 %v12315_v23  ;;  %11035 = vmatprep.subr.bf16.mxu1 %v12316_v16  ;;  %v12352_v52 = vld [vmem:[#allocation5 + $0x638] sm:$0xff]  }
 0x77f   : > { %11014 = vmatpush3.bf16.msra.mxu0 %v12317_v49  ;;  %11036 = vmatpush3.bf16.msra.mxu1 %v12318_v45 }
 0x780   : > { %11015 = vmatprep.subr.bf16.mxu0 %v12319_v50  ;;  %11037 = vmatprep.subr.bf16.mxu1 %v12320_v51 }
 0x783   : > { %11016 = vmatpush3.bf16.msra.mxu0 %v12321_v53  ;;  %11038 = vmatpush3.bf16.msra.mxu1 %v12322_v54 }
 0x784   : > { %11017 = vmatprep.subr.bf16.mxu0 %v12323_v55  ;;  %11039 = vmatprep.subr.bf16.mxu1 %v12324_v56 }
 0x787   : > { %11018 = vmatpush3.bf16.msra.mxu0 %v12325_v34  ;;  %11040 = vmatpush3.bf16.msra.mxu1 %v12326_v39 }
 0x788   : > { %11713 = vmatprep.subr.bf16.mxu1 %v13153_v60  ;;  %v13339_v60 = vsel %vm5084_vm7, 0.5, %v12891_v10  ;;  %11047 = vmatprep.subr.bf16.mxu0 %v12327_v33 }
 0x78a   : > { %4961 = vmatmul.mubr.bf16.vlgmr.msra.gmra.mrb[52].mxu0 %v4184_v43  ;;  %5002 = vmatmul.mubr.bf16.vlgmr.msra.gmra.mrb[48].mxu1 %v4186_v46  ;;  %v12336_v43 = vld [vmem:[#allocation5 + $0x618] sm:$0xff]   ;;  %v12339_v46 = vld [vmem:[#allocation5 + $0x660] sm:$0xff]  }
 0x78b   : > { %11715 = vmatpush1.bf16.msra.mxu1 %v13151_v58  ;;  %5153 = vmatprep.mubr.f32.mxu1 %v12891_v10  ;;  %v12328_v58 = vld [vmem:[#allocation5 + $0x600] sm:$0xff]  }
 0x78c   : > { %11048 = vmatpush3.bf16.msra.mxu0 %v12328_v58 }
 0x78d   : > { %11049 = vmatprep.subr.bf16.mxu0 %v12329_v15 }
 0x790   : > { %11050 = vmatpush3.bf16.msra.mxu0 %v12330_v1 }
 0x791   : > { %11051 = vmatprep.subr.bf16.mxu0 %v12331_v41 }
 0x792   : > { %10420 = vmatmul.mubr.msk.f32.vlgmr.msra.gmra.mrb[38].mxu1 %vm340_vm0, %v13339_v60 }
 0x793   : > { %5224 = vmatprep.mubr.f32.mxu1 %v12891_v10 }
 0x794   : > { %11052 = vmatpush3.bf16.msra.mxu0 %v12332_v42  ;;  %v5030_v42 = vrot.slane %v13233_v62, %v13177_v3  ;;  %v12334_v62 = vld [vmem:[#allocation5 + $0x680] sm:$0xff]  }
 0x795   : > { %11053 = vmatprep.subr.bf16.mxu0 %v12335_v2 }
 0x798   : > { %11054 = vmatpush3.bf16.msra.mxu0 %v12336_v43 }
 0x799   : > { %11055 = vmatprep.subr.bf16.mxu0 %v12339_v46 }
 0x79c   : > { %11056 = vmatpush3.bf16.msra.mxu0 %v12340_v59 }
 0x79d   : > { %11057 = vmatprep.subr.bf16.mxu0 %v12343_v61  ;;  %v5059_v61 = vrot.slane %v13238_v4, %v13177_v3  ;;  %v12338_v3 = vld [vmem:[#allocation5 + $0x688] sm:$0xff]   ;;  %v12341_v4 = vld [vmem:[#allocation5 + $0x6d0] sm:$0xff]  }
 0x7a0   : > { %11058 = vmatpush3.bf16.msra.mxu0 %v12344_v5 }
 0x7a1   : > { %11059 = vmatprep.subr.bf16.mxu0 %v12347_v6 }
 0x7a4   : > { %11060 = vmatpush3.bf16.msra.mxu0 %v12348_v7 }
 0x7a5   : > { %11061 = vmatprep.subr.bf16.mxu0 %v12351_v31  ;;  %v12361_v31 = vld [vmem:[#allocation7 + $0x184] ss:$8 sps:$4 sm:$0xff]  }
 0x7a8   : > { %11062 = vmatpush3.bf16.msra.mxu0 %v12352_v52  ;;  %v12364_v52 = vld [vmem:[#allocation7 + $0x194] ss:$8 sps:$4 sm:$0xff]  }
 0x7a9   : > { %5673 = vmatprep.subr.bf16.mxu0 %v12361_v31 }
 0x81d   : > { %v10931_v8 = vpop.f32.mrb[44].mxu0  ;;  %v10953_v9 = vpop.f32.mrb[40].mxu1 }
 0x81e   : > { %v10932_v12 = vpop.f32.mrb[45].mxu0  ;;  %v10954_v14 = vpop.f32.mrb[41].mxu1 }
 0x81f   : > { %v10933_v17 = vadd.f32 %v10932_v12, %v10931_v8  ;;  %v10955_v18 = vadd.f32 %v10954_v14, %v10953_v9  ;;  %v10934_v19 = vpop.f32.mrb[46].mxu0  ;;  %v10956_v20 = vpop.f32.mrb[42].mxu1 }
 0x820   : > { %v10935_v24 = vpop.f32.mrb[47].mxu0  ;;  %v10957_v26 = vpop.f32.mrb[43].mxu1 }
 0x821   : > { %v4840_v27 = vadd.f32 %v10955_v18, %v10933_v17  ;;  %v10936_v29 = vadd.f32 %v10935_v24, %v10934_v19  ;;  %v10958_v32 = vadd.f32 %v10957_v26, %v10956_v20  ;;  %v12333_v18 = vld [vmem:[#allocation5 + $0x6c0] sm:$0xff]   ;;  %v12337_v19 = vld [vmem:[#allocation5 + $0x6c8] sm:$0xff]   ;;  %v12342_v20 = vld [vmem:[#allocation5 + $0x690] sm:$0xff]  }
 0x822   : > { %v12345_v24 = vld [vmem:[#allocation5 + $0x6d8] sm:$0xff]  }
 0x823   : > { %v4843_v36 = vadd.f32 %v10958_v32, %v10936_v29  ;;  %v12346_v26 = vld [vmem:[#allocation5 + $0x698] sm:$0xff]   ;;  %v12353_v29 = vld [vmem:[#allocation5 + $0x6e8] sm:$0xff]  }
 0x824   : > { %v12354_v32 = vld [vmem:[#allocation5 + $0x6a8] sm:$0xff]  }
 0x83d   : > { %v10975_v21 = vpop.f32.mrb[48].mxu0  ;;  %v10997_v30 = vpop.f32.mrb[44].mxu1 }
 0x83e   : > { %v10976_v37 = vpop.f32.mrb[49].mxu0  ;;  %v10998_v38 = vpop.f32.mrb[45].mxu1 }
 0x83f   : > { %v10977_v40 = vadd.f32 %v10976_v37, %v10975_v21  ;;  %v10999_v22 = vadd.f32 %v10998_v38, %v10997_v30  ;;  %v10978_v35 = vpop.f32.mrb[50].mxu0  ;;  %v11000_v44 = vpop.f32.mrb[46].mxu1  ;;  %v12356_v21 = vld [vmem:[#allocation5 + $0x6b0] sm:$0xff]  }
 0x840   : > { %v10979_v23 = vpop.f32.mrb[51].mxu0  ;;  %v11001_v16 = vpop.f32.mrb[47].mxu1 }
 0x841   : > { %v4881_v49 = vadd.f32 %v10977_v40, %v4840_v27  ;;  %v10980_v45 = vadd.f32 %v10979_v23, %v10978_v35  ;;  %v11002_v50 = vadd.f32 %v11001_v16, %v11000_v44  ;;  %v12349_v27 = vld [vmem:[#allocation5 + $0x6e0] sm:$0xff]   ;;  %v12358_v35 = vld [vmem:[#allocation5 + $0x6b8] sm:$0xff]  }
 0x842   : > { %v12359_v44 = vld [vmem:[#allocation7 + $0x180] ss:$8 sps:$4 sm:$0xff]   ;;  %v12362_v23 = vld [vmem:[#allocation7 + $0x190] ss:$8 sps:$4 sm:$0xff]   ;;  %v12367_v16 = vld [vmem:[#allocation7 + $0x1a4] ss:$8 sps:$4 sm:$0xff]  }
 0x843   : > { %v4922_v51 = vadd.f32 %v10999_v22, %v4881_v49  ;;  %v4884_v53 = vadd.f32 %v10980_v45, %v4843_v36  ;;  %v12355_v36 = vld [vmem:[#allocation5 + $0x6f0] sm:$0xff]   ;;  %v12357_v22 = vld [vmem:[#allocation5 + $0x6f8] sm:$0xff]   ;;  %v12365_v49 = vld [vmem:[#allocation7 + $0x1a0] ss:$8 sps:$4 sm:$0xff]  }
 0x844   : > { %v12368_v45 = vld [vmem:[#allocation7 + $0x1b0] ss:$8 sps:$4 sm:$0xff]  }
 0x845   : > { %v4925_v54 = vadd.f32 %v11002_v50, %v4884_v53  ;;  %v12370_v50 = vld [vmem:[#allocation7 + $0x1b4] ss:$8 sps:$4 sm:$0xff]  }
 0x85d   : > { %v11019_v55 = vpop.f32.mrb[52].mxu0  ;;  %v11041_v56 = vpop.f32.mrb[48].mxu1 }
 0x85e   : > { %v11020_v34 = vpop.f32.mrb[53].mxu0  ;;  %v11042_v39 = vpop.f32.mrb[49].mxu1 }
 0x85f   : > { %v11021_v57 = vadd.f32 %v11020_v34, %v11019_v55  ;;  %v11043_v63 = vadd.f32 %v11042_v39, %v11041_v56  ;;  %v11022_v33 = vpop.f32.mrb[54].mxu0  ;;  %v11044_v58 = vpop.f32.mrb[50].mxu1 }
 0x860   : > { %v11023_v15 = vpop.f32.mrb[55].mxu0  ;;  %v11045_v1 = vpop.f32.mrb[51].mxu1 }
 0x861   : > { %v4963_v41 = vadd.f32 %v11021_v57, %v4922_v51  ;;  %v11024_v2 = vadd.f32 %v11023_v15, %v11022_v33  ;;  %v11046_v43 = vadd.f32 %v11045_v1, %v11044_v58  ;;  %v12373_v51 = vld [vmem:[#allocation7 + $0x1c4] ss:$8 sps:$4 sm:$0xff]   ;;  %v12376_v58 = vld [vmem:[#allocation7 + $0x1d4] ss:$8 sps:$4 sm:$0xff]   ;;  %v12374_v15 = vld [vmem:[#allocation7 + $0x1d0] ss:$8 sps:$4 sm:$0xff]  }
 0x862   : > { %v12379_v1 = vld [vmem:[#allocation7 + $0x1e4] ss:$8 sps:$4 sm:$0xff]  }
 0x863   : > { %v5004_v46 = vadd.f32 %v11043_v63, %v4963_v41  ;;  %v4966_v59 = vadd.f32 %v11024_v2, %v4925_v54  ;;  %v12377_v41 = vld [vmem:[#allocation7 + $0x1e0] ss:$8 sps:$4 sm:$0xff]   ;;  %v12380_v2 = vld [vmem:[#allocation7 + $0x1f0] ss:$8 sps:$4 sm:$0xff]  }
 0x865   : > { %v5038_v5 = vmul.f32 %v5030_v42, %v5004_v46  ;;  %v5007_v6 = vadd.f32 %v11046_v43, %v4966_v59  ;;  %v5155_v30 = vpop.f32.mrb[38].mxu1  ;;  %v12383_v43 = vld [vmem:[#allocation5 + $0x7c0] sm:$0xff]  }
 0x866   : > { %v5295_v37 = vpack.c.bf16 %v5155_v30, %v5155_v30  ;;  %v5157_v38 = vpop.f32.mrb[39].mxu1  ;;  %v12397_v30 = vld [vmem:[#allocation5 + $0x7f8] sm:$0xff]  }
 0x867   : > { %v5042_v7 = vmul.f32 %v5030_v42, %v5007_v6  ;;  %v5067_v8 = vadd.f32 %v5059_v61, %v5038_v5  ;;  %v5296_v40 = vpack.c.bf16 %v5157_v38, %v5157_v38  ;;  %v12382_v42 = vld [vmem:[#allocation7 + $0x1f4] ss:$8 sps:$4 sm:$0xff]   ;;  %v5571_v6 = vld [vmem:[#allocation2 + $0x22] ss:$0 sm:$0xff] }
 0x868   : > { %v5715_v38 = vld [vmem:[#allocation2 + $0x24] ss:$8 sm:$0x3] }
 0x869   : > { %v5071_v9 = vadd.f32 %v5059_v61, %v5042_v7  ;;  %v5075_v12 = vmax.f32 %v5067_v8, 0.0  ;;  %5523 = vmatprep.mubr.bf16.mxu0 %v5296_v40  ;;  %v5717_v40 = vld [vmem:[#allocation2 + $0x25] ss:$8 sm:$0x3] }
 0x86a   : > { %5524 = vmatmul.mubr.bf16.vlgmr.msra.gmra.mrb[56].mxu0 %v5295_v37  ;;  %v12398_v37 = vld [vmem:[#allocation5 + $0x7b8] sm:$0xff]  }
 0x86b   : > { %v5079_v14 = vmax.f32 %v5071_v9, 0.0  ;;  %5705 = vmatprep.mubr.bf16.mxu0 %v12892_v28  ;;  %5674 = vmatpush1.bf16.msra.mxu0 %v12359_v44  ;;  %v12371_v28 = vld [vmem:[#allocation7 + $0x1c0] ss:$8 sps:$4 sm:$0xff]   ;;  %v5735_v44 = vrot.slane %v5717_v40, %v13128_v47 }
 0x86c   : > { %5675 = vmatprep.subr.bf16.mxu0 %v12364_v52  ;;  %v5572_v9 = vld [vmem:[#allocation2 + $0x23] ss:$0 sm:$0xff]  ;;  %v5739_v52 = vrot.slane %v5717_v40, %v13131_v48 }
 0x86d   : > { %v11716_v17 = vpack.c.bf16 %v5079_v14, %v5075_v12 }
 0x86f   : > { %11717 = vmatprep.subr.bf16.mxu1 %v11716_v17  ;;  %5676 = vmatpush1.bf16.msra.mxu0 %v12362_v23 }
 0x870   : > { %11719 = vmatpush1.bf16.msra.mxu1 %v13242_v25  ;;  %v12350_v25 = vld [vmem:[#allocation5 + $0x6a0] sm:$0xff]   ;;  %5677 = vmatprep.subr.bf16.mxu0 %v12367_v16 }
 0x871   : > { %11069 = vmatprep.subr.bf16.mxu1 %v12333_v18  ;;  %v12384_v18 = vld [vmem:[#allocation5 + $0x780] sm:$0xff]  }
 0x873   : > { %10421 = vmatmul.mubr.msk.f32.vlgmr.msra.gmra.mrb[52].mxu1 %vm340_vm0, %v13339_v60  ;;  %5678 = vmatpush1.bf16.msra.mxu0 %v12365_v49 }
 0x874   : > { %11070 = vmatpush3.bf16.msra.mxu1 %v12334_v62  ;;  %5679 = vmatprep.subr.bf16.mxu0 %v12370_v50 }
 0x875   : > { %11071 = vmatprep.subr.bf16.mxu1 %v12337_v19  ;;  %v12385_v19 = vld [vmem:[#allocation5 + $0x7c8] sm:$0xff]  }
 0x877   : > { %5680 = vmatpush1.bf16.msra.mxu0 %v12368_v45 }
 0x878   : > { %11072 = vmatpush3.bf16.msra.mxu1 %v12338_v3  ;;  %5681 = vmatprep.subr.bf16.mxu0 %v12373_v51  ;;  %v12386_v3 = vld [vmem:[#allocation5 + $0x788] sm:$0xff]  }
 0x879   : > { %11073 = vmatprep.subr.bf16.mxu1 %v12341_v4  ;;  %v12387_v4 = vld [vmem:[#allocation5 + $0x7d0] sm:$0xff]  }
 0x87b   : > { %5682 = vmatpush1.bf16.msra.mxu0 %v12371_v28 }
 0x87c   : > { %11074 = vmatpush3.bf16.msra.mxu1 %v12342_v20  ;;  %5683 = vmatprep.subr.bf16.mxu0 %v12376_v58  ;;  %v12388_v20 = vld [vmem:[#allocation5 + $0x790] sm:$0xff]  }
 0x87d   : > { %11075 = vmatprep.subr.bf16.mxu1 %v12345_v24  ;;  %v12389_v24 = vld [vmem:[#allocation5 + $0x7d8] sm:$0xff]   ;;  %v12404_v58 = vld [vmem:[#allocation5 + $0x710] sm:$0xff]  }
 0x87f   : > { %5684 = vmatpush1.bf16.msra.mxu0 %v12374_v15  ;;  %v12405_v15 = vld [vmem:[#allocation5 + $0x758] sm:$0xff]  }
 0x880   : > { %11076 = vmatpush3.bf16.msra.mxu1 %v12346_v26  ;;  %5685 = vmatprep.subr.bf16.mxu0 %v12379_v1  ;;  %v12390_v26 = vld [vmem:[#allocation5 + $0x798] sm:$0xff]  }
 0x881   : > { %11077 = vmatprep.subr.bf16.mxu1 %v12349_v27  ;;  %v12391_v27 = vld [vmem:[#allocation5 + $0x7e0] sm:$0xff]   ;;  %v12406_v1 = vld [vmem:[#allocation5 + $0x718] sm:$0xff]  }
 0x883   : > { %5686 = vmatpush1.bf16.msra.mxu0 %v12377_v41  ;;  %v12407_v41 = vld [vmem:[#allocation5 + $0x760] sm:$0xff]  }
 0x884   : > { %11078 = vmatpush3.bf16.msra.mxu1 %v12350_v25  ;;  %5687 = vmatprep.subr.bf16.mxu0 %v12382_v42  ;;  %v12392_v25 = vld [vmem:[#allocation5 + $0x7a0] sm:$0xff]  }
 0x885   : > { %11079 = vmatprep.subr.bf16.mxu1 %v12353_v29  ;;  %v12393_v29 = vld [vmem:[#allocation5 + $0x7e8] sm:$0xff]   ;;  %v12408_v42 = vld [vmem:[#allocation5 + $0x720] sm:$0xff]  }
 0x887   : > { %5688 = vmatpush1.bf16.msra.mxu0 %v12380_v2  ;;  %v12409_v2 = vld [vmem:[#allocation5 + $0x768] sm:$0xff]  }
 0x888   : > { %11080 = vmatpush3.bf16.msra.mxu1 %v12354_v32  ;;  %11113 = vmatprep.subr.bf16.mxu0 %v12383_v43  ;;  %v12394_v32 = vld [vmem:[#allocation5 + $0x7a8] sm:$0xff]  }
 0x889   : > { %11081 = vmatprep.subr.bf16.mxu1 %v12355_v36  ;;  %v12395_v36 = vld [vmem:[#allocation5 + $0x7f0] sm:$0xff]   ;;  %v12410_v43 = vld [vmem:[#allocation5 + $0x728] sm:$0xff]  }
 0x88c   : > { %11082 = vmatpush3.bf16.msra.mxu1 %v12356_v21  ;;  %v12396_v21 = vld [vmem:[#allocation5 + $0x7b0] sm:$0xff]  }
 0x88d   : > { %11083 = vmatprep.subr.bf16.mxu1 %v12357_v22  ;;  %v5722_v22 = vrot.slane %v5715_v38, %v13128_v47 }
 0x890   : > { %11084 = vmatpush3.bf16.msra.mxu1 %v12358_v35  ;;  %v5726_v35 = vrot.slane %v5715_v38, %v13131_v48 }
 0x93d   : > { %v11063_v34 = vpop.f32.mrb[56].mxu0 }
 0x93e   : > { %v11064_v39 = vpop.f32.mrb[57].mxu0 }
 0x93f   : > { %v11065_v57 = vadd.f32 %v11064_v39, %v11063_v34  ;;  %v11066_v63 = vpop.f32.mrb[58].mxu0  ;;  %v12400_v39 = vld [vmem:[#allocation5 + $0x700] sm:$0xff]  }
 0x940   : > { %v11067_v33 = vpop.f32.mrb[59].mxu0  ;;  %v12402_v63 = vld [vmem:[#allocation5 + $0x708] sm:$0xff]  }
 0x941   : > { %v12403_v33 = vld [vmem:[#allocation5 + $0x750] sm:$0xff]  }
 0x946   : > { %v5226_v53 = vpop.f32.mrb[52].mxu1 }
 0x947   : > { %v5228_v54 = vpop.f32.mrb[53].mxu1  ;;  %v5297_v56 = vpack.c.bf16 %v5226_v53, %v5226_v53 }
 0x948   : > { %v5298_v55 = vpack.c.bf16 %v5228_v54, %v5228_v54 }
 0x94a   : > { %5563 = vmatprep.mubr.bf16.mxu1 %v5298_v55 }
 0x94b   : > { %5564 = vmatmul.mubr.bf16.vlgmr.msra.gmra.mrb[56].mxu1 %v5297_v56  ;;  %v12399_v56 = vld [vmem:[#allocation5 + $0x740] sm:$0xff]  }
 0x94c   : > { %5813 = vmatprep.mubr.f32.mxu1 %v12891_v10 }
 0xa1e   : > { %v11085_v46 = vpop.f32.mrb[56].mxu1 }
 0xa1f   : > { %v11086_v59 = vpop.f32.mrb[57].mxu1 }
 0xa20   : > { %v11087_v61 = vadd.f32 %v11086_v59, %v11085_v46  ;;  %v11088_v5 = vpop.f32.mrb[58].mxu1  ;;  %v12411_v46 = vld [vmem:[#allocation5 + $0x770] sm:$0xff]  }
 0xa21   : > { %v11089_v7 = vpop.f32.mrb[59].mxu1  ;;  %v12412_v59 = vld [vmem:[#allocation5 + $0x730] sm:$0xff]   ;;  %v12414_v5 = vld [vmem:[#allocation5 + $0x738] sm:$0xff]  }
 0xa22   : > { %v13353_v8 = vadd.f32 %v11087_v61, %v11065_v57  ;;  %v12401_v57 = vld [vmem:[#allocation5 + $0x748] sm:$0xff]   ;;  %v12413_v61 = vld [vmem:[#allocation5 + $0x778] sm:$0xff]  }
 0xa23   : > { %v12431_v7 = vld [vmem:[#allocation7 + $0x200] ss:$8 sps:$4 sm:$0xff]  }
 0xa24   : > { %v5573_v12 = vmul.f32 %v5571_v6, %v13353_v8  ;;  %v12415_v6 = vld [vmem:[#allocation5 + $0x840] sm:$0xff]  }
 0xa26   : > { %v5574_v14 = vadd.f32 %v5573_v12, %v5572_v9  ;;  %v12433_v9 = vld [vmem:[#allocation7 + $0x204] ss:$8 sps:$4 sm:$0xff]   ;;  %v12436_v12 = vld [vmem:[#allocation7 + $0x214] ss:$8 sps:$4 sm:$0xff]  }
 0xa28   : > { %v5575_v17 = vmax.f32 %v5574_v14, 0.0  ;;  %v12434_v14 = vld [vmem:[#allocation7 + $0x210] ss:$8 sps:$4 sm:$0xff]  }
 0xa2a   : > { %v5592_v62 = vpack.c.bf16 %v5575_v17, %v5575_v17  ;;  %v12439_v17 = vld [vmem:[#allocation7 + $0x224] ss:$8 sps:$4 sm:$0xff]  }
 0xa2c   : > { %5706 = vmatmul.mubr.bf16.vlgmr.msra.gmra.mrb[60].mxu0 %v5592_v62  ;;  %v12442_v62 = vld [vmem:[#allocation7 + $0x234] ss:$8 sps:$4 sm:$0xff]  }
 0xa2d   : > { %11114 = vmatpush3.bf16.msra.mxu0 %v12384_v18  ;;  %v12437_v18 = vld [vmem:[#allocation7 + $0x220] ss:$8 sps:$4 sm:$0xff]  }
 0xa2e   : > { %11115 = vmatprep.subr.bf16.mxu0 %v12385_v19  ;;  %v12440_v19 = vld [vmem:[#allocation7 + $0x230] ss:$8 sps:$4 sm:$0xff]  }
 0xa31   : > { %11116 = vmatpush3.bf16.msra.mxu0 %v12386_v3  ;;  %v12445_v3 = vld [vmem:[#allocation7 + $0x244] ss:$8 sps:$4 sm:$0xff]  }
 0xa32   : > { %11117 = vmatprep.subr.bf16.mxu0 %v12387_v4  ;;  %v12443_v4 = vld [vmem:[#allocation7 + $0x240] ss:$8 sps:$4 sm:$0xff]  }
 0xa35   : > { %11118 = vmatpush3.bf16.msra.mxu0 %v12388_v20 }
 0xa36   : > { %11119 = vmatprep.subr.bf16.mxu0 %v12389_v24 }
 0xa39   : > { %11120 = vmatpush3.bf16.msra.mxu0 %v12390_v26 }
 0xa3a   : > { %11121 = vmatprep.subr.bf16.mxu0 %v12391_v27 }
 0xa3d   : > { %11122 = vmatpush3.bf16.msra.mxu0 %v12392_v25  ;;  %v12416_v25 = vld [vmem:[#allocation5 + $0x800] sm:$0xff]  }
 0xa3e   : > { %11123 = vmatprep.subr.bf16.mxu0 %v12393_v29 }
 0xa41   : > { %11124 = vmatpush3.bf16.msra.mxu0 %v12394_v32 }
 0xa42   : > { %11125 = vmatprep.subr.bf16.mxu0 %v12395_v36  ;;  %v12417_v36 = vld [vmem:[#allocation5 + $0x848] sm:$0xff]  }
 0xa45   : > { %11126 = vmatpush3.bf16.msra.mxu0 %v12396_v21 }
 0xa46   : > { %11127 = vmatprep.subr.bf16.mxu0 %v12397_v30 }
 0xa49   : > { %11128 = vmatpush3.bf16.msra.mxu0 %v12398_v37 }
 0xa4a   : > { %6629 = vmatprep.subr.bf16.mxu0 %v12433_v9  ;;  %v12473_v9 = vld [vmem:[#allocation7 + $0x2e0] ss:$8 sps:$4 sm:$0xff]  }
 0xaff   : > { %v5707_v31 = vpop.f32.mrb[60].mxu0 }
 0xb00   : > { %v5729_v23 = vmul.f32 %v5722_v22, %v5707_v31  ;;  %v5709_v16 = vpop.f32.mrb[61].mxu0  ;;  %v12418_v22 = vld [vmem:[#allocation5 + $0x808] sm:$0xff]   ;;  %v12420_v31 = vld [vmem:[#allocation5 + $0x810] sm:$0xff]  }
 0xb01   : > { %v5730_v49 = vmul.f32 %v5726_v35, %v5709_v16  ;;  %v5711_v45 = vpop.f32.mrb[62].mxu0  ;;  %v12423_v16 = vld [vmem:[#allocation5 + $0x860] sm:$0xff]  }
 0xb02   : > { %v5742_v50 = vadd.f32 %v5735_v44, %v5729_v23  ;;  %v5712_v51 = vpop.f32.mrb[63].mxu0  ;;  %v12419_v44 = vld [vmem:[#allocation5 + $0x850] sm:$0xff]   ;;  %v12422_v23 = vld [vmem:[#allocation5 + $0x818] sm:$0xff]   ;;  %v12425_v45 = vld [vmem:[#allocation5 + $0x868] sm:$0xff]  }
 0xb03   : > { %v5743_v28 = vadd.f32 %v5739_v52, %v5730_v49  ;;  %v12421_v52 = vld [vmem:[#allocation5 + $0x858] sm:$0xff]   ;;  %v12424_v49 = vld [vmem:[#allocation5 + $0x820] sm:$0xff]   ;;  %v12427_v51 = vld [vmem:[#allocation5 + $0x870] sm:$0xff]  }
 0xb04   : > { %v5744_v53 = vmax.f32 %v5742_v50, 0.0  ;;  %v12426_v50 = vld [vmem:[#allocation5 + $0x828] sm:$0xff]  }
 0xb05   : > { %v5745_v54 = vmax.f32 %v5743_v28, 0.0  ;;  %v12428_v28 = vld [vmem:[#allocation5 + $0x830] sm:$0xff]  }
 0xb06   : > { %v5991_v34 = vpack.c.bf16 %v5744_v53, %v5744_v53 }
 0xb07   : > { %5749 = vmatprep.subr.mxu1 %v5745_v54  ;;  %v5992_v55 = vpack.c.bf16 %v5745_v54, %v5745_v54 }
 0xb08   : > { %5750 = vmatpush1.msra.mxu1 %v5744_v53 }
 0xb09   : > { %10470 = vmatmul.mubr.msk.f32.vlgmr.msra.gmra.mrb[54].mxu1 %vm5746_vm8, %v13103_v11  ;;  %5822 = vmatprep.subr.mxu1 %v5745_v54  ;;  %v12430_v54 = vld [vmem:[#allocation5 + $0x838] sm:$0xff]  }
 0xb0a   : > { %6355 = vmatprep.mubr.bf16.mxu0 %v5992_v55  ;;  %5823 = vmatpush1.msra.mxu1 %v5744_v53  ;;  %v12429_v53 = vld [vmem:[#allocation5 + $0x878] sm:$0xff]  }
 0xb0b   : > { %6356 = vmatmul.mubr.bf16.vlgmr.msra.gmra.mrb[64].mxu0 %v5991_v34  ;;  %5886 = vmatprep.mubr.f32.mxu1 %v12891_v10  ;;  %v12446_v34 = vld [vmem:[#allocation7 + $0x250] ss:$8 sps:$4 sm:$0xff]  }
 0xb0c   : > { %11091 = vmatprep.subr.bf16.mxu1 %v12399_v56  ;;  %6630 = vmatpush1.bf16.msra.mxu0 %v12431_v7  ;;  %v12448_v56 = vld [vmem:[#allocation7 + $0x254] ss:$8 sps:$4 sm:$0xff]   ;;  %v12475_v7 = vld [vmem:[#allocation7 + $0x2e4] ss:$8 sps:$4 sm:$0xff]  }
 0xb0d   : > { %10471 = vmatmul.mubr.msk.f32.vlgmr.msra.gmra.mrb[60].mxu1 %vm5746_vm8, %v13110_v13  ;;  %6631 = vmatprep.subr.bf16.mxu0 %v12436_v12  ;;  %v12478_v12 = vld [vmem:[#allocation7 + $0x2f4] ss:$8 sps:$4 sm:$0xff]  }
 0xb0e   : > { %11092 = vmatpush3.bf16.msra.mxu1 %v12400_v39  ;;  %v12449_v39 = vld [vmem:[#allocation7 + $0x260] ss:$8 sps:$4 sm:$0xff]  }
 0xb0f   : > { %11093 = vmatprep.subr.bf16.mxu1 %v12401_v57  ;;  %v12451_v57 = vld [vmem:[#allocation7 + $0x264] ss:$8 sps:$4 sm:$0xff]  }
 0xb10   : > { %6632 = vmatpush1.bf16.msra.mxu0 %v12434_v14  ;;  %v12476_v14 = vld [vmem:[#allocation7 + $0x2f0] ss:$8 sps:$4 sm:$0xff]  }
 0xb11   : > { %6633 = vmatprep.subr.bf16.mxu0 %v12439_v17 }
 0xb12   : > { %11094 = vmatpush3.bf16.msra.mxu1 %v12402_v63  ;;  %v12454_v63 = vld [vmem:[#allocation7 + $0x274] ss:$8 sps:$4 sm:$0xff]  }
 0xb13   : > { %11095 = vmatprep.subr.bf16.mxu1 %v12403_v33  ;;  %v12452_v33 = vld [vmem:[#allocation7 + $0x270] ss:$8 sps:$4 sm:$0xff]  }
 0xb14   : > { %6634 = vmatpush1.bf16.msra.mxu0 %v12437_v18 }
 0xb15   : > { %6635 = vmatprep.subr.bf16.mxu0 %v12442_v62 }
 0xb16   : > { %11096 = vmatpush3.bf16.msra.mxu1 %v12404_v58  ;;  %v12457_v58 = vld [vmem:[#allocation7 + $0x284] ss:$8 sps:$4 sm:$0xff]  }
 0xb17   : > { %11097 = vmatprep.subr.bf16.mxu1 %v12405_v15  ;;  %v12455_v15 = vld [vmem:[#allocation7 + $0x280] ss:$8 sps:$4 sm:$0xff]  }
 0xb18   : > { %6636 = vmatpush1.bf16.msra.mxu0 %v12440_v19 }
 0xb19   : > { %6637 = vmatprep.subr.bf16.mxu0 %v12445_v3 }
 0xb1a   : > { %11098 = vmatpush3.bf16.msra.mxu1 %v12406_v1  ;;  %v12460_v1 = vld [vmem:[#allocation7 + $0x294] ss:$8 sps:$4 sm:$0xff]  }
 0xb1b   : > { %11099 = vmatprep.subr.bf16.mxu1 %v12407_v41  ;;  %v12458_v41 = vld [vmem:[#allocation7 + $0x290] ss:$8 sps:$4 sm:$0xff]  }
 0xb1c   : > { %6638 = vmatpush1.bf16.msra.mxu0 %v12443_v4 }
 0xb1d   : > { %6639 = vmatprep.subr.bf16.mxu0 %v12448_v56 }
 0xb1e   : > { %11100 = vmatpush3.bf16.msra.mxu1 %v12408_v42  ;;  %v12463_v42 = vld [vmem:[#allocation7 + $0x2a4] ss:$8 sps:$4 sm:$0xff]  }
 0xb1f   : > { %11101 = vmatprep.subr.bf16.mxu1 %v12409_v2  ;;  %v12461_v2 = vld [vmem:[#allocation7 + $0x2a0] ss:$8 sps:$4 sm:$0xff]  }
 0xb20   : > { %6640 = vmatpush1.bf16.msra.mxu0 %v12446_v34 }
 0xb21   : > { %6641 = vmatprep.subr.bf16.mxu0 %v12451_v57 }
 0xb22   : > { %11102 = vmatpush3.bf16.msra.mxu1 %v12410_v43  ;;  %v12466_v43 = vld [vmem:[#allocation7 + $0x2b4] ss:$8 sps:$4 sm:$0xff]  }
 0xb23   : > { %11103 = vmatprep.subr.bf16.mxu1 %v12411_v46  ;;  %v12464_v46 = vld [vmem:[#allocation7 + $0x2b0] ss:$8 sps:$4 sm:$0xff]  }
 0xb24   : > { %6642 = vmatpush1.bf16.msra.mxu0 %v12449_v39 }
 0xb25   : > { %6643 = vmatprep.subr.bf16.mxu0 %v12454_v63 }
 0xb26   : > { %11104 = vmatpush3.bf16.msra.mxu1 %v12412_v59  ;;  %v12469_v59 = vld [vmem:[#allocation7 + $0x2c4] ss:$8 sps:$4 sm:$0xff]  }
 0xb27   : > { %11105 = vmatprep.subr.bf16.mxu1 %v12413_v61  ;;  %v12467_v61 = vld [vmem:[#allocation7 + $0x2c0] ss:$8 sps:$4 sm:$0xff]  }
 0xb28   : > { %6644 = vmatpush1.bf16.msra.mxu0 %v12452_v33 }
 0xb29   : > { %6645 = vmatprep.subr.bf16.mxu0 %v12457_v58 }
 0xb2a   : > { %11106 = vmatpush3.bf16.msra.mxu1 %v12414_v5  ;;  %v12472_v5 = vld [vmem:[#allocation7 + $0x2d4] ss:$8 sps:$4 sm:$0xff]  }
 0xb2b   : > { %11135 = vmatprep.subr.bf16.mxu1 %v12415_v6  ;;  %v12470_v6 = vld [vmem:[#allocation7 + $0x2d0] ss:$8 sps:$4 sm:$0xff]  }
 0xb2c   : > { %6646 = vmatpush1.bf16.msra.mxu0 %v12455_v15 }
 0xb2d   : > { %6647 = vmatprep.subr.bf16.mxu0 %v12460_v1  ;;  %v12479_v1 = vld [vmem:[#allocation5 + $0x8c0] sm:$0xff]  }
 0xb30   : > { %6648 = vmatpush1.bf16.msra.mxu0 %v12458_v41  ;;  %v12480_v41 = vld [vmem:[#allocation5 + $0x880] sm:$0xff]  }
 0xb31   : > { %6649 = vmatprep.subr.bf16.mxu0 %v12463_v42  ;;  %v12481_v42 = vld [vmem:[#allocation5 + $0x8c8] sm:$0xff]  }
 0xb34   : > { %6650 = vmatpush1.bf16.msra.mxu0 %v12461_v2  ;;  %v12482_v2 = vld [vmem:[#allocation5 + $0x888] sm:$0xff]  }
 0xb35   : > { %6651 = vmatprep.subr.bf16.mxu0 %v12466_v43  ;;  %v12483_v43 = vld [vmem:[#allocation5 + $0x8d0] sm:$0xff]  }
 0xb38   : > { %6652 = vmatpush1.bf16.msra.mxu0 %v12464_v46  ;;  %v12484_v46 = vld [vmem:[#allocation5 + $0x890] sm:$0xff]  }
 0xb39   : > { %6653 = vmatprep.subr.bf16.mxu0 %v12469_v59  ;;  %v12485_v59 = vld [vmem:[#allocation5 + $0x8d8] sm:$0xff]  }
 0xb3c   : > { %6654 = vmatpush1.bf16.msra.mxu0 %v12467_v61  ;;  %v12486_v61 = vld [vmem:[#allocation5 + $0x898] sm:$0xff]  }
 0xb3d   : > { %6655 = vmatprep.subr.bf16.mxu0 %v12472_v5  ;;  %v12487_v5 = vld [vmem:[#allocation5 + $0x8e0] sm:$0xff]  }
 0xb40   : > { %6656 = vmatpush1.bf16.msra.mxu0 %v12470_v6  ;;  %v12488_v6 = vld [vmem:[#allocation5 + $0x8a0] sm:$0xff]  }
 0xb41   : > { %6657 = vmatprep.subr.bf16.mxu0 %v12475_v7  ;;  %v12489_v7 = vld [vmem:[#allocation5 + $0x8e8] sm:$0xff]  }
 0xb44   : > { %6658 = vmatpush1.bf16.msra.mxu0 %v12473_v9  ;;  %v12490_v9 = vld [vmem:[#allocation5 + $0x8a8] sm:$0xff]  }
 0xb45   : > { %6659 = vmatprep.subr.bf16.mxu0 %v12478_v12  ;;  %v12491_v12 = vld [vmem:[#allocation5 + $0x8f0] sm:$0xff]  }
 0xb48   : > { %6660 = vmatpush1.bf16.msra.mxu0 %v12476_v14  ;;  %v12492_v14 = vld [vmem:[#allocation5 + $0x8b0] sm:$0xff]  }
 0xbdc   : > { %v5815_v20 = vpop.f32.mrb[54].mxu1 }
 0xbdd   : > { %v5817_v24 = vpop.f32.mrb[55].mxu1  ;;  %v5989_v29 = vpack.c.bf16 %v5815_v20, %v5815_v20  ;;  %v6404_v20 = vld [vmem:[#allocation2 + $0x26] ss:$8 sm:$0x3] }
 0xbde   : > { %v5990_v26 = vpack.c.bf16 %v5817_v24, %v5817_v24  ;;  %v11129_v27 = vpop.f32.mrb[64].mxu0  ;;  %v6411_v24 = vrot.slane %v6404_v20, %v13128_v47 }
 0xbdf   : > { %v11130_v32 = vpop.f32.mrb[65].mxu0 }
 0xbe0   : > { %v13365_v21 = vadd.f32 %v11130_v32, %v11129_v27  ;;  %v11132_v30 = vpop.f32.mrb[66].mxu0  ;;  %6315 = vmatprep.mubr.bf16.mxu1 %v5990_v26  ;;  %v5888_v37 = vpop.f32.mrb[60].mxu1  ;;  %v6406_v26 = vld [vmem:[#allocation2 + $0x27] ss:$8 sm:$0x3] }
 0xbe1   : > { %v11133_v38 = vpop.f32.mrb[67].mxu0  ;;  %6316 = vmatmul.mubr.bf16.vlgmr.msra.gmra.mrb[64].mxu1 %v5989_v29  ;;  %v5890_v40 = vpop.f32.mrb[61].mxu1  ;;  %v5993_v55 = vpack.c.bf16 %v5888_v37, %v5888_v37  ;;  %v6424_v32 = vrot.slane %v6406_v26, %v13128_v47  ;;  %v6415_v30 = vrot.slane %v6404_v20, %v13131_v48  ;;  %v12500_v20 = vld [vmem:[#allocation5 + $0x988] sm:$0xff]  }
 0xbe2   : > { %11136 = vmatpush3.bf16.msra.mxu1 %v12416_v25  ;;  %v5994_v35 = vpack.c.bf16 %v5890_v40, %v5890_v40  ;;  %v6418_v25 = vmul.f32 %v6411_v24, %v13353_v8  ;;  %v12503_v24 = vld [vmem:[#allocation5 + $0x9d0] sm:$0xff]  }
 0xbe3   : > { %11137 = vmatprep.subr.bf16.mxu1 %v12417_v36 }
 0xbe4   : > { %6395 = vmatprep.mubr.bf16.mxu1 %v5994_v35 }
 0xbe6   : > { %11138 = vmatpush3.bf16.msra.mxu1 %v12418_v22  ;;  %v6428_v22 = vrot.slane %v6406_v26, %v13131_v48  ;;  %v12504_v26 = vld [vmem:[#allocation5 + $0x990] sm:$0xff]  }
 0xbe7   : > { %11139 = vmatprep.subr.bf16.mxu1 %v12419_v44 }
 0xbea   : > { %11140 = vmatpush3.bf16.msra.mxu1 %v12420_v31 }
 0xbeb   : > { %11141 = vmatprep.subr.bf16.mxu1 %v12421_v52 }
 0xbee   : > { %11142 = vmatpush3.bf16.msra.mxu1 %v12422_v23 }
 0xbef   : > { %11143 = vmatprep.subr.bf16.mxu1 %v12423_v16 }
 0xbf2   : > { %11144 = vmatpush3.bf16.msra.mxu1 %v12424_v49  ;;  %v6671_v49 = vld [vmem:[#allocation2 + $0x40] ss:$8 sm:$0x3] }
 0xbf3   : > { %11145 = vmatprep.subr.bf16.mxu1 %v12425_v45  ;;  %v6673_v45 = vld [vmem:[#allocation2 + $0x41] ss:$8 sm:$0x3] }
 0xbf6   : > { %11146 = vmatpush3.bf16.msra.mxu1 %v12426_v50  ;;  %v6678_v50 = vrot.slane %v6671_v49, %v13128_v47 }
 0xbf7   : > { %11147 = vmatprep.subr.bf16.mxu1 %v12427_v51  ;;  %v6682_v51 = vrot.slane %v6671_v49, %v13131_v48 }
 0xbfa   : > { %11148 = vmatpush3.bf16.msra.mxu1 %v12428_v28  ;;  %v6691_v28 = vrot.slane %v6673_v45, %v13128_v47 }
 0xbfb   : > { %11149 = vmatprep.subr.bf16.mxu1 %v12429_v53 }
 0xbfe   : > { %11150 = vmatpush3.bf16.msra.mxu1 %v12430_v54  ;;  %v6695_v54 = vrot.slane %v6673_v45, %v13131_v48 }
 0xc01   : > { %6396 = vmatmul.mubr.bf16.vlgmr.msra.gmra.mrb[68].mxu1 %v5993_v55 }
 0xc02   : > { %6766 = vmatprep.mubr.f32.mxu1 %v12891_v10 }
 0xcb4   : > { %v11107_v17 = vpop.f32.mrb[64].mxu1 }
 0xcb5   : > { %v11108_v18 = vpop.f32.mrb[65].mxu1 }
 0xcb6   : > { %v11109_v62 = vadd.f32 %v11108_v18, %v11107_v17  ;;  %v11110_v19 = vpop.f32.mrb[66].mxu1  ;;  %v12493_v17 = vld [vmem:[#allocation5 + $0x8f8] sm:$0xff]  }
 0xcb7   : > { %v11111_v3 = vpop.f32.mrb[67].mxu1  ;;  %v12494_v18 = vld [vmem:[#allocation5 + $0x8b8] sm:$0xff]   ;;  %v12496_v19 = vld [vmem:[#allocation5 + $0x980] sm:$0xff]  }
 0xcb8   : > { %v6358_v4 = vadd.f32 %v13365_v21, %v11109_v62  ;;  %v6431_v21 = vadd.f32 %v6424_v32, %v6418_v25  ;;  %v12495_v62 = vld [vmem:[#allocation5 + $0x9c0] sm:$0xff]   ;;  %v12508_v25 = vld [vmem:[#allocation5 + $0x998] sm:$0xff]  }
 0xcb9   : > { %11201 = vmatprep.subr.bf16.mxu0 %v12495_v62  ;;  %v12497_v3 = vld [vmem:[#allocation5 + $0x940] sm:$0xff]   ;;  %v12529_v62 = vld [vmem:[#allocation5 + $0xa48] sm:$0xff]  }
 0xcba   : > { %v6433_v31 = vmax.f32 %v6431_v21, 0.0  ;;  %v12512_v32 = vld [vmem:[#allocation5 + $0x9a0] sm:$0xff]   ;;  %v12524_v21 = vld [vmem:[#allocation5 + $0x9b8] sm:$0xff]  }
 0xcbc   : > { %v6467_v16 = vpack.c.bf16 %v6433_v31, %v6433_v31 }
 0xcd4   : > { %v11151_v27 = vpop.f32.mrb[68].mxu1 }
 0xcd5   : > { %v11152_v29 = vpop.f32.mrb[69].mxu1 }
 0xcd6   : > { %v11153_v36 = vadd.f32 %v11152_v29, %v11151_v27  ;;  %v11154_v37 = vpop.f32.mrb[70].mxu1  ;;  %v12507_v27 = vld [vmem:[#allocation5 + $0x9d8] sm:$0xff]   ;;  %v12511_v29 = vld [vmem:[#allocation5 + $0x9e0] sm:$0xff]  }
 0xcd7   : > { %v11155_v38 = vpop.f32.mrb[71].mxu1  ;;  %v12519_v37 = vld [vmem:[#allocation5 + $0x9f0] sm:$0xff]  }
 0xcd8   : > { %v13373_v40 = vadd.f32 %v11153_v36, %v6358_v4  ;;  %v12499_v4 = vld [vmem:[#allocation5 + $0x9c8] sm:$0xff]   ;;  %v12520_v38 = vld [vmem:[#allocation5 + $0x9b0] sm:$0xff]  }
 0xcd9   : > { %v12515_v36 = vld [vmem:[#allocation5 + $0x9e8] sm:$0xff]  }
 0xcda   : > { %v6419_v35 = vmul.f32 %v6415_v30, %v13373_v40  ;;  %v12516_v30 = vld [vmem:[#allocation5 + $0x9a8] sm:$0xff]  }
 0xcdc   : > { %v6432_v44 = vadd.f32 %v6428_v22, %v6419_v35  ;;  %v12523_v22 = vld [vmem:[#allocation5 + $0x9f8] sm:$0xff]  }
 0xcde   : > { %v6434_v52 = vmax.f32 %v6432_v44, 0.0 }
 0xce0   : > { %v6468_v23 = vpack.c.bf16 %v6434_v52, %v6434_v52  ;;  %v12498_v52 = vld [vmem:[#allocation5 + $0x900] sm:$0xff]  }
 0xce2   : > { %6661 = vmatprep.mubr.bf16.mxu0 %v6468_v23 }
 0xce3   : > { %6662 = vmatmul.mubr.bf16.vlgmr.msra.gmra.mrb[68].mxu0 %v6467_v16  ;;  %v12501_v16 = vld [vmem:[#allocation5 + $0x948] sm:$0xff]  }
 0xce4   : > { %11202 = vmatpush3.bf16.msra.mxu0 %v12496_v19  ;;  %v12531_v19 = vld [vmem:[#allocation5 + $0xa50] sm:$0xff]  }
 0xce5   : > { %11203 = vmatprep.subr.bf16.mxu0 %v12499_v4  ;;  %v12534_v4 = vld [vmem:[#allocation5 + $0xa58] sm:$0xff]  }
 0xce8   : > { %11204 = vmatpush3.bf16.msra.mxu0 %v12500_v20  ;;  %v12535_v20 = vld [vmem:[#allocation5 + $0xa18] sm:$0xff]  }
 0xce9   : > { %11205 = vmatprep.subr.bf16.mxu0 %v12503_v24  ;;  %v12537_v24 = vld [vmem:[#allocation5 + $0xa60] sm:$0xff]  }
 0xcec   : > { %11206 = vmatpush3.bf16.msra.mxu0 %v12504_v26  ;;  %v12538_v26 = vld [vmem:[#allocation5 + $0xa20] sm:$0xff]  }
 0xced   : > { %11207 = vmatprep.subr.bf16.mxu0 %v12507_v27  ;;  %v12540_v27 = vld [vmem:[#allocation5 + $0xa68] sm:$0xff]  }
 0xcf0   : > { %11208 = vmatpush3.bf16.msra.mxu0 %v12508_v25  ;;  %v12541_v25 = vld [vmem:[#allocation5 + $0xa28] sm:$0xff]  }
 0xcf1   : > { %11209 = vmatprep.subr.bf16.mxu0 %v12511_v29  ;;  %v12543_v29 = vld [vmem:[#allocation5 + $0xa70] sm:$0xff]  }
 0xcf4   : > { %11210 = vmatpush3.bf16.msra.mxu0 %v12512_v32  ;;  %v12544_v32 = vld [vmem:[#allocation5 + $0xa30] sm:$0xff]  }
 0xcf5   : > { %11211 = vmatprep.subr.bf16.mxu0 %v12515_v36  ;;  %v12546_v36 = vld [vmem:[#allocation5 + $0xa78] sm:$0xff]  }
 0xcf8   : > { %11212 = vmatpush3.bf16.msra.mxu0 %v12516_v30  ;;  %v12547_v30 = vld [vmem:[#allocation5 + $0xa38] sm:$0xff]  }
 0xcf9   : > { %11213 = vmatprep.subr.bf16.mxu0 %v12519_v37 }
 0xcfc   : > { %11214 = vmatpush3.bf16.msra.mxu0 %v12520_v38 }
 0xcfd   : > { %11215 = vmatprep.subr.bf16.mxu0 %v12523_v22 }
 0xd00   : > { %11216 = vmatpush3.bf16.msra.mxu0 %v12524_v21 }
 0xdb6   : > { %v6663_v53 = vpop.f32.mrb[68].mxu0 }
 0xdb7   : > { %v6685_v55 = vmul.f32 %v6678_v50, %v6663_v53  ;;  %v6665_v56 = vpop.f32.mrb[69].mxu0 }
 0xdb8   : > { %v6686_v34 = vmul.f32 %v6682_v51, %v6665_v56  ;;  %v6667_v39 = vpop.f32.mrb[70].mxu0  ;;  %v12509_v56 = vld [vmem:[#allocation5 + $0x958] sm:$0xff]  }
 0xdb9   : > { %v6698_v57 = vadd.f32 %v6691_v28, %v6685_v55  ;;  %v6668_v63 = vpop.f32.mrb[71].mxu0  ;;  %v12502_v28 = vld [vmem:[#allocation5 + $0x908] sm:$0xff]   ;;  %v12506_v55 = vld [vmem:[#allocation5 + $0x910] sm:$0xff]   ;;  %v12513_v39 = vld [vmem:[#allocation5 + $0x960] sm:$0xff]  }
 0xdba   : > { %v6699_v33 = vadd.f32 %v6695_v54, %v6686_v34  ;;  %v12505_v54 = vld [vmem:[#allocation5 + $0x950] sm:$0xff]   ;;  %v12510_v34 = vld [vmem:[#allocation5 + $0x918] sm:$0xff]   ;;  %v12517_v63 = vld [vmem:[#allocation5 + $0x968] sm:$0xff]  }
 0xdbb   : > { %v13383_v15 = vmax.f32 %v6698_v57, 0.0  ;;  %v12514_v57 = vld [vmem:[#allocation5 + $0x920] sm:$0xff]  }
 0xdbc   : > { %v13381_v58 = vmax.f32 %v6699_v33, 0.0  ;;  %v13396_v33 = vld [vmem:[#allocation2 + $0x42] ss:$8 sm:$0x7] }
 0xdbe   : > { %6702 = vmatprep.subr.mxu1 %v13381_v58  ;;  %v6943_v49 = vpack.c.bf16 %v13381_v58, %v13381_v58 }
 0xdbf   : > { %6703 = vmatpush1.msra.mxu1 %v13383_v15 }
 0xdc0   : > { %10552 = vmatmul.mubr.msk.f32.vlgmr.msra.gmra.mrb[62].mxu1 %vm5746_vm8, %v13103_v11  ;;  %6773 = vmatprep.subr.mxu1 %v13381_v58  ;;  %v7366_v58 = vrot.slane %v13396_v33, %v13131_v48 }
 0xdc1   : > { %6774 = vmatpush1.msra.mxu1 %v13383_v15  ;;  %6837 = vmatprep.mubr.f32.mxu1 %v12891_v10 }
 0xdc2   : > { %11157 = vmatprep.subr.bf16.mxu1 %v12479_v1  ;;  %v12518_v1 = vld [vmem:[#allocation5 + $0x928] sm:$0xff]  }
 0xdc4   : > { %10553 = vmatmul.mubr.msk.f32.vlgmr.msra.gmra.mrb[72].mxu1 %vm5746_vm8, %v13110_v13 }
 0xdc5   : > { %11158 = vmatpush3.bf16.msra.mxu1 %v12480_v41  ;;  %v12521_v41 = vld [vmem:[#allocation5 + $0x970] sm:$0xff]  }
 0xdc6   : > { %11159 = vmatprep.subr.bf16.mxu1 %v12481_v42  ;;  %v7362_v42 = vrot.slane %v13396_v33, %v13128_v47 }
 0xdc9   : > { %11160 = vmatpush3.bf16.msra.mxu1 %v12482_v2  ;;  %v13402_v2 = vld [vmem:[#allocation2 + $0x43] ss:$8 sm:$0x7] }
 0xdca   : > { %11161 = vmatprep.subr.bf16.mxu1 %v12483_v43  ;;  %v7375_v43 = vmul.f32 %v7366_v58, %v13373_v40  ;;  %v6942_v40 = vpack.c.bf16 %v13383_v15, %v13383_v15  ;;  %v12530_v15 = vld [vmem:[#allocation5 + $0xa08] sm:$0xff]  }
 0xdcd   : > { %11162 = vmatpush3.bf16.msra.mxu1 %v12484_v46  ;;  %v7385_v46 = vrot.slane %v13402_v2, %v13131_v48 }
 0xdce   : > { %11163 = vmatprep.subr.bf16.mxu1 %v12485_v59  ;;  %v12522_v59 = vld [vmem:[#allocation5 + $0x930] sm:$0xff]  }
 0xdd1   : > { %11164 = vmatpush3.bf16.msra.mxu1 %v12486_v61  ;;  %v12525_v61 = vld [vmem:[#allocation5 + $0x978] sm:$0xff]  }
 0xdd2   : > { %11165 = vmatprep.subr.bf16.mxu1 %v12487_v5  ;;  %v7374_v5 = vmul.f32 %v7362_v42, %v13353_v8  ;;  %v12527_v8 = vld [vmem:[#allocation5 + $0xa40] sm:$0xff]  }
 0xdd3   : > { %11225 = vmatprep.subr.bf16.mxu0 %v12527_v8  ;;  %v12533_v42 = vld [vmem:[#allocation5 + $0xa80] sm:$0xff]  }
 0xdd5   : > { %11166 = vmatpush3.bf16.msra.mxu1 %v12488_v6  ;;  %v7381_v6 = vrot.slane %v13402_v2, %v13128_v47 }
 0xdd6   : > { %11167 = vmatprep.subr.bf16.mxu1 %v12489_v7  ;;  %v7394_v7 = vadd.f32 %v7385_v46, %v7375_v43  ;;  %v12542_v43 = vld [vmem:[#allocation5 + $0xa98] sm:$0xff]   ;;  %v12545_v46 = vld [vmem:[#allocation5 + $0xaa0] sm:$0xff]  }
 0xdd9   : > { %11168 = vmatpush3.bf16.msra.mxu1 %v12490_v9  ;;  %v12526_v9 = vld [vmem:[#allocation5 + $0x938] sm:$0xff]  }
 0xdda   : > { %11169 = vmatprep.subr.bf16.mxu1 %v12491_v12  ;;  %v7393_v12 = vadd.f32 %v7381_v6, %v7374_v5  ;;  %v12551_v5 = vld [vmem:[#allocation5 + $0xac0] sm:$0xff]   ;;  %v12552_v6 = vld [vmem:[#allocation5 + $0xac8] sm:$0xff]  }
 0xddd   : > { %11170 = vmatpush3.bf16.msra.mxu1 %v12492_v14  ;;  %v7397_v14 = vmax.f32 %v7394_v7, 0.0  ;;  %v12553_v7 = vld [vmem:[#allocation5 + $0xad0] sm:$0xff]  }
 0xdde   : > { %11171 = vmatprep.subr.bf16.mxu1 %v12493_v17  ;;  %v7396_v17 = vmax.f32 %v7393_v12, 0.0  ;;  %v12555_v12 = vld [vmem:[#allocation5 + $0xae0] sm:$0xff]  }
 0xde1   : > { %11172 = vmatpush3.bf16.msra.mxu1 %v12494_v18  ;;  %v12528_v18 = vld [vmem:[#allocation5 + $0xa00] sm:$0xff]  }
 0xde2   : > { %11179 = vmatprep.subr.bf16.mxu1 %v12497_v3  ;;  %v12532_v3 = vld [vmem:[#allocation5 + $0xa10] sm:$0xff]  }
 0xe93   : > { %v6768_v35 = vpop.f32.mrb[62].mxu1 }
 0xe94   : > { %v6770_v44 = vpop.f32.mrb[63].mxu1  ;;  %v6940_v23 = vpack.c.bf16 %v6768_v35, %v6768_v35 }
 0xe95   : > { %v6941_v31 = vpack.c.bf16 %v6770_v44, %v6770_v44 }
 0xe97   : > { %7266 = vmatprep.mubr.bf16.mxu1 %v6941_v31  ;;  %v6839_v45 = vpop.f32.mrb[72].mxu1 }
 0xe98   : > { %7267 = vmatmul.mubr.bf16.vlgmr.msra.gmra.mrb[76].mxu1 %v6940_v23  ;;  %v6944_v50 = vpack.c.bf16 %v6839_v45, %v6839_v45  ;;  %v6841_v51 = vpop.f32.mrb[73].mxu1 }
 0xe99   : > { %11180 = vmatpush3.bf16.msra.mxu1 %v12498_v52  ;;  %7306 = vmatprep.mubr.bf16.mxu1 %v6943_v49  ;;  %v6945_v53 = vpack.c.bf16 %v6841_v51, %v6841_v51 }
 0xe9a   : > { %11181 = vmatprep.subr.bf16.mxu1 %v12501_v16 }
 0xe9b   : > { %7346 = vmatprep.mubr.bf16.mxu0 %v6945_v53 }
 0xe9c   : > { %7347 = vmatmul.mubr.bf16.vlgmr.msra.gmra.mrb[72].mxu0 %v6944_v50 }
 0xe9d   : > { %11182 = vmatpush3.bf16.msra.mxu1 %v12502_v28  ;;  %11226 = vmatpush3.bf16.msra.mxu0 %v12528_v18 }
 0xe9e   : > { %11183 = vmatprep.subr.bf16.mxu1 %v12505_v54  ;;  %11227 = vmatprep.subr.bf16.mxu0 %v12529_v62  ;;  %v7370_v54 = vrot.slane %v13396_v33, %v13174_v0  ;;  %v12536_v33 = vld [vmem:[#allocation5 + $0xa88] sm:$0xff]  }
 0xea1   : > { %11184 = vmatpush3.bf16.msra.mxu1 %v12506_v55  ;;  %11228 = vmatpush3.bf16.msra.mxu0 %v12530_v15 }
 0xea2   : > { %11185 = vmatprep.subr.bf16.mxu1 %v12509_v56  ;;  %11229 = vmatprep.subr.bf16.mxu0 %v12531_v19  ;;  %v7389_v56 = vrot.slane %v13402_v2, %v13174_v0  ;;  %v12539_v2 = vld [vmem:[#allocation5 + $0xa90] sm:$0xff]  }
 0xea5   : > { %11186 = vmatpush3.bf16.msra.mxu1 %v12510_v34  ;;  %11230 = vmatpush3.bf16.msra.mxu0 %v12532_v3  ;;  %v12556_v3 = vld [vmem:[#allocation5 + $0xae8] sm:$0xff]  }
 0xea6   : > { %11187 = vmatprep.subr.bf16.mxu1 %v12513_v39  ;;  %11231 = vmatprep.subr.bf16.mxu0 %v12534_v4  ;;  %v12557_v4 = vld [vmem:[#allocation5 + $0xaf0] sm:$0xff]  }
 0xea9   : > { %11188 = vmatpush3.bf16.msra.mxu1 %v12514_v57  ;;  %11232 = vmatpush3.bf16.msra.mxu0 %v12535_v20  ;;  %v12558_v20 = vld [vmem:[#allocation5 + $0xaf8] sm:$0xff]  }
 0xeaa   : > { %11189 = vmatprep.subr.bf16.mxu1 %v12517_v63  ;;  %11233 = vmatprep.subr.bf16.mxu0 %v12537_v24 }
 0xead   : > { %11190 = vmatpush3.bf16.msra.mxu1 %v12518_v1  ;;  %11234 = vmatpush3.bf16.msra.mxu0 %v12538_v26  ;;  %v7817_v26 = vld [vmem:[#allocation2 + $0x44] ss:$0 sm:$0xff] }
 0xeae   : > { %11191 = vmatprep.subr.bf16.mxu1 %v12521_v41  ;;  %11235 = vmatprep.subr.bf16.mxu0 %v12540_v27 }
 0xeb1   : > { %11192 = vmatpush3.bf16.msra.mxu1 %v12522_v59  ;;  %11236 = vmatpush3.bf16.msra.mxu0 %v12541_v25  ;;  %v12549_v59 = vld [vmem:[#allocation5 + $0xab0] sm:$0xff]  }
 0xeb2   : > { %11193 = vmatprep.subr.bf16.mxu1 %v12525_v61  ;;  %11237 = vmatprep.subr.bf16.mxu0 %v12543_v29  ;;  %v12550_v61 = vld [vmem:[#allocation5 + $0xab8] sm:$0xff]   ;;  %v7818_v29 = vld [vmem:[#allocation2 + $0x45] ss:$0 sm:$0xff] }
 0xeb5   : > { %11194 = vmatpush3.bf16.msra.mxu1 %v12526_v9  ;;  %11238 = vmatpush3.bf16.msra.mxu0 %v12544_v32  ;;  %v12554_v9 = vld [vmem:[#allocation5 + $0xad8] sm:$0xff]  }
 0xeb6   : > { %7401 = vmatprep.subr.mxu1 %v7397_v14  ;;  %11239 = vmatprep.subr.bf16.mxu0 %v12546_v36 }
 0xeb8   : > { %7307 = vmatmul.mubr.bf16.vlgmr.msra.gmra.mrb[80].mxu1 %v6942_v40 }
 0xeb9   : > { %7402 = vmatpush1.msra.mxu1 %v7396_v17  ;;  %7465 = vmatprep.mubr.f32.mxu1 %v12891_v10 }
 0xeba   : > { %11447 = vmatprep.subr.mxu1 %v12891_v10  ;;  %11240 = vmatpush3.bf16.msra.mxu0 %v12547_v30 }
 0xebb   : > { %11472 = vmatprep.subr.bf16.mxu0 %v12891_v10 }
 0xec0   : > { %10602 = vmatmul.mubr.msk.f32.vlgmr.msra.gmra.mrb[74].mxu1 %vm5746_vm8, %v13339_v60 }
 0xec1   : > { %11449 = vmatprep.mubr.msk.f32.mxu1 %vm12893_vm9, %v12891_v10 }
 0xf6b   : > { %v11173_v37 = vpop.f32.mrb[76].mxu1 }
 0xf6c   : > { %v11174_v38 = vpop.f32.mrb[77].mxu1 }
 0xf6d   : > { %v11175_v22 = vadd.f32 %v11174_v38, %v11173_v37  ;;  %v11176_v21 = vpop.f32.mrb[78].mxu1 }
 0xf6e   : > { %v11177_v35 = vpop.f32.mrb[79].mxu1  ;;  %v12563_v21 = vld [vmem:[#allocation5 + $0xb80] sm:$0xff]  }
 0xf6f   : > { %v11217_v44 = vpop.f32.mrb[72].mxu0  ;;  %v12566_v35 = vld [vmem:[#allocation5 + $0xb88] sm:$0xff]  }
 0xf70   : > { %v11218_v31 = vpop.f32.mrb[73].mxu0 }
 0xf71   : > { %v11219_v52 = vadd.f32 %v11218_v31, %v11217_v44  ;;  %v11220_v23 = vpop.f32.mrb[74].mxu0  ;;  %v12569_v44 = vld [vmem:[#allocation5 + $0xb90] sm:$0xff]   ;;  %v12572_v31 = vld [vmem:[#allocation5 + $0xb98] sm:$0xff]  }
 0xf72   : > { %v11221_v16 = vpop.f32.mrb[75].mxu0  ;;  %v12578_v23 = vld [vmem:[#allocation5 + $0xba8] sm:$0xff]  }
 0xf73   : > { %v7927_v16 = vld [vmem:[#allocation2 + $0x46] ss:$0 sm:$0xff] }
 0xf8b   : > { %v11195_v49 = vpop.f32.mrb[80].mxu1 }
 0xf8c   : > { %v11196_v45 = vpop.f32.mrb[81].mxu1 }
 0xf8d   : > { %v11197_v50 = vadd.f32 %v11196_v45, %v11195_v49  ;;  %v11198_v51 = vpop.f32.mrb[82].mxu1  ;;  %v7928_v45 = vld [vmem:[#allocation2 + $0x47] ss:$0 sm:$0xff] }
 0xf8e   : > { %v11199_v28 = vpop.f32.mrb[83].mxu1 }
 0xf8f   : > { %v7309_v53 = vadd.f32 %v11197_v50, %v11175_v22 }
 0xf91   : > { %v7349_v55 = vadd.f32 %v11219_v52, %v7309_v53  ;;  %v12575_v52 = vld [vmem:[#allocation5 + $0xba0] sm:$0xff]  }
 0xf93   : > { %v7376_v34 = vmul.f32 %v7370_v54, %v7349_v55  ;;  %v7467_v39 = vpop.f32.mrb[74].mxu1 }
 0xf94   : > { %v7590_v57 = vpack.c.bf16 %v7467_v39, %v7467_v39  ;;  %v7469_v63 = vpop.f32.mrb[75].mxu1  ;;  %v12561_v39 = vld [vmem:[#allocation5 + $0xb48] sm:$0xff]  }
 0xf95   : > { %v7395_v58 = vadd.f32 %v7389_v56, %v7376_v34  ;;  %v7591_v1 = vpack.c.bf16 %v7469_v63, %v7469_v63  ;;  %v12559_v56 = vld [vmem:[#allocation5 + $0xb40] sm:$0xff]   ;;  %v12562_v63 = vld [vmem:[#allocation5 + $0xb08] sm:$0xff]  }
 0xf96   : > { %v12560_v34 = vld [vmem:[#allocation5 + $0xb00] sm:$0xff]  }
 0xf97   : > { %v7398_v41 = vmax.f32 %v7395_v58, 0.0  ;;  %7769 = vmatprep.mubr.bf16.mxu0 %v7591_v1  ;;  %v12564_v58 = vld [vmem:[#allocation5 + $0xb50] sm:$0xff]  }
 0xf98   : > { %7770 = vmatmul.mubr.bf16.vlgmr.msra.gmra.mrb[76].mxu0 %v7590_v57  ;;  %v12565_v1 = vld [vmem:[#allocation5 + $0xb10] sm:$0xff]  }
 0xf99   : > { %11448 = vmatpush3.msra.mxu1 %v7398_v41  ;;  %11488 = vmatprep.mubr.msk.bf16.mxu0 %vm12893_vm9, %v12891_v10  ;;  %v12567_v41 = vld [vmem:[#allocation5 + $0xb58] sm:$0xff]  }
 0xf9a   : > { %11450 = vmatmul.mubr.msk.f32.vlgmr.msra.gmra.mrb[84].mxu1 %vm5746_vm8, %v13339_v60  ;;  %11452 = vmatprep.subr.bf16.mxu1 %v12891_v10  ;;  %v12548_v60 = vld [vmem:[#allocation5 + $0xaa8] sm:$0xff]  }
 0xf9b   : > { %11453 = vmatpush3.bf16.msra.mxu1 %v12533_v42  ;;  %11468 = vmatprep.mubr.msk.bf16.mxu1 %vm12893_vm9, %v12891_v10  ;;  %v12568_v42 = vld [vmem:[#allocation5 + $0xb18] sm:$0xff]  }
 0xf9c   : > { %11454 = vmatprep.subr.bf16.mxu1 %v12891_v10  ;;  %11473 = vmatpush3.bf16.msra.mxu0 %v12551_v5  ;;  %v12580_v5 = vld [vmem:[#allocation5 + $0xb38] sm:$0xff]  }
 0xf9d   : > { %11474 = vmatprep.subr.bf16.mxu0 %v12891_v10 }
 0xf9f   : > { %11455 = vmatpush3.bf16.msra.mxu1 %v12536_v33  ;;  %v12570_v33 = vld [vmem:[#allocation5 + $0xb60] sm:$0xff]  }
 0xfa0   : > { %11456 = vmatprep.subr.bf16.mxu1 %v12891_v10  ;;  %11475 = vmatpush3.bf16.msra.mxu0 %v12552_v6  ;;  %v12581_v6 = vld [vmem:[#allocation5 + $0xbb0] sm:$0xff]  }
 0xfa1   : > { %11476 = vmatprep.subr.bf16.mxu0 %v12891_v10 }
 0xfa3   : > { %11457 = vmatpush3.bf16.msra.mxu1 %v12539_v2  ;;  %v12571_v2 = vld [vmem:[#allocation5 + $0xb20] sm:$0xff]  }
 0xfa4   : > { %11458 = vmatprep.subr.bf16.mxu1 %v12891_v10  ;;  %11477 = vmatpush3.bf16.msra.mxu0 %v12553_v7  ;;  %v12582_v7 = vld [vmem:[#allocation5 + $0xbb8] sm:$0xff]  }
 0xfa5   : > { %11478 = vmatprep.subr.bf16.mxu0 %v12891_v10 }
 0xfa7   : > { %11459 = vmatpush3.bf16.msra.mxu1 %v12542_v43  ;;  %v12573_v43 = vld [vmem:[#allocation5 + $0xb68] sm:$0xff]  }
 0xfa8   : > { %11460 = vmatprep.subr.bf16.mxu1 %v12891_v10  ;;  %11479 = vmatpush3.bf16.msra.mxu0 %v12554_v9  ;;  %v12583_v9 = vld [vmem:[#allocation5 + $0xc00] sm:$0xff]  }
 0xfa9   : > { %11480 = vmatprep.subr.bf16.mxu0 %v12891_v10 }
 0xfab   : > { %11461 = vmatpush3.bf16.msra.mxu1 %v12545_v46  ;;  %v12574_v46 = vld [vmem:[#allocation5 + $0xb28] sm:$0xff]  }
 0xfac   : > { %11462 = vmatprep.subr.bf16.mxu1 %v12891_v10  ;;  %11481 = vmatpush3.bf16.msra.mxu0 %v12555_v12 }
 0xfad   : > { %11482 = vmatprep.subr.bf16.mxu0 %v12891_v10 }
 0xfaf   : > { %11463 = vmatpush3.bf16.msra.mxu1 %v12548_v60  ;;  %v12576_v60 = vld [vmem:[#allocation5 + $0xb70] sm:$0xff]  }
 0xfb0   : > { %11464 = vmatprep.subr.bf16.mxu1 %v12891_v10  ;;  %11483 = vmatpush3.bf16.msra.mxu0 %v12556_v3  ;;  %v12587_v3 = vld [vmem:[#allocation5 + $0xc10] sm:$0xff]  }
 0xfb1   : > { %11484 = vmatprep.subr.bf16.mxu0 %v12891_v10 }
 0xfb3   : > { %11465 = vmatpush3.bf16.msra.mxu1 %v12549_v59  ;;  %v12577_v59 = vld [vmem:[#allocation5 + $0xb30] sm:$0xff]  }
 0xfb4   : > { %11466 = vmatprep.subr.bf16.mxu1 %v12891_v10  ;;  %11485 = vmatpush3.bf16.msra.mxu0 %v12557_v4  ;;  %v12588_v4 = vld [vmem:[#allocation5 + $0xbd0] sm:$0xff]  }
 0xfb5   : > { %11486 = vmatprep.subr.bf16.mxu0 %v12891_v10 }
 0xfb7   : > { %11467 = vmatpush3.bf16.msra.mxu1 %v12550_v61  ;;  %v12579_v61 = vld [vmem:[#allocation5 + $0xb78] sm:$0xff]  }
 0xfb8   : > { %11492 = vmatprep.subr.mxu1 %v12891_v10  ;;  %11487 = vmatpush3.bf16.msra.mxu0 %v12558_v20  ;;  %v12589_v20 = vld [vmem:[#allocation5 + $0xc18] sm:$0xff]  }
 0xfb9   : > { %11502 = vmatprep.subr.bf16.mxu0 %v12891_v10 }
0x106b   : > { %v11241_v14 = vpop.f32.mrb[76].mxu0 }
0x106c   : > { %v11242_v40 = vpop.f32.mrb[77].mxu0 }
0x106d   : > { %v7538_v17 = vpop.f32.mrb[84].mxu1  ;;  %v11243_v8 = vadd.f32 %v11242_v40, %v11241_v14  ;;  %v11244_v18 = vpop.f32.mrb[78].mxu0  ;;  %v12584_v14 = vld [vmem:[#allocation5 + $0xbc0] sm:$0xff]  }
0x106e   : > { %v7592_v62 = vpack.c.bf16 %v7538_v17, %v7538_v17  ;;  %v11451_v15 = vpop.f32.mrb[85].mxu1  ;;  %v11245_v19 = vpop.f32.mrb[79].mxu0 }
0x1070   : > { %11469 = vmatmul.mubr.bf16.vlgmr.msra.gmra.mrb[88].mxu1 %v7592_v62  ;;  %v12586_v62 = vld [vmem:[#allocation5 + $0xbc8] sm:$0xff]  }
0x1071   : > { %11494 = vmatprep.mubr.msk.f32.mxu1 %vm12893_vm9, %v12891_v10 }
0x1143   : > { %v7811_v24 = vpop.f32.mrb[88].mxu1 }
0x1144   : > { %v13448_v27 = vadd.f32 %v11243_v8, %v7811_v24  ;;  %v11470_v25 = vpop.f32.mrb[89].mxu1  ;;  %v12585_v8 = vld [vmem:[#allocation5 + $0xc08] sm:$0xff]   ;;  %v12590_v24 = vld [vmem:[#allocation5 + $0xbd8] sm:$0xff]  }
0x1145   : > { %v7814_v32 = vpop.f32.mrb[90].mxu1  ;;  %v12592_v25 = vld [vmem:[#allocation5 + $0xbe0] sm:$0xff]  }
0x1146   : > { %v7819_v36 = vmul.f32 %v7817_v26, %v13448_v27  ;;  %v11471_v30 = vpop.f32.mrb[91].mxu1  ;;  %v12591_v26 = vld [vmem:[#allocation5 + $0xc20] sm:$0xff]   ;;  %v12594_v32 = vld [vmem:[#allocation5 + $0xbe8] sm:$0xff]  }
0x1147   : > { %v12596_v30 = vld [vmem:[#allocation5 + $0xbf0] sm:$0xff]  }
0x1148   : > { %v7820_v37 = vadd.f32 %v7819_v36, %v7818_v29  ;;  %v12593_v29 = vld [vmem:[#allocation5 + $0xc28] sm:$0xff]   ;;  %v12595_v36 = vld [vmem:[#allocation5 + $0xc30] sm:$0xff]  }
0x114a   : > { %v7821_v38 = vmax.f32 %v7820_v37, 0.0  ;;  %v12597_v37 = vld [vmem:[#allocation5 + $0xc38] sm:$0xff]  }
0x114c   : > { %v7838_v22 = vpack.c.bf16 %v7821_v38, %v7821_v38  ;;  %v12598_v38 = vld [vmem:[#allocation5 + $0xbf8] sm:$0xff]  }
0x114e   : > { %11489 = vmatmul.mubr.bf16.vlgmr.msra.gmra.mrb[80].mxu0 %v7838_v22  ;;  %v8357_v22 = vld [vmem:[#allocation2 + $0x60] ss:$8 sm:$0x3] }
0x114f   : > { %11518 = vmatprep.mubr.msk.bf16.mxu0 %vm12893_vm9, %v12891_v10  ;;  %11503 = vmatpush3.bf16.msra.mxu0 %v12563_v21  ;;  %v8364_v21 = vrot.slane %v8357_v22, %v13128_v47 }
0x1150   : > { %11504 = vmatprep.subr.bf16.mxu0 %v12891_v10 }
0x1153   : > { %11505 = vmatpush3.bf16.msra.mxu0 %v12566_v35  ;;  %v8359_v35 = vld [vmem:[#allocation2 + $0x61] ss:$8 sm:$0x3] }
0x1154   : > { %11506 = vmatprep.subr.bf16.mxu0 %v12891_v10 }
0x1157   : > { %11507 = vmatpush3.bf16.msra.mxu0 %v12569_v44 }
0x1158   : > { %11508 = vmatprep.subr.bf16.mxu0 %v12891_v10 }
0x115b   : > { %11509 = vmatpush3.bf16.msra.mxu0 %v12572_v31 }
0x115c   : > { %11510 = vmatprep.subr.bf16.mxu0 %v12891_v10 }
0x115f   : > { %11511 = vmatpush3.bf16.msra.mxu0 %v12575_v52  ;;  %v8371_v52 = vmul.f32 %v8364_v21, %v13448_v27  ;;  %v13500_v21 = vld [vmem:[#allocation2 + $0x64] ss:$8 sm:$0x7] }
0x1160   : > { %11512 = vmatprep.subr.bf16.mxu0 %v12891_v10 }
0x1163   : > { %11513 = vmatpush3.bf16.msra.mxu0 %v12578_v23  ;;  %v8377_v23 = vrot.slane %v8359_v35, %v13128_v47 }
0x1164   : > { %11514 = vmatprep.subr.bf16.mxu0 %v12891_v10 }
0x1167   : > { %11515 = vmatpush3.bf16.msra.mxu0 %v12581_v6 }
0x1168   : > { %11516 = vmatprep.subr.bf16.mxu0 %v12891_v10 }
0x116b   : > { %11517 = vmatpush3.bf16.msra.mxu0 %v12582_v7 }
0x116c   : > { %11522 = vmatprep.subr.mxu0 %v12891_v10 }
0x1221   : > { %v7921_v49 = vpop.f32.mrb[80].mxu0 }
0x1222   : > { %v7929_v50 = vmul.f32 %v7927_v16, %v7921_v49  ;;  %v11490_v51 = vpop.f32.mrb[81].mxu0 }
0x1223   : > { %v7924_v28 = vpop.f32.mrb[82].mxu0 }
0x1224   : > { %v7930_v53 = vadd.f32 %v7929_v50, %v7928_v45  ;;  %v11491_v54 = vpop.f32.mrb[83].mxu0  ;;  %v8368_v50 = vrot.slane %v8357_v22, %v13131_v48  ;;  %v12624_v22 = vld [vmem:[#allocation5 + $0xcf8] sm:$0xff]  }
0x1226   : > { %v7931_v55 = vmax.f32 %v7930_v53, 0.0  ;;  %v8381_v53 = vrot.slane %v8359_v35, %v13131_v48  ;;  %v8993_v35 = vrot.slane %v13500_v21, %v13131_v48 }
0x1228   : > { %11493 = vmatpush3.msk.msra.mxu1 %vm7935_vm11, %v7931_v55  ;;  %v8130_v57 = vpack.c.bf16 %v7931_v55, %v7931_v55 }
0x1229   : > { %11495 = vmatmul.mubr.msk.f32.vlgmr.msra.gmra.mrb[86].mxu1 %vm7932_vm10, %v13103_v11  ;;  %11497 = vmatprep.subr.mxu1 %v12891_v10 }
0x122a   : > { %11498 = vmatpush3.msk.msra.mxu1 %vm7935_vm11, %v7931_v55  ;;  %11499 = vmatprep.mubr.msk.f32.mxu1 %vm12893_vm9, %v12891_v10  ;;  %v8384_v55 = vadd.f32 %v8377_v23, %v8371_v52 }
0x122b   : > { %11269 = vmatprep.subr.bf16.mxu1 %v12559_v56 }
0x122d   : > { %11500 = vmatmul.mubr.msk.f32.vlgmr.msra.gmra.mrb[92].mxu1 %vm7932_vm10, %v13110_v13 }
0x122e   : > { %8308 = vmatprep.mubr.bf16.mxu1 %v8130_v57  ;;  %11270 = vmatpush3.bf16.msra.mxu1 %v12560_v34 }
0x122f   : > { %11271 = vmatprep.subr.bf16.mxu1 %v12561_v39 }
0x1232   : > { %11272 = vmatpush3.bf16.msra.mxu1 %v12562_v63  ;;  %v8386_v63 = vmax.f32 %v8384_v55, 0.0 }
0x1233   : > { %11273 = vmatprep.subr.bf16.mxu1 %v12564_v58 }
0x1236   : > { %11274 = vmatpush3.bf16.msra.mxu1 %v12565_v1 }
0x1237   : > { %11275 = vmatprep.subr.bf16.mxu1 %v12567_v41  ;;  %v8420_v41 = vpack.c.bf16 %v8386_v63, %v8386_v63 }
0x123a   : > { %11276 = vmatpush3.bf16.msra.mxu1 %v12568_v42  ;;  %v12603_v42 = vld [vmem:[#allocation5 + $0xcc0] sm:$0xff]  }
0x123b   : > { %11277 = vmatprep.subr.bf16.mxu1 %v12570_v33  ;;  %v12606_v33 = vld [vmem:[#allocation5 + $0xcc8] sm:$0xff]  }
0x123e   : > { %11278 = vmatpush3.bf16.msra.mxu1 %v12571_v2  ;;  %v12609_v2 = vld [vmem:[#allocation5 + $0xcd0] sm:$0xff]  }
0x123f   : > { %11279 = vmatprep.subr.bf16.mxu1 %v12573_v43  ;;  %v12612_v43 = vld [vmem:[#allocation5 + $0xcd8] sm:$0xff]  }
0x1242   : > { %11280 = vmatpush3.bf16.msra.mxu1 %v12574_v46  ;;  %v12615_v46 = vld [vmem:[#allocation5 + $0xce0] sm:$0xff]  }
0x1243   : > { %11281 = vmatprep.subr.bf16.mxu1 %v12576_v60  ;;  %v12618_v60 = vld [vmem:[#allocation5 + $0xce8] sm:$0xff]  }
0x1246   : > { %11282 = vmatpush3.bf16.msra.mxu1 %v12577_v59 }
0x1247   : > { %11283 = vmatprep.subr.bf16.mxu1 %v12579_v61 }
0x124a   : > { %11284 = vmatpush3.bf16.msra.mxu1 %v12580_v5  ;;  %v8558_v5 = vld [vmem:[#allocation2 + $0x62] ss:$0 sm:$0xff] }
0x124b   : > { %11300 = vmatprep.subr.bf16.mxu1 %v12583_v9  ;;  %v8559_v9 = vld [vmem:[#allocation2 + $0x63] ss:$0 sm:$0xff] }
0x12fc   : > { %v8005_v12 = vpop.f32.mrb[86].mxu1 }
0x12fd   : > { %v8129_v40 = vpack.c.bf16 %v8005_v12, %v8005_v12  ;;  %v11496_v17 = vpop.f32.mrb[87].mxu1 }
0x12ff   : > { %8309 = vmatmul.mubr.bf16.vlgmr.msra.gmra.mrb[96].mxu1 %v8129_v40 }
0x1300   : > { %v8077_v18 = vpop.f32.mrb[92].mxu1  ;;  %11301 = vmatpush3.bf16.msra.mxu1 %v12584_v14 }
0x1301   : > { %v8131_v15 = vpack.c.bf16 %v8077_v18, %v8077_v18  ;;  %v11501_v19 = vpop.f32.mrb[93].mxu1  ;;  %11302 = vmatprep.subr.bf16.mxu1 %v12585_v8  ;;  %v12599_v8 = vld [vmem:[#allocation5 + $0xc80] sm:$0xff]  }
0x1302   : > { %v12600_v18 = vld [vmem:[#allocation5 + $0xc40] sm:$0xff]   ;;  %v12602_v19 = vld [vmem:[#allocation5 + $0xc48] sm:$0xff]  }
0x1303   : > { %11519 = vmatmul.mubr.bf16.vlgmr.msra.gmra.mrb[84].mxu0 %v8131_v15 }
0x1304   : > { %11303 = vmatpush3.bf16.msra.mxu1 %v12586_v62  ;;  %11524 = vmatprep.mubr.msk.f32.mxu0 %vm12893_vm9, %v12891_v10  ;;  %v12601_v62 = vld [vmem:[#allocation5 + $0xc88] sm:$0xff]  }
0x1305   : > { %11304 = vmatprep.subr.bf16.mxu1 %v12587_v3  ;;  %v12604_v3 = vld [vmem:[#allocation5 + $0xc90] sm:$0xff]  }
0x1308   : > { %11305 = vmatpush3.bf16.msra.mxu1 %v12588_v4  ;;  %v12607_v4 = vld [vmem:[#allocation5 + $0xc98] sm:$0xff]  }
0x1309   : > { %11306 = vmatprep.subr.bf16.mxu1 %v12589_v20  ;;  %v12608_v20 = vld [vmem:[#allocation5 + $0xc58] sm:$0xff]  }
0x130c   : > { %11307 = vmatpush3.bf16.msra.mxu1 %v12590_v24  ;;  %v12610_v24 = vld [vmem:[#allocation5 + $0xca0] sm:$0xff]  }
0x130d   : > { %11308 = vmatprep.subr.bf16.mxu1 %v12591_v26  ;;  %v12611_v26 = vld [vmem:[#allocation5 + $0xc60] sm:$0xff]  }
0x1310   : > { %11309 = vmatpush3.bf16.msra.mxu1 %v12592_v25  ;;  %v12613_v25 = vld [vmem:[#allocation5 + $0xca8] sm:$0xff]  }
0x1311   : > { %11310 = vmatprep.subr.bf16.mxu1 %v12593_v29  ;;  %v12614_v29 = vld [vmem:[#allocation5 + $0xc68] sm:$0xff]  }
0x1314   : > { %11311 = vmatpush3.bf16.msra.mxu1 %v12594_v32  ;;  %v12617_v32 = vld [vmem:[#allocation5 + $0xc70] sm:$0xff]  }
0x1315   : > { %11312 = vmatprep.subr.bf16.mxu1 %v12595_v36  ;;  %v12619_v36 = vld [vmem:[#allocation5 + $0xcb8] sm:$0xff]  }
0x1318   : > { %11313 = vmatpush3.bf16.msra.mxu1 %v12596_v30  ;;  %v12620_v30 = vld [vmem:[#allocation5 + $0xc78] sm:$0xff]  }
0x1319   : > { %11314 = vmatprep.subr.bf16.mxu1 %v12597_v37  ;;  %v12621_v37 = vld [vmem:[#allocation5 + $0xcf0] sm:$0xff]  }
0x131c   : > { %11315 = vmatpush3.bf16.msra.mxu1 %v12598_v38  ;;  %v12622_v38 = vld [vmem:[#allocation5 + $0xd40] sm:$0xff]  }
0x131d   : > { %11532 = vmatprep.subr.bf16.mxu1 %v12891_v10 }
0x13d2   : > { %v11285_v44 = vpop.f32.mrb[96].mxu1 }
0x13d3   : > { %v11286_v31 = vpop.f32.mrb[97].mxu1 }
0x13d4   : > { %v11287_v16 = vadd.f32 %v11286_v31, %v11285_v44  ;;  %v11288_v49 = vpop.f32.mrb[98].mxu1  ;;  %v13504_v44 = vld [vmem:[#allocation2 + $0x65] ss:$8 sm:$0x7] }
0x13d5   : > { %v11289_v45 = vpop.f32.mrb[99].mxu1  ;;  %v9012_v52 = vrot.slane %v13504_v44, %v13131_v48 }
0x13d6   : > { %v8350_v51 = vpop.f32.mrb[84].mxu0 }
0x13d7   : > { %v13477_v28 = vadd.f32 %v11287_v16, %v8350_v51  ;;  %v11520_v54 = vpop.f32.mrb[85].mxu0 }
0x13d8   : > { %v8353_v56 = vpop.f32.mrb[86].mxu0 }
0x13d9   : > { %v8372_v34 = vmul.f32 %v8368_v50, %v13477_v28  ;;  %v11521_v39 = vpop.f32.mrb[87].mxu0  ;;  %v9002_v31 = vmul.f32 %v8993_v35, %v13477_v28  ;;  %v9008_v56 = vrot.slane %v13504_v44, %v13128_v47  ;;  %v12648_v35 = vld [vmem:[#allocation5 + $0xd88] sm:$0xff]  }
0x13db   : > { %v8385_v57 = vadd.f32 %v8381_v53, %v8372_v34  ;;  %v9021_v23 = vadd.f32 %v9012_v52, %v9002_v31  ;;  %v8989_v53 = vrot.slane %v13500_v21, %v13128_v47  ;;  %v12649_v31 = vld [vmem:[#allocation5 + $0xd90] sm:$0xff]   ;;  %v12650_v52 = vld [vmem:[#allocation5 + $0xd98] sm:$0xff]  }
0x13dd   : > { %v8387_v58 = vmax.f32 %v8385_v57, 0.0  ;;  %v9024_v16 = vmax.f32 %v9021_v23, 0.0  ;;  %v9001_v55 = vmul.f32 %v8989_v53, %v13448_v27  ;;  %v12626_v27 = vld [vmem:[#allocation5 + $0xd08] sm:$0xff]   ;;  %v12651_v23 = vld [vmem:[#allocation5 + $0xda0] sm:$0xff]   ;;  %v12660_v53 = vld [vmem:[#allocation5 + $0xe50] sm:$0xff]  }
0x13df   : > { %v8421_v1 = vpack.c.bf16 %v8387_v58, %v8387_v58  ;;  %v9033_v49 = vsel %vm7935_vm11, %v9024_v16, 0.0  ;;  %v9020_v34 = vadd.f32 %v9008_v56, %v9001_v55  ;;  %v12623_v58 = vld [vmem:[#allocation5 + $0xd00] sm:$0xff]   ;;  %v12652_v16 = vld [vmem:[#allocation5 + $0xda8] sm:$0xff]  }
0x13e0   : > { %v9034_v45 = vrot.slane %v9033_v49, 4  ;;  %v12664_v55 = vld [vmem:[#allocation5 + $0xe60] sm:$0xff]   ;;  %v12666_v56 = vld [vmem:[#allocation5 + $0xe68] sm:$0xff]  }
0x13e1   : > { %8550 = vmatprep.mubr.bf16.mxu1 %v8421_v1  ;;  %v9023_v48 = vmax.f32 %v9020_v34, 0.0  ;;  %v12670_v34 = vld [vmem:[#allocation5 + $0xe78] sm:$0xff]  }
0x13e2   : > { %8551 = vmatmul.mubr.bf16.vlgmr.msra.gmra.mrb[100].mxu1 %v8420_v41  ;;  %v9035_v50 = vadd.f32 %v9034_v45, %v9033_v49  ;;  %v12653_v49 = vld [vmem:[#allocation5 + $0xdb0] sm:$0xff]   ;;  %v12654_v45 = vld [vmem:[#allocation5 + $0xdb8] sm:$0xff]  }
0x13e3   : > { %11548 = vmatprep.mubr.msk.bf16.mxu1 %vm12893_vm9, %v12891_v10  ;;  %11533 = vmatpush3.bf16.msra.mxu1 %v12603_v42  ;;  %v12625_v42 = vld [vmem:[#allocation5 + $0xd48] sm:$0xff]  }
0x13e4   : > { %11534 = vmatprep.subr.bf16.mxu1 %v12891_v10  ;;  %v9036_v51 = vrot.slane %v9035_v50, 2 }
0x13e6   : > { %v9037_v54 = vadd.f32 %v9036_v51, %v9035_v50  ;;  %v12656_v50 = vld [vmem:[#allocation5 + $0xe40] sm:$0xff]   ;;  %v12658_v51 = vld [vmem:[#allocation5 + $0xe48] sm:$0xff]  }
0x13e7   : > { %11535 = vmatpush3.bf16.msra.mxu1 %v12606_v33  ;;  %v9026_v33 = vsel %vm7935_vm11, %v9023_v48, 0.0 }
0x13e8   : > { %11536 = vmatprep.subr.bf16.mxu1 %v12891_v10  ;;  %v9038_v28 = vrot.slane %v9037_v54, 1  ;;  %v9027_v47 = vrot.slane %v9026_v33, 4 }
0x13ea   : > { %v9039_v39 = vadd.f32 %v9038_v28, %v9037_v54  ;;  %v12662_v54 = vld [vmem:[#allocation5 + $0xe58] sm:$0xff]   ;;  %v12668_v28 = vld [vmem:[#allocation5 + $0xe70] sm:$0xff]  }
0x13eb   : > { %11537 = vmatpush3.bf16.msra.mxu1 %v12609_v2 }
0x13ec   : > { %11538 = vmatprep.subr.bf16.mxu1 %v12891_v10  ;;  %v9049_v57 = vmul.f32 0.25, %v9039_v39 }
0x13ee   : > { %v9100_v2 = vpack.c.bf16 %v9049_v57, %v9049_v57 }
0x13ef   : > { %11539 = vmatpush3.bf16.msra.mxu1 %v12612_v43 }
0x13f0   : > { %11540 = vmatprep.subr.bf16.mxu1 %v12891_v10 }
0x13f3   : > { %11541 = vmatpush3.bf16.msra.mxu1 %v12615_v46  ;;  %v12647_v46 = vld [vmem:[#allocation5 + $0xd80] sm:$0xff]  }
0x13f4   : > { %11542 = vmatprep.subr.bf16.mxu1 %v12891_v10 }
0x13f7   : > { %11543 = vmatpush3.bf16.msra.mxu1 %v12618_v60 }
0x13f8   : > { %11544 = vmatprep.subr.bf16.mxu1 %v12891_v10 }
0x13fb   : > { %11545 = vmatpush3.bf16.msra.mxu1 %v12621_v37  ;;  %v12646_v37 = vld [vmem:[#allocation5 + $0xdf8] sm:$0xff]  }
0x13fc   : > { %11546 = vmatprep.subr.bf16.mxu1 %v12891_v10 }
0x13ff   : > { %11547 = vmatpush3.bf16.msra.mxu1 %v12624_v22 }
0x1400   : > { %11552 = vmatprep.subr.bf16.mxu1 %v12891_v10 }
0x14b5   : > { %v11316_v59 = vpop.f32.mrb[100].mxu1 }
0x14b6   : > { %v11317_v61 = vpop.f32.mrb[101].mxu1 }
0x14b7   : > { %v11318_v6 = vadd.f32 %v11317_v61, %v11316_v59  ;;  %v11319_v7 = vpop.f32.mrb[102].mxu1  ;;  %v12627_v59 = vld [vmem:[#allocation5 + $0xd50] sm:$0xff]  }
0x14b8   : > { %v11320_v12 = vpop.f32.mrb[103].mxu1  ;;  %v12629_v7 = vld [vmem:[#allocation5 + $0xd58] sm:$0xff]  }
0x14b9   : > { %v8560_v14 = vmul.f32 %v11318_v6, %v8558_v5  ;;  %v12628_v5 = vld [vmem:[#allocation5 + $0xd10] sm:$0xff]   ;;  %v9028_v6 = vadd.f32 %v9027_v47, %v9026_v33  ;;  %v12631_v12 = vld [vmem:[#allocation5 + $0xd60] sm:$0xff]   ;;  %v9016_v33 = vrot.slane %v13504_v44, %v13174_v0 }
0x14bb   : > { %v8561_v40 = vadd.f32 %v8560_v14, %v8559_v9  ;;  %v12630_v9 = vld [vmem:[#allocation5 + $0xd18] sm:$0xff]   ;;  %v9029_v14 = vrot.slane %v9028_v6, 2 }
0x14bd   : > { %v8562_v17 = vmax.f32 %v8561_v40, 0.0  ;;  %v12632_v40 = vld [vmem:[#allocation5 + $0xd20] sm:$0xff]  }
0x14bf   : > { %11523 = vmatpush3.msk.msra.mxu0 %vm7935_vm11, %v8562_v17  ;;  %v8755_v15 = vpack.c.bf16 %v8562_v17, %v8562_v17 }
0x14c0   : > { %11525 = vmatmul.mubr.msk.f32.vlgmr.msra.gmra.mrb[42].mxu0 %vm7932_vm10, %v13103_v11  ;;  %11527 = vmatprep.subr.mxu0 %v12891_v10  ;;  %v12605_v11 = vld [vmem:[#allocation5 + $0xc50] sm:$0xff]  }
0x14c1   : > { %11528 = vmatpush3.msk.msra.mxu0 %vm7935_vm11, %v8562_v17  ;;  %11529 = vmatprep.mubr.msk.f32.mxu0 %vm12893_vm9, %v12891_v10  ;;  %v12633_v17 = vld [vmem:[#allocation5 + $0xd68] sm:$0xff]  }
0x14c2   : > { %11326 = vmatprep.subr.bf16.mxu0 %v12599_v8  ;;  %v9030_v8 = vadd.f32 %v9029_v14, %v9028_v6  ;;  %v12655_v14 = vld [vmem:[#allocation5 + $0xe00] sm:$0xff]  }
0x14c4   : > { %11530 = vmatmul.mubr.msk.f32.vlgmr.msra.gmra.mrb[88].mxu0 %vm7932_vm10, %v13110_v13  ;;  %v12616_v13 = vld [vmem:[#allocation5 + $0xcb0] sm:$0xff]  }
0x14c5   : > { %8933 = vmatprep.mubr.bf16.mxu0 %v8755_v15  ;;  %11327 = vmatpush3.bf16.msra.mxu0 %v12600_v18  ;;  %v12634_v18 = vld [vmem:[#allocation5 + $0xd28] sm:$0xff]   ;;  %v9031_v15 = vrot.slane %v9030_v8, 1 }
0x14c6   : > { %11328 = vmatprep.subr.bf16.mxu0 %v12601_v62  ;;  %v12635_v62 = vld [vmem:[#allocation5 + $0xd70] sm:$0xff]  }
0x14c9   : > { %11329 = vmatpush3.bf16.msra.mxu0 %v12602_v19  ;;  %v12636_v19 = vld [vmem:[#allocation5 + $0xd30] sm:$0xff]  }
0x14ca   : > { %11330 = vmatprep.subr.bf16.mxu0 %v12604_v3  ;;  %v12637_v3 = vld [vmem:[#allocation5 + $0xd78] sm:$0xff]  }
0x14cd   : > { %11331 = vmatpush3.bf16.msra.mxu0 %v12605_v11  ;;  %v9032_v11 = vadd.f32 %v9031_v15, %v9030_v8  ;;  %v12659_v15 = vld [vmem:[#allocation5 + $0xe10] sm:$0xff]  }
0x14ce   : > { %11332 = vmatprep.subr.bf16.mxu0 %v12607_v4  ;;  %v12638_v4 = vld [vmem:[#allocation5 + $0xd38] sm:$0xff]  }
0x14d1   : > { %11333 = vmatpush3.bf16.msra.mxu0 %v12608_v20  ;;  %v9048_v20 = vmul.f32 0.25, %v9032_v11  ;;  %v12665_v11 = vld [vmem:[#allocation5 + $0xe28] sm:$0xff]  }
0x14d2   : > { %11334 = vmatprep.subr.bf16.mxu0 %v12610_v24  ;;  %v12639_v24 = vld [vmem:[#allocation5 + $0xdc0] sm:$0xff]  }
0x14d5   : > { %11335 = vmatpush3.bf16.msra.mxu0 %v12611_v26  ;;  %v9099_v26 = vpack.c.bf16 %v9048_v20, %v9048_v20  ;;  %v12669_v20 = vld [vmem:[#allocation5 + $0xe38] sm:$0xff]  }
0x14d6   : > { %11336 = vmatprep.subr.bf16.mxu0 %v12613_v25  ;;  %v12640_v25 = vld [vmem:[#allocation5 + $0xdc8] sm:$0xff]  }
0x14d9   : > { %11337 = vmatpush3.bf16.msra.mxu0 %v12614_v29  ;;  %v12641_v29 = vld [vmem:[#allocation5 + $0xdd0] sm:$0xff]  }
0x14da   : > { %11338 = vmatprep.subr.bf16.mxu0 %v12616_v13  ;;  %v12642_v13 = vld [vmem:[#allocation5 + $0xdd8] sm:$0xff]  }
0x14dd   : > { %11339 = vmatpush3.bf16.msra.mxu0 %v12617_v32  ;;  %v12643_v32 = vld [vmem:[#allocation5 + $0xde0] sm:$0xff]  }
0x14de   : > { %11340 = vmatprep.subr.bf16.mxu0 %v12619_v36  ;;  %v12644_v36 = vld [vmem:[#allocation5 + $0xde8] sm:$0xff]  }
0x14e1   : > { %11341 = vmatpush3.bf16.msra.mxu0 %v12620_v30  ;;  %v12645_v30 = vld [vmem:[#allocation5 + $0xdf0] sm:$0xff]  }
0x14e2   : > { %11357 = vmatprep.subr.bf16.mxu0 %v12622_v38  ;;  %v9327_v38 = vld [vmem:[%s323_s28] sm:$0x1] }
0x14e3   : > { %v9344_v22 = vpack.c.bf16 %v9327_v38, %v9327_v38  ;;  %v12672_v38 = vld [vmem:[#allocation5 + $0xe88] sm:$0xff]  }
0x1593   : > { %v8632_v63 = vpop.f32.mrb[42].mxu0 }
0x1594   : > { %v8754_v1 = vpack.c.bf16 %v8632_v63, %v8632_v63  ;;  %v11526_v41 = vpop.f32.mrb[43].mxu0 }
0x1596   : > { %8934 = vmatmul.mubr.bf16.vlgmr.msra.gmra.mrb[92].mxu0 %v8754_v1 }
0x1597   : > { %11358 = vmatpush3.bf16.msra.mxu0 %v12623_v58  ;;  %v8702_v43 = vpop.f32.mrb[88].mxu0  ;;  %9279 = vmatprep.mubr.bf16.mxu0 %v9100_v2  ;;  %v8997_v58 = vrot.slane %v13500_v21, %v13174_v0  ;;  %v12657_v0 = vld [vmem:[#allocation5 + $0xe08] sm:$0xff]  }
0x1598   : > { %v8756_v60 = vpack.c.bf16 %v8702_v43, %v8702_v43  ;;  %11359 = vmatprep.subr.bf16.mxu0 %v12625_v42  ;;  %v11531_v61 = vpop.f32.mrb[89].mxu0 }
0x159a   : > { %11549 = vmatmul.mubr.bf16.vlgmr.msra.gmra.mrb[104].mxu1 %v8756_v60 }
0x159b   : > { %11360 = vmatpush3.bf16.msra.mxu0 %v12626_v27  ;;  %11553 = vmatpush3.bf16.msra.mxu1 %v12647_v46 }
0x159c   : > { %11361 = vmatprep.subr.bf16.mxu0 %v12627_v59  ;;  %11554 = vmatprep.subr.bf16.mxu1 %v12891_v10 }
0x159d   : > { %11568 = vmatprep.mubr.msk.bf16.mxu1 %vm12893_vm9, %v12891_v10 }
0x159f   : > { %11362 = vmatpush3.bf16.msra.mxu0 %v12628_v5  ;;  %11555 = vmatpush3.bf16.msra.mxu1 %v12648_v35  ;;  %v12674_v35 = vld [vmem:[#allocation5 + $0xe98] sm:$0xff]  }
0x15a0   : > { %11363 = vmatprep.subr.bf16.mxu0 %v12629_v7  ;;  %11556 = vmatprep.subr.bf16.mxu1 %v12891_v10 }
0x15a3   : > { %11364 = vmatpush3.bf16.msra.mxu0 %v12630_v9  ;;  %11557 = vmatpush3.bf16.msra.mxu1 %v12649_v31  ;;  %v12675_v31 = vld [vmem:[#allocation5 + $0xea0] sm:$0xff]  }
0x15a4   : > { %11365 = vmatprep.subr.bf16.mxu0 %v12631_v12  ;;  %11558 = vmatprep.subr.bf16.mxu1 %v12891_v10 }
0x15a7   : > { %11366 = vmatpush3.bf16.msra.mxu0 %v12632_v40  ;;  %11559 = vmatpush3.bf16.msra.mxu1 %v12650_v52  ;;  %v12676_v52 = vld [vmem:[#allocation5 + $0xea8] sm:$0xff]  }
0x15a8   : > { %11367 = vmatprep.subr.bf16.mxu0 %v12633_v17  ;;  %11560 = vmatprep.subr.bf16.mxu1 %v12891_v10 }
0x15ab   : > { %11368 = vmatpush3.bf16.msra.mxu0 %v12634_v18  ;;  %11561 = vmatpush3.bf16.msra.mxu1 %v12651_v23  ;;  %v12677_v23 = vld [vmem:[#allocation5 + $0xeb0] sm:$0xff]  }
0x15ac   : > { %11369 = vmatprep.subr.bf16.mxu0 %v12635_v62  ;;  %11562 = vmatprep.subr.bf16.mxu1 %v12891_v10 }
0x15af   : > { %11370 = vmatpush3.bf16.msra.mxu0 %v12636_v19  ;;  %11563 = vmatpush3.bf16.msra.mxu1 %v12652_v16  ;;  %v12661_v19 = vld [vmem:[#allocation5 + $0xe18] sm:$0xff]  }
0x15b0   : > { %11371 = vmatprep.subr.bf16.mxu0 %v12637_v3  ;;  %11564 = vmatprep.subr.bf16.mxu1 %v12891_v10  ;;  %v12663_v3 = vld [vmem:[#allocation5 + $0xe20] sm:$0xff]   ;;  %v12678_v16 = vld [vmem:[#allocation5 + $0xeb8] sm:$0xff]  }
0x15b3   : > { %11372 = vmatpush3.bf16.msra.mxu0 %v12638_v4  ;;  %11565 = vmatpush3.bf16.msra.mxu1 %v12653_v49  ;;  %v12667_v4 = vld [vmem:[#allocation5 + $0xe30] sm:$0xff]   ;;  %v12679_v49 = vld [vmem:[#allocation5 + $0xec0] sm:$0xff]  }
0x15b4   : > { %11572 = vmatprep.subr.bf16.mxu0 %v12891_v10  ;;  %11566 = vmatprep.subr.bf16.mxu1 %v12891_v10 }
0x15b6   : > { %9280 = vmatmul.mubr.bf16.vlgmr.msra.gmra.mrb[96].mxu0 %v9099_v26 }
0x15b7   : > { %11573 = vmatpush3.bf16.msra.mxu0 %v12639_v24  ;;  %11588 = vmatprep.mubr.msk.bf16.mxu0 %vm12893_vm9, %v12891_v10  ;;  %v9345_v24 = vld [vmem:[#allocation2 + $0x67] ss:$0 sm:$0xff] }
0x15b8   : > { %11574 = vmatprep.subr.bf16.mxu0 %v12891_v10  ;;  %11567 = vmatpush3.bf16.msra.mxu1 %v12654_v45  ;;  %v12680_v45 = vld [vmem:[#allocation5 + $0xec8] sm:$0xff]  }
0x15b9   : > { %11592 = vmatprep.subr.bf16.mxu1 %v12891_v10 }
0x15bb   : > { %11575 = vmatpush3.bf16.msra.mxu0 %v12640_v25 }
0x15bc   : > { %11576 = vmatprep.subr.bf16.mxu0 %v12891_v10 }
0x15bf   : > { %11577 = vmatpush3.bf16.msra.mxu0 %v12641_v29 }
0x15c0   : > { %11578 = vmatprep.subr.bf16.mxu0 %v12891_v10 }
0x15c3   : > { %11579 = vmatpush3.bf16.msra.mxu0 %v12642_v13 }
0x15c4   : > { %11580 = vmatprep.subr.bf16.mxu0 %v12891_v10 }
0x15c7   : > { %11581 = vmatpush3.bf16.msra.mxu0 %v12643_v32 }
0x15c8   : > { %11582 = vmatprep.subr.bf16.mxu0 %v12891_v10 }
0x15cb   : > { %11583 = vmatpush3.bf16.msra.mxu0 %v12644_v36 }
0x15cc   : > { %11584 = vmatprep.subr.bf16.mxu0 %v12891_v10 }
0x15cf   : > { %11585 = vmatpush3.bf16.msra.mxu0 %v12645_v30 }
0x15d0   : > { %11586 = vmatprep.subr.bf16.mxu0 %v12891_v10 }
0x15d3   : > { %11587 = vmatpush3.bf16.msra.mxu0 %v12646_v37  ;;  %v12671_v37 = vld [vmem:[#allocation5 + $0xe80] sm:$0xff]  }
0x15d4   : > { %11612 = vmatprep.subr.bf16.mxu0 %v12891_v10 }
0x15d6   : > { %11589 = vmatmul.mubr.bf16.vlgmr.msra.gmra.mrb[100].mxu0 %v9344_v22  ;;  %v12673_v22 = vld [vmem:[#allocation5 + $0xe90] sm:$0xff]  }
0x15d7   : > { %11628 = vmatprep.mubr.msk.bf16.mxu0 %vm12893_vm9, %v12891_v10  ;;  %11613 = vmatpush3.bf16.msra.mxu0 %v12656_v50  ;;  %v12681_v50 = vld [vmem:[#allocation5 + $0xed0] sm:$0xff]  }
0x15d8   : > { %11614 = vmatprep.subr.bf16.mxu0 %v12891_v10 }
0x15db   : > { %11615 = vmatpush3.bf16.msra.mxu0 %v12658_v51  ;;  %v12682_v51 = vld [vmem:[#allocation5 + $0xed8] sm:$0xff]  }
0x15dc   : > { %11616 = vmatprep.subr.bf16.mxu0 %v12891_v10 }
0x15df   : > { %11617 = vmatpush3.bf16.msra.mxu0 %v12660_v53  ;;  %v12683_v53 = vld [vmem:[#allocation5 + $0xee0] sm:$0xff]  }
0x15e0   : > { %11618 = vmatprep.subr.bf16.mxu0 %v12891_v10 }
0x15e3   : > { %11619 = vmatpush3.bf16.msra.mxu0 %v12662_v54  ;;  %v12684_v54 = vld [vmem:[#allocation5 + $0xee8] sm:$0xff]  }
0x15e4   : > { %11620 = vmatprep.subr.bf16.mxu0 %v12891_v10 }
0x15e7   : > { %11621 = vmatpush3.bf16.msra.mxu0 %v12664_v55  ;;  %v9102_v55 = vld [vmem:[#allocation2 + $0x66] ss:$0 sm:$0xff] }
0x15e8   : > { %11622 = vmatprep.subr.bf16.mxu0 %v12891_v10 }
0x15eb   : > { %11623 = vmatpush3.bf16.msra.mxu0 %v12666_v56 }
0x15ec   : > { %11624 = vmatprep.subr.bf16.mxu0 %v12891_v10 }
0x15ef   : > { %11625 = vmatpush3.bf16.msra.mxu0 %v12668_v28 }
0x15f0   : > { %11626 = vmatprep.subr.bf16.mxu0 %v12891_v10 }
0x15f3   : > { %11627 = vmatpush3.bf16.msra.mxu0 %v12670_v34 }
0x15f4   : > { %11652 = vmatprep.subr.bf16.mxu0 %v12891_v10 }
0x1669   : > { %v11342_v39 = vpop.f32.mrb[92].mxu0 }
0x166a   : > { %v11343_v48 = vpop.f32.mrb[93].mxu0 }
0x166b   : > { %v11344_v57 = vadd.f32 %v11343_v48, %v11342_v39  ;;  %v11345_v63 = vpop.f32.mrb[94].mxu0 }
0x166c   : > { %v11346_v1 = vpop.f32.mrb[95].mxu0  ;;  %v9452_v63 = vld [vmem:[#allocation2 + $0x80] ss:$0 sm:$0xff] }
0x166d   : > { %v8975_v41 = vpop.f32.mrb[104].mxu1  ;;  %v9557_v1 = vld [vmem:[#allocation2 + $0x81] ss:$0 sm:$0xff] }
0x166e   : > { %v8976_v42 = vadd.f32 %v11344_v57, %v8975_v41  ;;  %v11550_v2 = vpop.f32.mrb[105].mxu1 }
0x166f   : > { %v8978_v43 = vpop.f32.mrb[106].mxu1 }
0x1670   : > { %v9003_v27 = vmul.f32 %v8997_v58, %v8976_v42  ;;  %v11551_v46 = vpop.f32.mrb[107].mxu1 }
0x1672   : > { %v9022_v47 = vadd.f32 %v9016_v33, %v9003_v27 }
0x1674   : > { %v9025_v60 = vmax.f32 %v9022_v47, 0.0 }
0x1676   : > { %v9040_v59 = vsel %vm7935_vm11, %v9025_v60, 0.0 }
0x1677   : > { %v9041_v61 = vrot.slane %v9040_v59, 4 }
0x1679   : > { %v9042_v5 = vadd.f32 %v9041_v61, %v9040_v59 }
0x167b   : > { %v9043_v6 = vrot.slane %v9042_v5, 2 }
0x167d   : > { %v9044_v7 = vadd.f32 %v9043_v6, %v9042_v5  ;;  %v12685_v6 = vld [vmem:[#allocation5 + $0xef0] sm:$0xff]  }
0x167f   : > { %v9045_v9 = vrot.slane %v9044_v7, 1 }
0x1681   : > { %v9046_v21 = vadd.f32 %v9045_v9, %v9044_v7  ;;  %v12686_v7 = vld [vmem:[#allocation5 + $0xef8] sm:$0xff]   ;;  %v9665_v9 = vld [vmem:[#allocation2 + $0x82] ss:$0 sm:$0xff] }
0x1683   : > { %v9050_v12 = vmul.f32 0.25, %v9046_v21 }
0x1685   : > { %v9101_v40 = vpack.c.bf16 %v9050_v12, %v9050_v12 }
0x1687   : > { %11569 = vmatmul.mubr.bf16.vlgmr.msra.gmra.mrb[108].mxu1 %v9101_v40 }
0x1688   : > { %11593 = vmatpush3.bf16.msra.mxu1 %v12655_v14  ;;  %11608 = vmatprep.mubr.msk.bf16.mxu1 %vm12893_vm9, %v12891_v10 }
0x1689   : > { %v11373_v44 = vpop.f32.mrb[96].mxu0  ;;  %11594 = vmatprep.subr.bf16.mxu1 %v12891_v10 }
0x168a   : > { %v11374_v17 = vpop.f32.mrb[97].mxu0 }
0x168b   : > { %v13560_v8 = vadd.f32 %v11374_v17, %v11373_v44  ;;  %v11376_v18 = vpop.f32.mrb[98].mxu0 }
0x168c   : > { %v11377_v62 = vpop.f32.mrb[99].mxu0  ;;  %11595 = vmatpush3.bf16.msra.mxu1 %v12657_v0 }
0x168d   : > { %11596 = vmatprep.subr.bf16.mxu1 %v12891_v10  ;;  %v9282_v56 = vadd.f32 %v13560_v8, %v9102_v55  ;;  %v9772_v8 = vld [vmem:[#allocation2 + $0x83] ss:$0 sm:$0xff] }
0x1690   : > { %11597 = vmatpush3.bf16.msra.mxu1 %v12659_v15 }
0x1691   : > { %11598 = vmatprep.subr.bf16.mxu1 %v12891_v10 }
0x1694   : > { %11599 = vmatpush3.bf16.msra.mxu1 %v12661_v19 }
0x1695   : > { %11600 = vmatprep.subr.bf16.mxu1 %v12891_v10 }
0x1698   : > { %11601 = vmatpush3.bf16.msra.mxu1 %v12663_v3 }
0x1699   : > { %11602 = vmatprep.subr.bf16.mxu1 %v12891_v10 }
0x169c   : > { %11603 = vmatpush3.bf16.msra.mxu1 %v12665_v11 }
0x169d   : > { %11604 = vmatprep.subr.bf16.mxu1 %v12891_v10 }
0x16a0   : > { %11605 = vmatpush3.bf16.msra.mxu1 %v12667_v4 }
0x16a1   : > { %11606 = vmatprep.subr.bf16.mxu1 %v12891_v10 }
0x16a4   : > { %11607 = vmatpush3.bf16.msra.mxu1 %v12669_v20 }
0x16a5   : > { %11632 = vmatprep.subr.bf16.mxu1 %v12891_v10 }
0x16a9   : > { %v9428_v26 = vpop.f32.mrb[100].mxu0 }
0x16aa   : > { %v9429_v25 = vadd.f32 %v9428_v26, %v9345_v24  ;;  %v11590_v29 = vpop.f32.mrb[101].mxu0 }
0x16ab   : > { %v9431_v13 = vpop.f32.mrb[102].mxu0 }
0x16ac   : > { %v9434_v32 = vmax.f32 %v9429_v25, 0.0  ;;  %v11591_v36 = vpop.f32.mrb[103].mxu0 }
0x16ae   : > { %v9451_v30 = vpack.c.bf16 %v9434_v32, %v9434_v32 }
0x16b0   : > { %11609 = vmatmul.mubr.bf16.vlgmr.msra.gmra.mrb[112].mxu1 %v9451_v30  ;;  %11629 = vmatmul.mubr.bf16.vlgmr.msra.gmra.mrb[104].mxu0 %v9451_v30 }
0x16b1   : > { %11648 = vmatprep.mubr.msk.bf16.mxu1 %vm12893_vm9, %v12891_v10  ;;  %11668 = vmatprep.mubr.msk.bf16.mxu0 %vm12893_vm9, %v12891_v10 }
0x16b2   : > { %11633 = vmatpush3.bf16.msra.mxu1 %v12671_v37  ;;  %11653 = vmatpush3.bf16.msra.mxu0 %v12679_v49 }
0x16b3   : > { %11634 = vmatprep.subr.bf16.mxu1 %v12891_v10  ;;  %11654 = vmatprep.subr.bf16.mxu0 %v12891_v10 }
0x16b6   : > { %11635 = vmatpush3.bf16.msra.mxu1 %v12672_v38  ;;  %11655 = vmatpush3.bf16.msra.mxu0 %v12680_v45 }
0x16b7   : > { %11636 = vmatprep.subr.bf16.mxu1 %v12891_v10  ;;  %11656 = vmatprep.subr.bf16.mxu0 %v12891_v10 }
0x16ba   : > { %11637 = vmatpush3.bf16.msra.mxu1 %v12673_v22  ;;  %11657 = vmatpush3.bf16.msra.mxu0 %v12681_v50 }
0x16bb   : > { %11638 = vmatprep.subr.bf16.mxu1 %v12891_v10  ;;  %11658 = vmatprep.subr.bf16.mxu0 %v12891_v10 }
0x16be   : > { %11639 = vmatpush3.bf16.msra.mxu1 %v12674_v35  ;;  %11659 = vmatpush3.bf16.msra.mxu0 %v12682_v51 }
0x16bf   : > { %11640 = vmatprep.subr.bf16.mxu1 %v12891_v10  ;;  %11660 = vmatprep.subr.bf16.mxu0 %v12891_v10 }
0x16c2   : > { %11641 = vmatpush3.bf16.msra.mxu1 %v12675_v31  ;;  %11661 = vmatpush3.bf16.msra.mxu0 %v12683_v53 }
0x16c3   : > { %11642 = vmatprep.subr.bf16.mxu1 %v12891_v10  ;;  %11662 = vmatprep.subr.bf16.mxu0 %v12891_v10 }
0x16c6   : > { %11643 = vmatpush3.bf16.msra.mxu1 %v12676_v52  ;;  %11663 = vmatpush3.bf16.msra.mxu0 %v12684_v54 }
0x16c7   : > { %11644 = vmatprep.subr.bf16.mxu1 %v12891_v10  ;;  %11664 = vmatprep.subr.bf16.mxu0 %v12891_v10 }
0x16ca   : > { %11645 = vmatpush3.bf16.msra.mxu1 %v12677_v23  ;;  %11665 = vmatpush3.bf16.msra.mxu0 %v12685_v6 }
0x16cb   : > { %11646 = vmatprep.subr.bf16.mxu1 %v12891_v10  ;;  %11666 = vmatprep.subr.bf16.mxu0 %v12891_v10 }
0x16ce   : > { %11647 = vmatpush3.bf16.msra.mxu1 %v12678_v16  ;;  %11667 = vmatpush3.bf16.msra.mxu0 %v12686_v7 }
0x175a   : > { %v9321_v28 = vpop.f32.mrb[108].mxu1 }
0x175b   : > { %v9322_v34 = vadd.f32 %v9321_v28, %v9282_v56  ;;  %v11570_v39 = vpop.f32.mrb[109].mxu1 }
0x175c   : > { %v9324_v48 = vpop.f32.mrb[110].mxu1 }
0x175d   : > { %v11571_v57 = vpop.f32.mrb[111].mxu1 }
0x1783   : > { %v9535_v58 = vpop.f32.mrb[112].mxu1  ;;  %v9640_v41 = vpop.f32.mrb[104].mxu0 }
0x1784   : > { %v9536_v42 = vadd.f32 %v9535_v58, %v9452_v63  ;;  %v11610_v33 = vpop.f32.mrb[113].mxu1  ;;  %v11630_v2 = vpop.f32.mrb[105].mxu0  ;;  %v9641_v47 = vadd.f32 %v9640_v41, %v9557_v1 }
0x1785   : > { %v9538_v43 = vpop.f32.mrb[114].mxu1  ;;  %v9643_v27 = vpop.f32.mrb[106].mxu0 }
0x1786   : > { %v9646_v46 = vmul.f32 %v9536_v42, %v9322_v34  ;;  %v11611_v60 = vpop.f32.mrb[115].mxu1  ;;  %v11631_v59 = vpop.f32.mrb[107].mxu0 }
0x1788   : > { %v9647_v61 = vadd.f32 %v9646_v46, %v9641_v47 }
0x178a   : > { %v9664_v5 = vpack.c.bf16 %v9647_v61, %v9647_v61 }
0x178c   : > { %11649 = vmatmul.mubr.bf16.vlgmr.msra.gmra.mrb[116].mxu1 %v9664_v5 }
0x185f   : > { %v9748_v21 = vpop.f32.mrb[116].mxu1 }
0x1860   : > { %v9749_v12 = vadd.f32 %v9748_v21, %v9665_v9  ;;  %v11650_v14 = vpop.f32.mrb[117].mxu1 }
0x1861   : > { %v9751_v40 = vpop.f32.mrb[118].mxu1 }
0x1862   : > { %v9754_v0 = vmax.f32 %v9749_v12, 0.0  ;;  %v11651_v44 = vpop.f32.mrb[119].mxu1 }
0x1864   : > { %v9771_v17 = vpack.c.bf16 %v9754_v0, %v9754_v0 }
0x1866   : > { %11669 = vmatmul.mubr.bf16.vlgmr.msra.gmra.mrb[108].mxu0 %v9771_v17 }
0x1939   : > { %v9855_v18 = vpop.f32.mrb[108].mxu0 }
0x193a   : > { %v9856_v62 = vadd.f32 %v9855_v18, %v9772_v8  ;;  %v11670_v10 = vpop.f32.mrb[109].mxu0 }
0x193b   : > { %v9858_v15 = vpop.f32.mrb[110].mxu0 }
0x193c   : > { %9861 = vst [vmem:[%s314_s14] sm:$0x1] %v9856_v62  ;;  %v11671_v19 = vpop.f32.mrb[111].mxu0 }
0x193d   : > { %12816 = shalt.err (!%p12813_p0)
}
0x193e   : > { %s12817_s15 = scalar_lea.hbm %s13593_s3, 16  ;;  %s12821_s19 = scalar_lea.hbm %s13641_s6, 32 }
0x193f   : > { %p12818_p6 = scmp.ne.s32.totalorder %s13593_s3, %s12817_s15  ;;  %p12822_p12 = scmp.lt.u32.totalorder %s13593_s3, %s13641_s6 }
0x1940   : > { %p12823_p1 = scmp.lt.u32.totalorder %s12821_s19, %s12817_s15  ;;  %p12825_p3 = scmp.lt.u32.totalorder %s12817_s15, %s13593_s3 }
0x1941   : > { %p12819_p9 = pnand %p12818_p6, %p13660_p4 }
0x1942   : > { %p12824_p2 = por %p12823_p1, %p12822_p12 }
0x1943   : > { %p12820_p10 = pneg %p12819_p9 }
0x1944   : > { %p12826_p7 = por %p12825_p3, %p12824_p2 }
0x1946   : > { %p12827_p8 = pnand %p12826_p7, %p12820_p10 }
0x1948   : > { %12830 = shalt.err (!%p12827_p8)
}
0x1949   : > { %11748 = dma.vmem_to_hbm [thread:$0]  (%p13660_p4), %s13595_s17, 16, %s13593_s3, %s9863_s13  }
0x194a PF: > { %p11775_p11 = scmp.ge.s32.totalorder %s12877_s24, 2  ;;  %s9887_s29 = sand.u32 1, %s12865_s21  }
0x194b   : > { %p13661_p13 = scmp.ne.s32.totalorder %s13648_s8, 0  ;;  %s9888_s11 = scalar_lea.sflag [#allocation4], %s9887_s29 }
0x194d   : > { %p11764_p5 = pnand %p11775_p11, %p13661_p13 }
0x194f   : > { %12860 = dma.done.wait (!%p11764_p5), %s9888_s11, 16  }
0x1950   : > { %12862 = vsyncadd (!%p11764_p5), %s9888_s11, 4294967280  ;;  %s13662_s14 = sld [smem:[#allocation15_spill]]  ;;  %p19_p0 = scmp.ge.s32.totalorder %s12955_s27, 4  }
0x1951   : > { %s13663_s21 = smov %s12869_s22  ;;  %s13664_s22 = smov %s12873_s23 }
0x1952   : > { %s13666_s24 = smov %s12955_s27  ;;  %21 = sbr.rel (!%p19_p0) target bundleno = 8 (0x8), region = 120 }
0x1956   : > { %s13665_s23 = smov %s13662_s14 }
0x1959   :  { %9892 = vsyncpa [#allocation3], 1 }
0x195a   :  { %9894 = vsyncpa [#allocation3 + $0x1], 1 }
0x195b   :  { %9895 = vsyncpa [#allocation6], 1 }
0x195c   :  { %9896 = vsyncpa [#allocation9], 1 }
0x195d   :  { %9897 = vsyncpa [#allocation4], 1 }
0x195e   :  { %9899 = vsyncpa [#allocation4 + $0x1], 1 }

</bundles_post_ra>
